<compile_context>
chip_gen: v7x
topology: tpu7x:2x2x1
jax: 0.10.0
libtpu: 0.0.40
codegen_flags: <defaults>
</compile_context>

<pallas_src>
import jax
import jax.numpy as jnp
from jax import lax
from jax.experimental import pallas as pl
from jax.experimental.pallas import tpu as pltpu

# ----------------------------- configuration -------------------------------
D_MODEL = 8
D_STATE = 4
D_CONV = 4
EXPAND = 2
N_OUT = 3                                   # fc: Linear(d_model, 3)
SEQ_LEN = 128                               # multiple of the 8-step scan chunk
BATCH = 2

D_INNER = EXPAND * D_MODEL                  # 16
DT_RANK = max(1, -(-D_MODEL // 16))         # ceil(d_model/16) = 1
NX = DT_RANK + 2 * D_STATE                  # x_proj width per direction = 9
DP = 2 * D_INNER                            # both directions packed    = 32
SP = 2 * D_STATE * D_INNER                  # packed scan-state width   = 128
CHUNK = 8

assert SEQ_LEN % CHUNK == 0


def _sigmoid(x):
    return 1.0 / (1.0 + jnp.exp(-x))


def _softplus(x):
    return jnp.maximum(x, 0.0) + jnp.log(1.0 + jnp.exp(-jnp.abs(x)))


# ------------------------- fused bi-Mamba + fc kernel ------------------------
def bimamba_kernel(x_ref, w_in_ref, conv_w_ref, conv_b_ref, w_x_ref, w_dt_ref,
                   b_dt_ref, a_t_ref, d_ref, w_out_ref, w_fc_ref, b_fc_ref,
                   o_ref, pad_ref, da_ref, dbu_ref, h_ref):
    L = SEQ_LEN
    xx = x_ref[0]                                            # (L, 2*D_MODEL)

    # --- in_proj: both directions in one block-diagonal matmul --------------
    # columns pre-permuted so xz = [x_fwd | x_rev | z_fwd | z_rev]
    xz = jnp.dot(xx, w_in_ref[...], preferred_element_type=jnp.float32)
    x_in = xz[:, :DP]                                        # (L, 32)
    z = xz[:, DP:]                                           # (L, 32)

    # --- causal depthwise conv1d + SiLU (per-lane, directions independent) --
    pad_ref[0:CHUNK, :] = jnp.zeros((CHUNK, DP), jnp.float32)
    pad_ref[CHUNK:, :] = x_in                                # aligned store
    acc = jnp.zeros((L, DP), jnp.float32) + conv_b_ref[...]
    for k in range(D_CONV):                                  # tap k -> shift (3-k)
        off = CHUNK - (D_CONV - 1) + k                       # 5, 6, 7, 8
        acc = acc + conv_w_ref[k:k + 1, :] * pad_ref[off:off + L, :]
    xc = acc * _sigmoid(acc)                                 # (L, 32)

    # --- x_proj (block-diagonal): [dt | B | C] for fwd then rev -------------
    x_dbl = jnp.dot(xc, w_x_ref[...], preferred_element_type=jnp.float32)

    lane = lax.broadcasted_iota(jnp.int32, (L, DP), 1)
    is_fwd = lane < D_INNER                                  # fwd/rev lane mask

    # --- dt_proj + softplus ---------------------------------------------------
    delta_lin = jnp.zeros((L, DP), jnp.float32) + b_dt_ref[...]
    for r in range(DT_RANK):
        dt_col = jnp.where(is_fwd, x_dbl[:, r:r + 1],
                           x_dbl[:, NX + r:NX + r + 1])
        delta_lin = delta_lin + dt_col * w_dt_ref[r:r + 1, :]
    delta = _softplus(delta_lin)                             # (L, 32)
    du = delta * xc

    # --- discretize: da = exp(delta*A), dbu = B*delta*u in packed (L, 128) ---
    # lane layout: s*32 + d*16 + c  (state-major, fwd half then rev half)
    for s in range(D_STATE):
        da_ref[:, s * DP:(s + 1) * DP] = jnp.exp(delta * a_t_ref[s:s + 1, :])
        b_col = jnp.where(is_fwd,
                          x_dbl[:, DT_RANK + s:DT_RANK + s + 1],
                          x_dbl[:, NX + DT_RANK + s:NX + DT_RANK + s + 1])
        dbu_ref[:, s * DP:(s + 1) * DP] = b_col * du

    # --- selective scan h[l] = da[l]*h[l-1] + dbu[l], chunked by 8 -----------
    row8 = lax.broadcasted_iota(jnp.int32, (CHUNK, SP), 0)

    def chunk_body(i, h):
        i0 = pl.multiple_of(i * CHUNK, CHUNK)
        da_blk = da_ref[pl.ds(i0, CHUNK), :]                 # aligned (8,128)
        dbu_blk = dbu_ref[pl.ds(i0, CHUNK), :]
        blk = jnp.zeros((CHUNK, SP), jnp.float32)
        for j in range(CHUNK):                               # unrolled
            h = da_blk[j:j + 1, :] * h + dbu_blk[j:j + 1, :]
            blk = jnp.where(row8 == j, h, blk)
        h_ref[pl.ds(i0, CHUNK), :] = blk                     # aligned store
        return h

    lax.fori_loop(0, L // CHUNK, chunk_body,
                  jnp.zeros((1, SP), jnp.float32))

    # --- y = C*h + D*u, gate with SiLU(z) ------------------------------------
    h_all = h_ref[...]                                       # (L, 128)
    y = d_ref[...] * xc
    for s in range(D_STATE):
        cf = DT_RANK + D_STATE + s
        c_col = jnp.where(is_fwd, x_dbl[:, cf:cf + 1],
                          x_dbl[:, NX + cf:NX + cf + 1])
        y = y + h_all[:, s * DP:(s + 1) * DP] * c_col
    y = y * (z * _sigmoid(z))

    # --- out_proj of both directions (and their sum) + fc head, fused -------
    msum = jnp.dot(y, w_out_ref[...], preferred_element_type=jnp.float32)
    o_ref[0] = jnp.dot(msum, w_fc_ref[...],
                       preferred_element_type=jnp.float32) + b_fc_ref[...]


# --------------------------- parameter packing ------------------------------
def _block_diag(a, b):
    ra, ca = a.shape
    out = jnp.zeros((ra + b.shape[0], ca + b.shape[1]), jnp.float32)
    out = out.at[:ra, :ca].set(a)
    out = out.at[ra:, ca:].set(b)
    return out


def pack_params(params):
    pf, pr = params['mamba'], params['flipped_mamba']
    # in_proj with columns reordered so the output is [x_f | x_r | z_f | z_r]
    w_in = jnp.zeros((2 * D_MODEL, 4 * D_INNER), jnp.float32)
    w_in = w_in.at[:D_MODEL, 0:D_INNER].set(pf['w_in'][:, :D_INNER])
    w_in = w_in.at[D_MODEL:, D_INNER:2 * D_INNER].set(pr['w_in'][:, :D_INNER])
    w_in = w_in.at[:D_MODEL, 2 * D_INNER:3 * D_INNER].set(pf['w_in'][:, D_INNER:])
    w_in = w_in.at[D_MODEL:, 3 * D_INNER:].set(pr['w_in'][:, D_INNER:])
    return {
        'w_in': w_in,
        'conv_w': jnp.concatenate([pf['conv_w_t'], pr['conv_w_t']], axis=1),
        'conv_b': jnp.concatenate([pf['conv_b'], pr['conv_b']], axis=1),
        'w_x': _block_diag(pf['w_x'], pr['w_x']),
        'w_dt': jnp.concatenate([pf['w_dt'], pr['w_dt']], axis=1),
        'b_dt': jnp.concatenate([pf['b_dt'], pr['b_dt']], axis=1),
        'a_t': jnp.concatenate([-jnp.exp(pf['a_log_t']),
                                -jnp.exp(pr['a_log_t'])], axis=1),
        'd': jnp.concatenate([pf['d'], pr['d']], axis=1),
        'w_out': jnp.concatenate([pf['w_out'], pr['w_out']], axis=0),
        'w_fc': params['fc_w'],
        'b_fc': params['fc_b'],
    }


_PARAM_ORDER = ('w_in', 'conv_w', 'conv_b', 'w_x', 'w_dt', 'b_dt', 'a_t', 'd',
                'w_out', 'w_fc', 'b_fc')


# ------------------------------ pallas wrapper -------------------------------
def bimamba_pallas(xx, pk):
    B, L, _ = xx.shape

    def full_spec(a):
        nd = a.ndim
        return pl.BlockSpec(a.shape, lambda b: (0,) * nd)

    return pl.pallas_call(
        bimamba_kernel,
        out_shape=jax.ShapeDtypeStruct((B, L, N_OUT), jnp.float32),
        grid_spec=pltpu.PrefetchScalarGridSpec(
            num_scalar_prefetch=0,
            grid=(B,),
            in_specs=[pl.BlockSpec((1, L, 2 * D_MODEL), lambda b: (b, 0, 0))]
                     + [full_spec(pk[k]) for k in _PARAM_ORDER],
            out_specs=pl.BlockSpec((1, L, N_OUT), lambda b: (b, 0, 0)),
            scratch_shapes=[
                pltpu.VMEM((L + CHUNK, DP), jnp.float32),    # causal-conv pad
                pltpu.VMEM((L, SP), jnp.float32),            # exp(delta*A)
                pltpu.VMEM((L, SP), jnp.float32),            # delta*B*u
                pltpu.VMEM((L, SP), jnp.float32),            # hidden states
            ],
        ),
        compiler_params=pltpu.CompilerParams(
            dimension_semantics=("parallel",)),               # v7x: 2 TCs
    )(xx, *[pk[k] for k in _PARAM_ORDER])


def segmentation_forward(x, params):
    pk = pack_params(params)
    # both time directions packed along channels -> one fused kernel
    xx = jnp.concatenate([x, jnp.flip(x, axis=1)], axis=-1)   # (B, L, 2*dm)
    # nn.Dropout(p=0.2) is the identity in eval/inference mode.
    return bimamba_pallas(xx, pk)


# ------------------------------- parameters ---------------------------------
def init_mamba_params(key):
    ks = jax.random.split(key, 6)

    def nrm(k, shape, scale):
        return scale * jax.random.normal(k, shape, jnp.float32)

    return {
        'w_in': nrm(ks[0], (D_MODEL, 2 * D_INNER), 1.0 / jnp.sqrt(D_MODEL)),
        'conv_w_t': nrm(ks[1], (D_CONV, D_INNER), 1.0 / jnp.sqrt(D_CONV)),
        'conv_b': nrm(ks[2], (1, D_INNER), 0.1),
        'w_x': nrm(ks[3], (D_INNER, DT_RANK + 2 * D_STATE),
                   1.0 / jnp.sqrt(D_INNER)),
        'w_dt': nrm(ks[4], (DT_RANK, D_INNER), 1.0),
        'b_dt': jnp.full((1, D_INNER), -2.0, jnp.float32),
        'a_log_t': jnp.log(jnp.arange(1, D_STATE + 1, dtype=jnp.float32))[:, None]
                   * jnp.ones((D_STATE, D_INNER), jnp.float32),
        'd': jnp.ones((1, D_INNER), jnp.float32),
        'w_out': nrm(ks[5], (D_INNER, D_MODEL), 1.0 / jnp.sqrt(D_INNER)),
    }


# ---------------------------- pure-JAX reference -----------------------------
def mamba_ref(x, p):
    B, L, _ = x.shape
    xz = jnp.einsum('bld,de->ble', x, p['w_in'])
    x_in, z = xz[..., :D_INNER], xz[..., D_INNER:]
    xp = jnp.pad(x_in, ((0, 0), (D_CONV - 1, 0), (0, 0)))
    conv = jnp.zeros_like(x_in) + p['conv_b'][0][None, None, :]
    for k in range(D_CONV):
        conv = conv + p['conv_w_t'][k][None, None, :] * xp[:, k:k + L, :]
    xc = conv * _sigmoid(conv)
    x_dbl = jnp.einsum('bld,de->ble', xc, p['w_x'])
    dt = x_dbl[..., :DT_RANK]
    bm = x_dbl[..., DT_RANK:DT_RANK + D_STATE]
    cm = x_dbl[..., DT_RANK + D_STATE:DT_RANK + 2 * D_STATE]
    delta = _softplus(jnp.einsum('blr,rd->bld', dt, p['w_dt']) + p['b_dt'][0])
    a_t = -jnp.exp(p['a_log_t'])                                  # (S, D)
    da = jnp.exp(delta[:, :, None, :] * a_t[None, None, :, :])    # (B,L,S,D)
    dbu = bm[:, :, :, None] * (delta * xc)[:, :, None, :]         # (B,L,S,D)

    def scan_one(da_b, dbu_b):
        def step(h, inp):
            h = inp[0] * h + inp[1]
            return h, h
        _, hs = lax.scan(step, jnp.zeros((D_STATE, D_INNER), jnp.float32),
                         (da_b, dbu_b))
        return hs

    hs = jax.vmap(scan_one)(da, dbu)                              # (B,L,S,D)
    y = jnp.einsum('blsd,bls->bld', hs, cm) + p['d'][0] * xc
    y = y * (z * _sigmoid(z))
    return jnp.einsum('bld,de->ble', y, p['w_out'])


def segmentation_ref(x, params):
    out = (mamba_ref(x, params['mamba'])
           + mamba_ref(jnp.flip(x, axis=1), params['flipped_mamba']))
    # dropout is identity at inference; fc applied per position
    return jnp.einsum('bld,do->blo', out, params['fc_w']) + params['fc_b'][0]


# ----------------------------------- main ------------------------------------
if __name__ == "__main__":
    key = jax.random.PRNGKey(0)
    k_x, k_m1, k_m2, k_fc1, k_fc2 = jax.random.split(key, 5)

    x = jax.random.normal(k_x, (BATCH, SEQ_LEN, D_MODEL), jnp.float32)
    params = {
        'mamba': init_mamba_params(k_m1),
        'flipped_mamba': init_mamba_params(k_m2),
        'fc_w': 0.1 * jax.random.normal(k_fc1, (D_MODEL, N_OUT), jnp.float32),
        'fc_b': 0.1 * jax.random.normal(k_fc2, (1, N_OUT), jnp.float32),
    }

    fwd = jax.jit(segmentation_forward)
    out = jax.block_until_ready(fwd(x, params))
    ref = jax.block_until_ready(segmentation_ref(x, params))

    assert out.shape == (BATCH, SEQ_LEN, N_OUT), out.shape
    if not bool(jnp.allclose(out, ref, rtol=1e-3, atol=1e-3)):
        err = float(jnp.max(jnp.abs(out - ref)))
        raise AssertionError(f"kernel/ref mismatch (max abs err {err})")
    print("KERNEL_OK")
</pallas_src>

<mosaic_0001>
module attributes {stable_mosaic.version = 11 : i64} {
  func.func @bimamba_kernel(%arg0: i32, %arg1: memref<1x128x16xf32, #tpu.memory_space<vmem>>, %arg2: memref<16x64xf32, #tpu.memory_space<vmem>>, %arg3: memref<4x32xf32, #tpu.memory_space<vmem>>, %arg4: memref<1x32xf32, #tpu.memory_space<vmem>>, %arg5: memref<32x18xf32, #tpu.memory_space<vmem>>, %arg6: memref<1x32xf32, #tpu.memory_space<vmem>>, %arg7: memref<1x32xf32, #tpu.memory_space<vmem>>, %arg8: memref<4x32xf32, #tpu.memory_space<vmem>>, %arg9: memref<1x32xf32, #tpu.memory_space<vmem>>, %arg10: memref<32x8xf32, #tpu.memory_space<vmem>>, %arg11: memref<8x3xf32, #tpu.memory_space<vmem>>, %arg12: memref<1x3xf32, #tpu.memory_space<vmem>>, %arg13: memref<1x128x3xf32, #tpu.memory_space<vmem>>, %arg14: memref<136x32xf32, #tpu.memory_space<vmem>>, %arg15: memref<128x128xf32, #tpu.memory_space<vmem>>, %arg16: memref<128x128xf32, #tpu.memory_space<vmem>>, %arg17: memref<128x128xf32, #tpu.memory_space<vmem>>) attributes {dimension_semantics = [#tpu.dimension_semantics<parallel>], iteration_bounds = array<i64: 2>, scalar_prefetch = 0 : i64, scratch_operands = 4 : i64, tpu.core_type = #tpu.core_type<tc>, window_params = [{transform_indices = @transform_0, window_bounds = array<i64: 1, 128, 16>}, {pipeline_mode = #tpu.pipeline_mode<synchronous>, transform_indices = @transform_1, window_bounds = array<i64: 16, 64>}, {pipeline_mode = #tpu.pipeline_mode<synchronous>, transform_indices = @transform_2, window_bounds = array<i64: 4, 32>}, {pipeline_mode = #tpu.pipeline_mode<synchronous>, transform_indices = @transform_3, window_bounds = array<i64: 1, 32>}, {pipeline_mode = #tpu.pipeline_mode<synchronous>, transform_indices = @transform_4, window_bounds = array<i64: 32, 18>}, {pipeline_mode = #tpu.pipeline_mode<synchronous>, transform_indices = @transform_5, window_bounds = array<i64: 1, 32>}, {pipeline_mode = #tpu.pipeline_mode<synchronous>, transform_indices = @transform_6, window_bounds = array<i64: 1, 32>}, {pipeline_mode = #tpu.pipeline_mode<synchronous>, transform_indices = @transform_7, window_bounds = array<i64: 4, 32>}, {pipeline_mode = #tpu.pipeline_mode<synchronous>, transform_indices = @transform_8, window_bounds = array<i64: 1, 32>}, {pipeline_mode = #tpu.pipeline_mode<synchronous>, transform_indices = @transform_9, window_bounds = array<i64: 32, 8>}, {pipeline_mode = #tpu.pipeline_mode<synchronous>, transform_indices = @transform_10, window_bounds = array<i64: 8, 3>}, {pipeline_mode = #tpu.pipeline_mode<synchronous>, transform_indices = @transform_11, window_bounds = array<i64: 1, 3>}, {transform_indices = @transform_12, window_bounds = array<i64: 1, 128, 3>}]} {
    %c0 = arith.constant 0 : index
    %c0_0 = arith.constant 0 : index
    %c0_1 = arith.constant 0 : index
    %0 = vector.load %arg1[%c0, %c0_0, %c0_1] : memref<1x128x16xf32, #tpu.memory_space<vmem>>, vector<1x128x16xf32>
    %1 = vector.shape_cast %0 : vector<1x128x16xf32> to vector<128x16xf32>
    %c0_2 = arith.constant 0 : index
    %c0_3 = arith.constant 0 : index
    %2 = vector.load %arg2[%c0_2, %c0_3] : memref<16x64xf32, #tpu.memory_space<vmem>>, vector<16x64xf32>
    %cst = arith.constant dense<0.000000e+00> : vector<128x64xf32>
    %3 = tpu.matmul %1, %2, %cst {dimension_numbers = #tpu.dot_dimension_numbers<[1], [0], [0], [1], [0, 0, 1, 1], [], []>} : vector<128x16xf32>, vector<16x64xf32>, vector<128x64xf32> -> vector<128x64xf32>
    %4 = vector.extract_strided_slice %3 {offsets = [0, 0], sizes = [128, 32], strides = [1, 1]} : vector<128x64xf32> to vector<128x32xf32>
    %5 = vector.extract_strided_slice %3 {offsets = [0, 32], sizes = [128, 32], strides = [1, 1]} : vector<128x64xf32> to vector<128x32xf32>
    %cst_4 = arith.constant 0.000000e+00 : f32
    %6 = vector.broadcast %cst_4 : f32 to vector<8x32xf32>
    %c0_5 = arith.constant 0 : index
    %c0_6 = arith.constant 0 : index
    %7 = vector.load %arg14[%c0_5, %c0_6] : memref<136x32xf32, #tpu.memory_space<vmem>>, vector<8x32xf32>
    tpu.vector_store %arg14[%c0_5, %c0_6], %6 {strides = array<i32>} : memref<136x32xf32, #tpu.memory_space<vmem>>, vector<8x32xf32>,
    %c8 = arith.constant 8 : index
    %c0_7 = arith.constant 0 : index
    %8 = vector.load %arg14[%c8, %c0_7] : memref<136x32xf32, #tpu.memory_space<vmem>>, vector<128x32xf32>
    tpu.vector_store %arg14[%c8, %c0_7], %4 {strides = array<i32>} : memref<136x32xf32, #tpu.memory_space<vmem>>, vector<128x32xf32>,
    %cst_8 = arith.constant 0.000000e+00 : f32
    %9 = vector.broadcast %cst_8 : f32 to vector<128x32xf32>
    %c0_9 = arith.constant 0 : index
    %c0_10 = arith.constant 0 : index
    %10 = vector.load %arg4[%c0_9, %c0_10] : memref<1x32xf32, #tpu.memory_space<vmem>>, vector<1x32xf32>
    %11 = vector.broadcast %10 : vector<1x32xf32> to vector<128x32xf32>
    %12 = arith.addf %9, %11 : vector<128x32xf32>
    %c0_11 = arith.constant 0 : index
    %c0_12 = arith.constant 0 : index
    %13 = vector.load %arg3[%c0_11, %c0_12] : memref<4x32xf32, #tpu.memory_space<vmem>>, vector<1x32xf32>
    %c5 = arith.constant 5 : index
    %c0_13 = arith.constant 0 : index
    %14 = vector.load %arg14[%c5, %c0_13] : memref<136x32xf32, #tpu.memory_space<vmem>>, vector<128x32xf32>
    %15 = vector.broadcast %13 : vector<1x32xf32> to vector<128x32xf32>
    %16 = arith.mulf %15, %14 : vector<128x32xf32>
    %17 = arith.addf %12, %16 : vector<128x32xf32>
    %c1 = arith.constant 1 : index
    %c0_14 = arith.constant 0 : index
    %18 = vector.load %arg3[%c1, %c0_14] : memref<4x32xf32, #tpu.memory_space<vmem>>, vector<1x32xf32>
    %c6 = arith.constant 6 : index
    %c0_15 = arith.constant 0 : index
    %19 = vector.load %arg14[%c6, %c0_15] : memref<136x32xf32, #tpu.memory_space<vmem>>, vector<128x32xf32>
    %20 = vector.broadcast %18 : vector<1x32xf32> to vector<128x32xf32>
    %21 = arith.mulf %20, %19 : vector<128x32xf32>
    %22 = arith.addf %17, %21 : vector<128x32xf32>
    %c2 = arith.constant 2 : index
    %c0_16 = arith.constant 0 : index
    %23 = vector.load %arg3[%c2, %c0_16] : memref<4x32xf32, #tpu.memory_space<vmem>>, vector<1x32xf32>
    %c7 = arith.constant 7 : index
    %c0_17 = arith.constant 0 : index
    %24 = vector.load %arg14[%c7, %c0_17] : memref<136x32xf32, #tpu.memory_space<vmem>>, vector<128x32xf32>
    %25 = vector.broadcast %23 : vector<1x32xf32> to vector<128x32xf32>
    %26 = arith.mulf %25, %24 : vector<128x32xf32>
    %27 = arith.addf %22, %26 : vector<128x32xf32>
    %c3 = arith.constant 3 : index
    %c0_18 = arith.constant 0 : index
    %28 = vector.load %arg3[%c3, %c0_18] : memref<4x32xf32, #tpu.memory_space<vmem>>, vector<1x32xf32>
    %c8_19 = arith.constant 8 : index
    %c0_20 = arith.constant 0 : index
    %29 = vector.load %arg14[%c8_19, %c0_20] : memref<136x32xf32, #tpu.memory_space<vmem>>, vector<128x32xf32>
    %30 = vector.broadcast %28 : vector<1x32xf32> to vector<128x32xf32>
    %31 = arith.mulf %30, %29 : vector<128x32xf32>
    %32 = arith.addf %27, %31 : vector<128x32xf32>
    %cst_21 = arith.constant 0.000000e+00 : f32
    %33 = vector.broadcast %cst_21 : f32 to vector<128x32xf32>
    %34 = arith.subf %33, %32 : vector<128x32xf32>
    %35 = math.exp %34 : vector<128x32xf32>
    %cst_22 = arith.constant 1.000000e+00 : f32
    %36 = vector.broadcast %cst_22 : f32 to vector<128x32xf32>
    %37 = arith.addf %36, %35 : vector<128x32xf32>
    %cst_23 = arith.constant 1.000000e+00 : f32
    %38 = vector.broadcast %cst_23 : f32 to vector<128x32xf32>
    %39 = arith.divf %38, %37 : vector<128x32xf32>
    %40 = arith.mulf %32, %39 : vector<128x32xf32>
    %c0_24 = arith.constant 0 : index
    %c0_25 = arith.constant 0 : index
    %41 = vector.load %arg5[%c0_24, %c0_25] : memref<32x18xf32, #tpu.memory_space<vmem>>, vector<32x18xf32>
    %cst_26 = arith.constant dense<0.000000e+00> : vector<128x18xf32>
    %42 = tpu.matmul %40, %41, %cst_26 {dimension_numbers = #tpu.dot_dimension_numbers<[1], [0], [0], [1], [0, 0, 1, 1], [], []>} : vector<128x32xf32>, vector<32x18xf32>, vector<128x18xf32> -> vector<128x18xf32>
    %43 = tpu.iota {dimensions = array<i32: 1>} : vector<128x32xi32>
    %c16_i32 = arith.constant 16 : i32
    %44 = vector.broadcast %c16_i32 : i32 to vector<128x32xi32>
    %45 = arith.cmpi slt, %43, %44 : vector<128x32xi32>
    %cst_27 = arith.constant 0.000000e+00 : f32
    %46 = vector.broadcast %cst_27 : f32 to vector<128x32xf32>
    %c0_28 = arith.constant 0 : index
    %c0_29 = arith.constant 0 : index
    %47 = vector.load %arg7[%c0_28, %c0_29] : memref<1x32xf32, #tpu.memory_space<vmem>>, vector<1x32xf32>
    %48 = vector.broadcast %47 : vector<1x32xf32> to vector<128x32xf32>
    %49 = arith.addf %46, %48 : vector<128x32xf32>
    %50 = vector.extract_strided_slice %42 {offsets = [0, 0], sizes = [128, 1], strides = [1, 1]} : vector<128x18xf32> to vector<128x1xf32>
    %51 = vector.extract_strided_slice %42 {offsets = [0, 9], sizes = [128, 1], strides = [1, 1]} : vector<128x18xf32> to vector<128x1xf32>
    %52 = vector.shape_cast %50 : vector<128x1xf32> to vector<128x1xf32>
    %53 = vector.broadcast %52 : vector<128x1xf32> to vector<128x32xf32>
    %54 = vector.shape_cast %51 : vector<128x1xf32> to vector<128x1xf32>
    %55 = vector.broadcast %54 : vector<128x1xf32> to vector<128x32xf32>
    %56 = arith.select %45, %53, %55 : vector<128x32xi1>, vector<128x32xf32>
    %c0_30 = arith.constant 0 : index
    %c0_31 = arith.constant 0 : index
    %57 = vector.load %arg6[%c0_30, %c0_31] : memref<1x32xf32, #tpu.memory_space<vmem>>, vector<1x32xf32>
    %58 = vector.broadcast %57 : vector<1x32xf32> to vector<128x32xf32>
    %59 = arith.mulf %56, %58 : vector<128x32xf32>
    %60 = arith.addf %49, %59 : vector<128x32xf32>
    %cst_32 = arith.constant 0.000000e+00 : f32
    %61 = vector.broadcast %cst_32 : f32 to vector<128x32xf32>
    %62 = arith.maximumf %60, %61 : vector<128x32xf32>
    %63 = math.absf %60 : vector<128x32xf32>
    %cst_33 = arith.constant 0.000000e+00 : f32
    %64 = vector.broadcast %cst_33 : f32 to vector<128x32xf32>
    %65 = arith.subf %64, %63 : vector<128x32xf32>
    %66 = math.exp %65 : vector<128x32xf32>
    %cst_34 = arith.constant 1.000000e+00 : f32
    %67 = vector.broadcast %cst_34 : f32 to vector<128x32xf32>
    %68 = arith.addf %67, %66 : vector<128x32xf32>
    %69 = math.log %68 : vector<128x32xf32>
    %70 = arith.addf %62, %69 : vector<128x32xf32>
    %71 = arith.mulf %70, %40 : vector<128x32xf32>
    %c0_35 = arith.constant 0 : index
    %c0_36 = arith.constant 0 : index
    %72 = vector.load %arg8[%c0_35, %c0_36] : memref<4x32xf32, #tpu.memory_space<vmem>>, vector<1x32xf32>
    %73 = vector.broadcast %72 : vector<1x32xf32> to vector<128x32xf32>
    %74 = arith.mulf %70, %73 : vector<128x32xf32>
    %75 = math.exp %74 : vector<128x32xf32>
    %c0_37 = arith.constant 0 : index
    %c0_38 = arith.constant 0 : index
    %76 = vector.load %arg15[%c0_37, %c0_38] : memref<128x128xf32, #tpu.memory_space<vmem>>, vector<128x32xf32>
    tpu.vector_store %arg15[%c0_37, %c0_38], %75 {strides = array<i32>} : memref<128x128xf32, #tpu.memory_space<vmem>>, vector<128x32xf32>,
    %77 = vector.extract_strided_slice %42 {offsets = [0, 1], sizes = [128, 1], strides = [1, 1]} : vector<128x18xf32> to vector<128x1xf32>
    %78 = vector.extract_strided_slice %42 {offsets = [0, 10], sizes = [128, 1], strides = [1, 1]} : vector<128x18xf32> to vector<128x1xf32>
    %79 = vector.shape_cast %77 : vector<128x1xf32> to vector<128x1xf32>
    %80 = vector.broadcast %79 : vector<128x1xf32> to vector<128x32xf32>
    %81 = vector.shape_cast %78 : vector<128x1xf32> to vector<128x1xf32>
    %82 = vector.broadcast %81 : vector<128x1xf32> to vector<128x32xf32>
    %83 = arith.select %45, %80, %82 : vector<128x32xi1>, vector<128x32xf32>
    %84 = arith.mulf %83, %71 : vector<128x32xf32>
    %c0_39 = arith.constant 0 : index
    %c0_40 = arith.constant 0 : index
    %85 = vector.load %arg16[%c0_39, %c0_40] : memref<128x128xf32, #tpu.memory_space<vmem>>, vector<128x32xf32>
    tpu.vector_store %arg16[%c0_39, %c0_40], %84 {strides = array<i32>} : memref<128x128xf32, #tpu.memory_space<vmem>>, vector<128x32xf32>,
    %c1_41 = arith.constant 1 : index
    %c0_42 = arith.constant 0 : index
    %86 = vector.load %arg8[%c1_41, %c0_42] : memref<4x32xf32, #tpu.memory_space<vmem>>, vector<1x32xf32>
    %87 = vector.broadcast %86 : vector<1x32xf32> to vector<128x32xf32>
    %88 = arith.mulf %70, %87 : vector<128x32xf32>
    %89 = math.exp %88 : vector<128x32xf32>
    %c0_43 = arith.constant 0 : index
    %c32 = arith.constant 32 : index
    %90 = vector.load %arg15[%c0_43, %c32] : memref<128x128xf32, #tpu.memory_space<vmem>>, vector<128x32xf32>
    tpu.vector_store %arg15[%c0_43, %c32], %89 {strides = array<i32>} : memref<128x128xf32, #tpu.memory_space<vmem>>, vector<128x32xf32>,
    %91 = vector.extract_strided_slice %42 {offsets = [0, 2], sizes = [128, 1], strides = [1, 1]} : vector<128x18xf32> to vector<128x1xf32>
    %92 = vector.extract_strided_slice %42 {offsets = [0, 11], sizes = [128, 1], strides = [1, 1]} : vector<128x18xf32> to vector<128x1xf32>
    %93 = vector.shape_cast %91 : vector<128x1xf32> to vector<128x1xf32>
    %94 = vector.broadcast %93 : vector<128x1xf32> to vector<128x32xf32>
    %95 = vector.shape_cast %92 : vector<128x1xf32> to vector<128x1xf32>
    %96 = vector.broadcast %95 : vector<128x1xf32> to vector<128x32xf32>
    %97 = arith.select %45, %94, %96 : vector<128x32xi1>, vector<128x32xf32>
    %98 = arith.mulf %97, %71 : vector<128x32xf32>
    %c0_44 = arith.constant 0 : index
    %c32_45 = arith.constant 32 : index
    %99 = vector.load %arg16[%c0_44, %c32_45] : memref<128x128xf32, #tpu.memory_space<vmem>>, vector<128x32xf32>
    tpu.vector_store %arg16[%c0_44, %c32_45], %98 {strides = array<i32>} : memref<128x128xf32, #tpu.memory_space<vmem>>, vector<128x32xf32>,
    %c2_46 = arith.constant 2 : index
    %c0_47 = arith.constant 0 : index
    %100 = vector.load %arg8[%c2_46, %c0_47] : memref<4x32xf32, #tpu.memory_space<vmem>>, vector<1x32xf32>
    %101 = vector.broadcast %100 : vector<1x32xf32> to vector<128x32xf32>
    %102 = arith.mulf %70, %101 : vector<128x32xf32>
    %103 = math.exp %102 : vector<128x32xf32>
    %c0_48 = arith.constant 0 : index
    %c64 = arith.constant 64 : index
    %104 = vector.load %arg15[%c0_48, %c64] : memref<128x128xf32, #tpu.memory_space<vmem>>, vector<128x32xf32>
    tpu.vector_store %arg15[%c0_48, %c64], %103 {strides = array<i32>} : memref<128x128xf32, #tpu.memory_space<vmem>>, vector<128x32xf32>,
    %105 = vector.extract_strided_slice %42 {offsets = [0, 3], sizes = [128, 1], strides = [1, 1]} : vector<128x18xf32> to vector<128x1xf32>
    %106 = vector.extract_strided_slice %42 {offsets = [0, 12], sizes = [128, 1], strides = [1, 1]} : vector<128x18xf32> to vector<128x1xf32>
    %107 = vector.shape_cast %105 : vector<128x1xf32> to vector<128x1xf32>
    %108 = vector.broadcast %107 : vector<128x1xf32> to vector<128x32xf32>
    %109 = vector.shape_cast %106 : vector<128x1xf32> to vector<128x1xf32>
    %110 = vector.broadcast %109 : vector<128x1xf32> to vector<128x32xf32>
    %111 = arith.select %45, %108, %110 : vector<128x32xi1>, vector<128x32xf32>
    %112 = arith.mulf %111, %71 : vector<128x32xf32>
    %c0_49 = arith.constant 0 : index
    %c64_50 = arith.constant 64 : index
    %113 = vector.load %arg16[%c0_49, %c64_50] : memref<128x128xf32, #tpu.memory_space<vmem>>, vector<128x32xf32>
    tpu.vector_store %arg16[%c0_49, %c64_50], %112 {strides = array<i32>} : memref<128x128xf32, #tpu.memory_space<vmem>>, vector<128x32xf32>,
    %c3_51 = arith.constant 3 : index
    %c0_52 = arith.constant 0 : index
    %114 = vector.load %arg8[%c3_51, %c0_52] : memref<4x32xf32, #tpu.memory_space<vmem>>, vector<1x32xf32>
    %115 = vector.broadcast %114 : vector<1x32xf32> to vector<128x32xf32>
    %116 = arith.mulf %70, %115 : vector<128x32xf32>
    %117 = math.exp %116 : vector<128x32xf32>
    %c0_53 = arith.constant 0 : index
    %c96 = arith.constant 96 : index
    %118 = vector.load %arg15[%c0_53, %c96] : memref<128x128xf32, #tpu.memory_space<vmem>>, vector<128x32xf32>
    tpu.vector_store %arg15[%c0_53, %c96], %117 {strides = array<i32>} : memref<128x128xf32, #tpu.memory_space<vmem>>, vector<128x32xf32>,
    %119 = vector.extract_strided_slice %42 {offsets = [0, 4], sizes = [128, 1], strides = [1, 1]} : vector<128x18xf32> to vector<128x1xf32>
    %120 = vector.extract_strided_slice %42 {offsets = [0, 13], sizes = [128, 1], strides = [1, 1]} : vector<128x18xf32> to vector<128x1xf32>
    %121 = vector.shape_cast %119 : vector<128x1xf32> to vector<128x1xf32>
    %122 = vector.broadcast %121 : vector<128x1xf32> to vector<128x32xf32>
    %123 = vector.shape_cast %120 : vector<128x1xf32> to vector<128x1xf32>
    %124 = vector.broadcast %123 : vector<128x1xf32> to vector<128x32xf32>
    %125 = arith.select %45, %122, %124 : vector<128x32xi1>, vector<128x32xf32>
    %126 = arith.mulf %125, %71 : vector<128x32xf32>
    %c0_54 = arith.constant 0 : index
    %c96_55 = arith.constant 96 : index
    %127 = vector.load %arg16[%c0_54, %c96_55] : memref<128x128xf32, #tpu.memory_space<vmem>>, vector<128x32xf32>
    tpu.vector_store %arg16[%c0_54, %c96_55], %126 {strides = array<i32>} : memref<128x128xf32, #tpu.memory_space<vmem>>, vector<128x32xf32>,
    %128 = tpu.iota {dimensions = array<i32: 0>} : vector<8x128xi32>
    %cst_56 = arith.constant 0.000000e+00 : f32
    %129 = vector.broadcast %cst_56 : f32 to vector<1x128xf32>
    %c0_i32 = arith.constant 0 : i32
    %c16_i32_57 = arith.constant 16 : i32
    %130 = arith.addi %c0_i32, %c16_i32_57 : i32
    %c1_i32 = arith.constant 1 : i32
    %131 = scf.for %arg18 = %c0_i32 to %130 step %c1_i32 iter_args(%arg19 = %129) -> (vector<1x128xf32>)  : i32 {
      %c8_i32 = arith.constant 8 : i32
      %195 = arith.muli %arg18, %c8_i32 : i32
      %196 = tpu.assume_multiple %195, 8 : i32
      %197 = arith.index_cast %196 : i32 to index
      %c0_77 = arith.constant 0 : index
      %198 = vector.load %arg15[%197, %c0_77] : memref<128x128xf32, #tpu.memory_space<vmem>>, vector<8x128xf32>
      %199 = arith.index_cast %196 : i32 to index
      %c0_78 = arith.constant 0 : index
      %200 = vector.load %arg16[%199, %c0_78] : memref<128x128xf32, #tpu.memory_space<vmem>>, vector<8x128xf32>
      %cst_79 = arith.constant 0.000000e+00 : f32
      %201 = vector.broadcast %cst_79 : f32 to vector<8x128xf32>
      %202 = vector.extract_strided_slice %198 {offsets = [0, 0], sizes = [1, 128], strides = [1, 1]} : vector<8x128xf32> to vector<1x128xf32>
      %203 = arith.mulf %202, %arg19 : vector<1x128xf32>
      %204 = vector.extract_strided_slice %200 {offsets = [0, 0], sizes = [1, 128], strides = [1, 1]} : vector<8x128xf32> to vector<1x128xf32>
      %205 = arith.addf %203, %204 : vector<1x128xf32>
      %c0_i32_80 = arith.constant 0 : i32
      %206 = vector.broadcast %c0_i32_80 : i32 to vector<8x128xi32>
      %207 = arith.cmpi eq, %128, %206 : vector<8x128xi32>
      %208 = vector.shape_cast %205 : vector<1x128xf32> to vector<1x128xf32>
      %209 = vector.broadcast %208 : vector<1x128xf32> to vector<8x128xf32>
      %210 = arith.select %207, %209, %201 : vector<8x128xi1>, vector<8x128xf32>
      %211 = vector.extract_strided_slice %198 {offsets = [1, 0], sizes = [1, 128], strides = [1, 1]} : vector<8x128xf32> to vector<1x128xf32>
      %212 = arith.mulf %211, %205 : vector<1x128xf32>
      %213 = vector.extract_strided_slice %200 {offsets = [1, 0], sizes = [1, 128], strides = [1, 1]} : vector<8x128xf32> to vector<1x128xf32>
      %214 = arith.addf %212, %213 : vector<1x128xf32>
      %c1_i32_81 = arith.constant 1 : i32
      %215 = vector.broadcast %c1_i32_81 : i32 to vector<8x128xi32>
      %216 = arith.cmpi eq, %128, %215 : vector<8x128xi32>
      %217 = vector.shape_cast %214 : vector<1x128xf32> to vector<1x128xf32>
      %218 = vector.broadcast %217 : vector<1x128xf32> to vector<8x128xf32>
      %219 = arith.select %216, %218, %210 : vector<8x128xi1>, vector<8x128xf32>
      %220 = vector.extract_strided_slice %198 {offsets = [2, 0], sizes = [1, 128], strides = [1, 1]} : vector<8x128xf32> to vector<1x128xf32>
      %221 = arith.mulf %220, %214 : vector<1x128xf32>
      %222 = vector.extract_strided_slice %200 {offsets = [2, 0], sizes = [1, 128], strides = [1, 1]} : vector<8x128xf32> to vector<1x128xf32>
      %223 = arith.addf %221, %222 : vector<1x128xf32>
      %c2_i32 = arith.constant 2 : i32
      %224 = vector.broadcast %c2_i32 : i32 to vector<8x128xi32>
      %225 = arith.cmpi eq, %128, %224 : vector<8x128xi32>
      %226 = vector.shape_cast %223 : vector<1x128xf32> to vector<1x128xf32>
      %227 = vector.broadcast %226 : vector<1x128xf32> to vector<8x128xf32>
      %228 = arith.select %225, %227, %219 : vector<8x128xi1>, vector<8x128xf32>
      %229 = vector.extract_strided_slice %198 {offsets = [3, 0], sizes = [1, 128], strides = [1, 1]} : vector<8x128xf32> to vector<1x128xf32>
      %230 = arith.mulf %229, %223 : vector<1x128xf32>
      %231 = vector.extract_strided_slice %200 {offsets = [3, 0], sizes = [1, 128], strides = [1, 1]} : vector<8x128xf32> to vector<1x128xf32>
      %232 = arith.addf %230, %231 : vector<1x128xf32>
      %c3_i32 = arith.constant 3 : i32
      %233 = vector.broadcast %c3_i32 : i32 to vector<8x128xi32>
      %234 = arith.cmpi eq, %128, %233 : vector<8x128xi32>
      %235 = vector.shape_cast %232 : vector<1x128xf32> to vector<1x128xf32>
      %236 = vector.broadcast %235 : vector<1x128xf32> to vector<8x128xf32>
      %237 = arith.select %234, %236, %228 : vector<8x128xi1>, vector<8x128xf32>
      %238 = vector.extract_strided_slice %198 {offsets = [4, 0], sizes = [1, 128], strides = [1, 1]} : vector<8x128xf32> to vector<1x128xf32>
      %239 = arith.mulf %238, %232 : vector<1x128xf32>
      %240 = vector.extract_strided_slice %200 {offsets = [4, 0], sizes = [1, 128], strides = [1, 1]} : vector<8x128xf32> to vector<1x128xf32>
      %241 = arith.addf %239, %240 : vector<1x128xf32>
      %c4_i32 = arith.constant 4 : i32
      %242 = vector.broadcast %c4_i32 : i32 to vector<8x128xi32>
      %243 = arith.cmpi eq, %128, %242 : vector<8x128xi32>
      %244 = vector.shape_cast %241 : vector<1x128xf32> to vector<1x128xf32>
      %245 = vector.broadcast %244 : vector<1x128xf32> to vector<8x128xf32>
      %246 = arith.select %243, %245, %237 : vector<8x128xi1>, vector<8x128xf32>
      %247 = vector.extract_strided_slice %198 {offsets = [5, 0], sizes = [1, 128], strides = [1, 1]} : vector<8x128xf32> to vector<1x128xf32>
      %248 = arith.mulf %247, %241 : vector<1x128xf32>
      %249 = vector.extract_strided_slice %200 {offsets = [5, 0], sizes = [1, 128], strides = [1, 1]} : vector<8x128xf32> to vector<1x128xf32>
      %250 = arith.addf %248, %249 : vector<1x128xf32>
      %c5_i32 = arith.constant 5 : i32
      %251 = vector.broadcast %c5_i32 : i32 to vector<8x128xi32>
      %252 = arith.cmpi eq, %128, %251 : vector<8x128xi32>
      %253 = vector.shape_cast %250 : vector<1x128xf32> to vector<1x128xf32>
      %254 = vector.broadcast %253 : vector<1x128xf32> to vector<8x128xf32>
      %255 = arith.select %252, %254, %246 : vector<8x128xi1>, vector<8x128xf32>
      %256 = vector.extract_strided_slice %198 {offsets = [6, 0], sizes = [1, 128], strides = [1, 1]} : vector<8x128xf32> to vector<1x128xf32>
      %257 = arith.mulf %256, %250 : vector<1x128xf32>
      %258 = vector.extract_strided_slice %200 {offsets = [6, 0], sizes = [1, 128], strides = [1, 1]} : vector<8x128xf32> to vector<1x128xf32>
      %259 = arith.addf %257, %258 : vector<1x128xf32>
      %c6_i32 = arith.constant 6 : i32
      %260 = vector.broadcast %c6_i32 : i32 to vector<8x128xi32>
      %261 = arith.cmpi eq, %128, %260 : vector<8x128xi32>
      %262 = vector.shape_cast %259 : vector<1x128xf32> to vector<1x128xf32>
      %263 = vector.broadcast %262 : vector<1x128xf32> to vector<8x128xf32>
      %264 = arith.select %261, %263, %255 : vector<8x128xi1>, vector<8x128xf32>
      %265 = vector.extract_strided_slice %198 {offsets = [7, 0], sizes = [1, 128], strides = [1, 1]} : vector<8x128xf32> to vector<1x128xf32>
      %266 = arith.mulf %265, %259 : vector<1x128xf32>
      %267 = vector.extract_strided_slice %200 {offsets = [7, 0], sizes = [1, 128], strides = [1, 1]} : vector<8x128xf32> to vector<1x128xf32>
      %268 = arith.addf %266, %267 : vector<1x128xf32>
      %c7_i32 = arith.constant 7 : i32
      %269 = vector.broadcast %c7_i32 : i32 to vector<8x128xi32>
      %270 = arith.cmpi eq, %128, %269 : vector<8x128xi32>
      %271 = vector.shape_cast %268 : vector<1x128xf32> to vector<1x128xf32>
      %272 = vector.broadcast %271 : vector<1x128xf32> to vector<8x128xf32>
      %273 = arith.select %270, %272, %264 : vector<8x128xi1>, vector<8x128xf32>
      %274 = arith.index_cast %196 : i32 to index
      %c0_82 = arith.constant 0 : index
      %275 = vector.load %arg17[%274, %c0_82] : memref<128x128xf32, #tpu.memory_space<vmem>>, vector<8x128xf32>
      tpu.vector_store %arg17[%274, %c0_82], %273 {strides = array<i32>} : memref<128x128xf32, #tpu.memory_space<vmem>>, vector<8x128xf32>,
      scf.yield %268 : vector<1x128xf32>
    }
    %c16_i32_58 = arith.constant 16 : i32
    %c0_59 = arith.constant 0 : index
    %c0_60 = arith.constant 0 : index
    %132 = vector.load %arg17[%c0_59, %c0_60] : memref<128x128xf32, #tpu.memory_space<vmem>>, vector<128x128xf32>
    %c0_61 = arith.constant 0 : index
    %c0_62 = arith.constant 0 : index
    %133 = vector.load %arg9[%c0_61, %c0_62] : memref<1x32xf32, #tpu.memory_space<vmem>>, vector<1x32xf32>
    %134 = vector.broadcast %133 : vector<1x32xf32> to vector<128x32xf32>
    %135 = arith.mulf %134, %40 : vector<128x32xf32>
    %136 = vector.extract_strided_slice %42 {offsets = [0, 5], sizes = [128, 1], strides = [1, 1]} : vector<128x18xf32> to vector<128x1xf32>
    %137 = vector.extract_strided_slice %42 {offsets = [0, 14], sizes = [128, 1], strides = [1, 1]} : vector<128x18xf32> to vector<128x1xf32>
    %138 = vector.shape_cast %136 : vector<128x1xf32> to vector<128x1xf32>
    %139 = vector.broadcast %138 : vector<128x1xf32> to vector<128x32xf32>
    %140 = vector.shape_cast %137 : vector<128x1xf32> to vector<128x1xf32>
    %141 = vector.broadcast %140 : vector<128x1xf32> to vector<128x32xf32>
    %142 = arith.select %45, %139, %141 : vector<128x32xi1>, vector<128x32xf32>
    %143 = vector.extract_strided_slice %132 {offsets = [0, 0], sizes = [128, 32], strides = [1, 1]} : vector<128x128xf32> to vector<128x32xf32>
    %144 = arith.mulf %143, %142 : vector<128x32xf32>
    %145 = arith.addf %135, %144 : vector<128x32xf32>
    %146 = vector.extract_strided_slice %42 {offsets = [0, 6], sizes = [128, 1], strides = [1, 1]} : vector<128x18xf32> to vector<128x1xf32>
    %147 = vector.extract_strided_slice %42 {offsets = [0, 15], sizes = [128, 1], strides = [1, 1]} : vector<128x18xf32> to vector<128x1xf32>
    %148 = vector.shape_cast %146 : vector<128x1xf32> to vector<128x1xf32>
    %149 = vector.broadcast %148 : vector<128x1xf32> to vector<128x32xf32>
    %150 = vector.shape_cast %147 : vector<128x1xf32> to vector<128x1xf32>
    %151 = vector.broadcast %150 : vector<128x1xf32> to vector<128x32xf32>
    %152 = arith.select %45, %149, %151 : vector<128x32xi1>, vector<128x32xf32>
    %153 = vector.extract_strided_slice %132 {offsets = [0, 32], sizes = [128, 32], strides = [1, 1]} : vector<128x128xf32> to vector<128x32xf32>
    %154 = arith.mulf %153, %152 : vector<128x32xf32>
    %155 = arith.addf %145, %154 : vector<128x32xf32>
    %156 = vector.extract_strided_slice %42 {offsets = [0, 7], sizes = [128, 1], strides = [1, 1]} : vector<128x18xf32> to vector<128x1xf32>
    %157 = vector.extract_strided_slice %42 {offsets = [0, 16], sizes = [128, 1], strides = [1, 1]} : vector<128x18xf32> to vector<128x1xf32>
    %158 = vector.shape_cast %156 : vector<128x1xf32> to vector<128x1xf32>
    %159 = vector.broadcast %158 : vector<128x1xf32> to vector<128x32xf32>
    %160 = vector.shape_cast %157 : vector<128x1xf32> to vector<128x1xf32>
    %161 = vector.broadcast %160 : vector<128x1xf32> to vector<128x32xf32>
    %162 = arith.select %45, %159, %161 : vector<128x32xi1>, vector<128x32xf32>
    %163 = vector.extract_strided_slice %132 {offsets = [0, 64], sizes = [128, 32], strides = [1, 1]} : vector<128x128xf32> to vector<128x32xf32>
    %164 = arith.mulf %163, %162 : vector<128x32xf32>
    %165 = arith.addf %155, %164 : vector<128x32xf32>
    %166 = vector.extract_strided_slice %42 {offsets = [0, 8], sizes = [128, 1], strides = [1, 1]} : vector<128x18xf32> to vector<128x1xf32>
    %167 = vector.extract_strided_slice %42 {offsets = [0, 17], sizes = [128, 1], strides = [1, 1]} : vector<128x18xf32> to vector<128x1xf32>
    %168 = vector.shape_cast %166 : vector<128x1xf32> to vector<128x1xf32>
    %169 = vector.broadcast %168 : vector<128x1xf32> to vector<128x32xf32>
    %170 = vector.shape_cast %167 : vector<128x1xf32> to vector<128x1xf32>
    %171 = vector.broadcast %170 : vector<128x1xf32> to vector<128x32xf32>
    %172 = arith.select %45, %169, %171 : vector<128x32xi1>, vector<128x32xf32>
    %173 = vector.extract_strided_slice %132 {offsets = [0, 96], sizes = [128, 32], strides = [1, 1]} : vector<128x128xf32> to vector<128x32xf32>
    %174 = arith.mulf %173, %172 : vector<128x32xf32>
    %175 = arith.addf %165, %174 : vector<128x32xf32>
    %cst_63 = arith.constant 0.000000e+00 : f32
    %176 = vector.broadcast %cst_63 : f32 to vector<128x32xf32>
    %177 = arith.subf %176, %5 : vector<128x32xf32>
    %178 = math.exp %177 : vector<128x32xf32>
    %cst_64 = arith.constant 1.000000e+00 : f32
    %179 = vector.broadcast %cst_64 : f32 to vector<128x32xf32>
    %180 = arith.addf %179, %178 : vector<128x32xf32>
    %cst_65 = arith.constant 1.000000e+00 : f32
    %181 = vector.broadcast %cst_65 : f32 to vector<128x32xf32>
    %182 = arith.divf %181, %180 : vector<128x32xf32>
    %183 = arith.mulf %5, %182 : vector<128x32xf32>
    %184 = arith.mulf %175, %183 : vector<128x32xf32>
    %c0_66 = arith.constant 0 : index
    %c0_67 = arith.constant 0 : index
    %185 = vector.load %arg10[%c0_66, %c0_67] : memref<32x8xf32, #tpu.memory_space<vmem>>, vector<32x8xf32>
    %cst_68 = arith.constant dense<0.000000e+00> : vector<128x8xf32>
    %186 = tpu.matmul %184, %185, %cst_68 {dimension_numbers = #tpu.dot_dimension_numbers<[1], [0], [0], [1], [0, 0, 1, 1], [], []>} : vector<128x32xf32>, vector<32x8xf32>, vector<128x8xf32> -> vector<128x8xf32>
    %c0_69 = arith.constant 0 : index
    %c0_70 = arith.constant 0 : index
    %187 = vector.load %arg11[%c0_69, %c0_70] : memref<8x3xf32, #tpu.memory_space<vmem>>, vector<8x3xf32>
    %cst_71 = arith.constant dense<0.000000e+00> : vector<128x3xf32>
    %188 = tpu.matmul %186, %187, %cst_71 {dimension_numbers = #tpu.dot_dimension_numbers<[1], [0], [0], [1], [0, 0, 1, 1], [], []>} : vector<128x8xf32>, vector<8x3xf32>, vector<128x3xf32> -> vector<128x3xf32>
    %c0_72 = arith.constant 0 : index
    %c0_73 = arith.constant 0 : index
    %189 = vector.load %arg12[%c0_72, %c0_73] : memref<1x3xf32, #tpu.memory_space<vmem>>, vector<1x3xf32>
    %190 = vector.broadcast %189 : vector<1x3xf32> to vector<128x3xf32>
    %191 = arith.addf %188, %190 : vector<128x3xf32>
    %c0_74 = arith.constant 0 : index
    %c0_75 = arith.constant 0 : index
    %c0_76 = arith.constant 0 : index
    %192 = vector.load %arg13[%c0_74, %c0_75, %c0_76] : memref<1x128x3xf32, #tpu.memory_space<vmem>>, vector<1x128x3xf32>
    %193 = vector.shape_cast %192 : vector<1x128x3xf32> to vector<128x3xf32>
    %194 = vector.shape_cast %191 : vector<128x3xf32> to vector<1x128x3xf32>
    tpu.vector_store %arg13[%c0_74, %c0_75, %c0_76], %194 {strides = array<i32>} : memref<1x128x3xf32, #tpu.memory_space<vmem>>, vector<1x128x3xf32>,
    return
  }
  func.func @transform_0(%arg0: i32) -> (i32, i32, i32) {
    %c0_i32 = arith.constant 0 : i32
    %c0_i32_0 = arith.constant 0 : i32
    %c0_i32_1 = arith.constant 0 : i32
    return %arg0, %c0_i32, %c0_i32_0 : i32, i32, i32
  }
  func.func @transform_1(%arg0: i32) -> (i32, i32) {
    %c0_i32 = arith.constant 0 : i32
    %c0_i32_0 = arith.constant 0 : i32
    %c0_i32_1 = arith.constant 0 : i32
    return %c0_i32, %c0_i32_0 : i32, i32
  }
  func.func @transform_2(%arg0: i32) -> (i32, i32) {
    %c0_i32 = arith.constant 0 : i32
    %c0_i32_0 = arith.constant 0 : i32
    %c0_i32_1 = arith.constant 0 : i32
    return %c0_i32, %c0_i32_0 : i32, i32
  }
  func.func @transform_3(%arg0: i32) -> (i32, i32) {
    %c0_i32 = arith.constant 0 : i32
    %c0_i32_0 = arith.constant 0 : i32
    %c0_i32_1 = arith.constant 0 : i32
    return %c0_i32, %c0_i32_0 : i32, i32
  }
  func.func @transform_4(%arg0: i32) -> (i32, i32) {
    %c0_i32 = arith.constant 0 : i32
    %c0_i32_0 = arith.constant 0 : i32
    %c0_i32_1 = arith.constant 0 : i32
    return %c0_i32, %c0_i32_0 : i32, i32
  }
  func.func @transform_5(%arg0: i32) -> (i32, i32) {
    %c0_i32 = arith.constant 0 : i32
    %c0_i32_0 = arith.constant 0 : i32
    %c0_i32_1 = arith.constant 0 : i32
    return %c0_i32, %c0_i32_0 : i32, i32
  }
  func.func @transform_6(%arg0: i32) -> (i32, i32) {
    %c0_i32 = arith.constant 0 : i32
    %c0_i32_0 = arith.constant 0 : i32
    %c0_i32_1 = arith.constant 0 : i32
    return %c0_i32, %c0_i32_0 : i32, i32
  }
  func.func @transform_7(%arg0: i32) -> (i32, i32) {
    %c0_i32 = arith.constant 0 : i32
    %c0_i32_0 = arith.constant 0 : i32
    %c0_i32_1 = arith.constant 0 : i32
    return %c0_i32, %c0_i32_0 : i32, i32
  }
  func.func @transform_8(%arg0: i32) -> (i32, i32) {
    %c0_i32 = arith.constant 0 : i32
    %c0_i32_0 = arith.constant 0 : i32
    %c0_i32_1 = arith.constant 0 : i32
    return %c0_i32, %c0_i32_0 : i32, i32
  }
  func.func @transform_9(%arg0: i32) -> (i32, i32) {
    %c0_i32 = arith.constant 0 : i32
    %c0_i32_0 = arith.constant 0 : i32
    %c0_i32_1 = arith.constant 0 : i32
    return %c0_i32, %c0_i32_0 : i32, i32
  }
  func.func @transform_10(%arg0: i32) -> (i32, i32) {
    %c0_i32 = arith.constant 0 : i32
    %c0_i32_0 = arith.constant 0 : i32
    %c0_i32_1 = arith.constant 0 : i32
    return %c0_i32, %c0_i32_0 : i32, i32
  }
  func.func @transform_11(%arg0: i32) -> (i32, i32) {
    %c0_i32 = arith.constant 0 : i32
    %c0_i32_0 = arith.constant 0 : i32
    %c0_i32_1 = arith.constant 0 : i32
    return %c0_i32, %c0_i32_0 : i32, i32
  }
  func.func @transform_12(%arg0: i32) -> (i32, i32, i32) {
    %c0_i32 = arith.constant 0 : i32
    %c0_i32_0 = arith.constant 0 : i32
    %c0_i32_1 = arith.constant 0 : i32
    return %arg0, %c0_i32, %c0_i32_0 : i32, i32, i32
  }
}

</mosaic_0001>

<bundles_post_ra>
// kernel: segmentation_forward.1
= control target key start
LH: loop header
LB: loop body
LE: loop exit
PB: predicated region body
PF: predicated region fallthrough
CT: control target
= control target key end

     0   :  { %s5838_s21 = smov 0   ;;  %s8716_s0 = inlined_call_operand.vmem [shape: f32[2,128,16], index: 0, kind: input, shape index: {}]   ;;  %s8717_s1 = inlined_call_operand.vmem [shape: f32[16,64], index: 1, kind: input, shape index: {}]   ;;  %s8718_s2 = inlined_call_operand.vmem [shape: f32[4,32], index: 2, kind: input, shape index: {}]   ;;  %s8719_s3 = inlined_call_operand.vmem [shape: f32[1,32], index: 3, kind: input, shape index: {}]   ;;  %s8720_s4 = inlined_call_operand.vmem [shape: f32[32,18], index: 4, kind: input, shape index: {}]   ;;  %s8721_s5 = inlined_call_operand.vmem [shape: f32[1,32], index: 5, kind: input, shape index: {}]   ;;  %s8722_s6 = inlined_call_operand.vmem [shape: f32[1,32], index: 6, kind: input, shape index: {}]   ;;  %s8723_s7 = inlined_call_operand.vmem [shape: f32[4,32], index: 7, kind: input, shape index: {}]   ;;  %s8724_s8 = inlined_call_operand.vmem [shape: f32[1,32], index: 8, kind: input, shape index: {}]   ;;  %s8725_s9 = inlined_call_operand.vmem [shape: f32[32,8], index: 9, kind: input, shape index: {}]   ;;  %s8726_s10 = inlined_call_operand.vmem [shape: f32[8,3], index: 10, kind: input, shape index: {}]   ;;  %s8727_s11 = inlined_call_operand.vmem [shape: f32[1,3], index: 11, kind: input, shape index: {}]   ;;  %s8728_s12 = inlined_call_operand.vmem [shape: f32[2,128,3], index: 12, kind: output, shape index: {}]  }
   0x1 LB: > { %s4818_s22 = sadd.s32 4294967295, %s5741_s21   ;;  %p4822_p0 = scmp.ge.s32.totalorder %s5741_s21, 1  ;;  %s5741_s21 = sphi %s5838_s21, %s22_s21  }
   0x2   : > { %p362_p1 = scmp.lt.s32.totalorder %s5741_s21, 3 }
   0x4   : > { %p363_p2 = pnand %p4822_p0, %p362_p1 }
   0x6   : > { %366 = sbr.rel (%p363_p2) target bundleno = 2449 (0x991), region = 68 }
   0xd   : > { %v430_v0 = vld [vmem:[%s8717_s1] sm:$0xff]  ;;  %v431_v1 = vld [vmem:[%s8717_s1 + $0x8] sm:$0xff]  ;;  %p404_p3 = scmp.lt.s32.totalorder %s4818_s22, 1  ;;  %vm432_vm0 = vcmask 130048   ;;  %vm626_vm1 = vcmask 261120   ;;  %v5751_v15 = vmov 0.0  }
   0xe   : > { %v5102_v2 = vpack.c.bf16 %v431_v1, %v430_v0  ;;  %627 = vst.msk [vmem:[#allocation2] sm:$0xff] %vm626_vm1, %v5751_v15  ;;  %v976_v18 = vld [vmem:[%s8720_s4] sm:$0xff]  ;;  %v977_v19 = vld [vmem:[%s8720_s4 + $0x8] sm:$0xff]  ;;  %v978_v20 = vld [vmem:[%s8720_s4 + $0x10] sm:$0xff]  ;;  %v8738_v26 = vmov 9   ;;  %v8754_v27 = vmov 0  }
   0xf   : > { %s9101_s22 = smov (!%p404_p3, %s4818_s22), 1  ;;  %v979_v21 = vld [vmem:[%s8720_s4 + $0x18] sm:$0xff]  ;;  %v5106_v22 = vpack.c.bf16 %v977_v19, %v976_v18  ;;  %5169 = vset.pattern.permute.xlu1 %v8738_v26  ;;  %5168 = vset.pattern.permute.xlu0 %v8754_v27  ;;  %v5928_v32 = vld [vmem:[%s8718_s2] ss:$0 sm:$0xff]  ;;  %v5933_v33 = vld [vmem:[%s8718_s2 + $0x1] ss:$0 sm:$0xff] }
  0x10   : > { %5103 = vmatprep.subr.bf16.mxu0 %v5102_v2  ;;  %s4907_s27 = sshll.u32 %s9101_s22, 7  ;;  %v5110_v23 = vpack.c.bf16 %v979_v21, %v978_v20  ;;  %v5938_v34 = vld [vmem:[%s8718_s2 + $0x3] ss:$0 sm:$0xff]  ;;  %v5945_v36 = vld [vmem:[%s8719_s3] ss:$0 sm:$0xff]  ;;  %s5762_s25 = smov 32  }
  0x11   : > { %5105 = vmatpush3.bf16.msra.mxu0 %v5102_v2  ;;  %s5855_s30 = scalar_lea.vmem %s8716_s0, %s4907_s27  ;;  %s5860_s15 = scalar_lea.vmem %s8728_s12, %s4907_s27  ;;  %5107 = vmatprep.subr.bf16.mxu1 %v5106_v22  ;;  %v5950_v37 = vld [vmem:[%s8718_s2 + $0x2] ss:$0 sm:$0xff]  ;;  %vm1905_vm3 = vcmask 523520   ;;  %vm2279_vm4 = vcmask 785920   ;;  %vm2653_vm5 = vcmask 1048320  }
  0x12   : > { %v414_v3 = vld [vmem:[%s5855_s30] sm:$0xff]  ;;  %v415_v4 = vld [vmem:[%s5855_s30 + $0x8] sm:$0xff]  ;;  %v416_v5 = vld [vmem:[%s5855_s30 + $0x10] sm:$0xff]  ;;  %5109 = vmatpush3.bf16.msra.mxu1 %v5106_v22  ;;  %s5763_s26 = smov 64   ;;  %s5764_s27 = smov 96  }
  0x13   : > { %4988 = vmatprep.mubr.msk.f32.mxu0 %vm432_vm0, %v414_v3  ;;  %v417_v6 = vld [vmem:[%s5855_s30 + $0x18] sm:$0xff]  ;;  %v418_v7 = vld [vmem:[%s5855_s30 + $0x20] sm:$0xff]  ;;  %v419_v8 = vld [vmem:[%s5855_s30 + $0x28] sm:$0xff]  ;;  %5111 = vmatprep.subr.bf16.mxu1 %v5110_v23  ;;  %s7785_s16 = smov 0  }
  0x14   : > { %4989 = vmatmul.mubr.msk.f32.vlgmr.msra.gmra.mrb[0].mxu0 %vm432_vm0, %v415_v4  ;;  %v420_v9 = vld [vmem:[%s5855_s30 + $0x30] sm:$0xff]  ;;  %v421_v10 = vld [vmem:[%s5855_s30 + $0x38] sm:$0xff]  ;;  %v422_v11 = vld [vmem:[%s5855_s30 + $0x40] sm:$0xff] }
  0x15   : > { %4991 = vmatprep.mubr.msk.f32.mxu0 %vm432_vm0, %v416_v5  ;;  %v423_v12 = vld [vmem:[%s5855_s30 + $0x48] sm:$0xff]  ;;  %v424_v13 = vld [vmem:[%s5855_s30 + $0x50] sm:$0xff]  ;;  %v425_v14 = vld [vmem:[%s5855_s30 + $0x58] sm:$0xff] }
  0x16   : > { %v426_v16 = vld [vmem:[%s5855_s30 + $0x60] sm:$0xff]  ;;  %v427_v17 = vld [vmem:[%s5855_s30 + $0x68] sm:$0xff]  ;;  %5113 = vmatpush3.bf16.msra.mxu1 %v5110_v23  ;;  %v428_v24 = vld [vmem:[%s5855_s30 + $0x70] sm:$0xff] }
  0x17   : > { %v429_v25 = vld [vmem:[%s5855_s30 + $0x78] sm:$0xff] }
  0x18   : > { %4992 = vmatmul.mubr.msk.f32.gmra.mrb[2].mxu0 %vm432_vm0, %v417_v6 }
  0x19   : > { %4994 = vmatprep.mubr.msk.f32.mxu0 %vm432_vm0, %v418_v7 }
  0x1c   : > { %4995 = vmatmul.mubr.msk.f32.gmra.mrb[4].mxu0 %vm432_vm0, %v419_v8 }
  0x1d   : > { %4997 = vmatprep.mubr.msk.f32.mxu0 %vm432_vm0, %v420_v9 }
  0x20   : > { %4998 = vmatmul.mubr.msk.f32.gmra.mrb[6].mxu0 %vm432_vm0, %v421_v10 }
  0x21   : > { %5000 = vmatprep.mubr.msk.f32.mxu0 %vm432_vm0, %v422_v11 }
  0x24   : > { %5001 = vmatmul.mubr.msk.f32.gmra.mrb[8].mxu0 %vm432_vm0, %v423_v12 }
  0x25   : > { %5003 = vmatprep.mubr.msk.f32.mxu0 %vm432_vm0, %v424_v13 }
  0x28   : > { %5004 = vmatmul.mubr.msk.f32.gmra.mrb[10].mxu0 %vm432_vm0, %v425_v14 }
  0x29   : > { %5006 = vmatprep.mubr.msk.f32.mxu0 %vm432_vm0, %v426_v16 }
  0x2c   : > { %5007 = vmatmul.mubr.msk.f32.gmra.mrb[12].mxu0 %vm432_vm0, %v427_v17 }
  0x2d   : > { %5009 = vmatprep.mubr.msk.f32.mxu0 %vm432_vm0, %v428_v24 }
  0x30   : > { %5010 = vmatmul.mubr.msk.f32.gmra.mrb[14].mxu0 %vm432_vm0, %v429_v25 }
  0xe7   : > { %v5909_v28 = vpop.f32.mrb[0].mxu0 }
  0xe8   : > { %8862 = vst [vmem:[#allocation6_spill] sm:$0xff] %v5909_v28  ;;  %629 = vst.msk [vmem:[#allocation2 + $0x10] sm:$0xff] %vm626_vm1, %v5909_v28  ;;  %v5913_v29 = vpop.f32.mrb[1].mxu0 }
  0xe9   : > { %8863 = vst [vmem:[#allocation7_spill] sm:$0xff] %v5913_v29  ;;  %628 = vst.msk [vmem:[#allocation2 + $0x8] sm:$0xff] %vm626_vm1, %v5913_v29 }
  0xeb   : > { %v5917_v30 = vpop.f32.mrb[2].mxu0 }
  0xec   : > { %8864 = vst [vmem:[#allocation8_spill] sm:$0xff] %v5917_v30  ;;  %631 = vst.msk [vmem:[#allocation2 + $0x20] sm:$0xff] %vm626_vm1, %v5917_v30  ;;  %v5921_v31 = vpop.f32.mrb[3].mxu0  ;;  %v8916_v30 = vmov 0  }
  0xed   : > { %8865 = vst [vmem:[#allocation9_spill] sm:$0xff] %v5921_v31  ;;  %630 = vst.msk [vmem:[#allocation2 + $0x18] sm:$0xff] %vm626_vm1, %v5921_v31  ;;  %v8917_v31 = vmov 3  }
  0xef   : > { %v5940_v35 = vpop.f32.mrb[4].mxu0  ;;  %v813_v38 = vld [vmem:[#allocation2 + $0x10] sm:$0xff] }
  0xf0   : > { %8866 = vst [vmem:[#allocation10_spill] sm:$0xff] %v5940_v35  ;;  %633 = vst.msk [vmem:[#allocation2 + $0x30] sm:$0xff] %vm626_vm1, %v5940_v35  ;;  %v5954_v39 = vpop.f32.mrb[5].mxu0  ;;  %v653_v40 = vld [vmem:[#allocation2 + $0x5] sm:$0xff]  ;;  %v654_v45 = vld [vmem:[#allocation2 + $0xd] sm:$0xff]  ;;  %v833_v51 = vmul.f32 %v5938_v34, %v813_v38 }
  0xf1   : > { %8867 = vst [vmem:[#allocation11_spill] sm:$0xff] %v5954_v39  ;;  %v706_v41 = vld [vmem:[#allocation2 + $0x6] sm:$0xff]  ;;  %632 = vst.msk [vmem:[#allocation2 + $0x28] sm:$0xff] %vm626_vm1, %v5954_v39  ;;  %v673_v43 = vmul.f32 %v5928_v32, %v653_v40  ;;  %v707_v46 = vld [vmem:[#allocation2 + $0xe] sm:$0xff]  ;;  %v674_v47 = vmul.f32 %v5928_v32, %v654_v45 }
  0xf2   : > { %v759_v42 = vld [vmem:[#allocation2 + $0x7] sm:$0xff]  ;;  %v760_v48 = vld [vmem:[#allocation2 + $0xf] sm:$0xff]  ;;  %v726_v50 = vmul.f32 %v5933_v33, %v706_v41  ;;  %v727_v57 = vmul.f32 %v5933_v33, %v707_v46 }
  0xf3   : > { %v812_v44 = vld [vmem:[#allocation2 + $0x8] sm:$0xff]  ;;  %v689_v49 = vadd.f32 %v5945_v36, %v673_v43  ;;  %v815_v52 = vld [vmem:[#allocation2 + $0x20] sm:$0xff]  ;;  %v5963_v53 = vpop.f32.mrb[6].mxu0  ;;  %v779_v54 = vmul.f32 %v5950_v37, %v759_v42  ;;  %v690_v56 = vadd.f32 %v5945_v36, %v674_v47  ;;  %v780_v63 = vmul.f32 %v5950_v37, %v760_v48 }
  0xf4   : > { %8868 = vst [vmem:[#allocation12_spill] sm:$0xff] %v5963_v53  ;;  %v832_v55 = vmul.f32 %v5938_v34, %v812_v44  ;;  %v655_v58 = vld [vmem:[#allocation2 + $0x15] sm:$0xff]  ;;  %635 = vst.msk [vmem:[#allocation2 + $0x40] sm:$0xff] %vm626_vm1, %v5963_v53  ;;  %v5971_v61 = vpop.f32.mrb[7].mxu0  ;;  %v656_v2 = vld [vmem:[#allocation2 + $0x1d] sm:$0xff]  ;;  %v835_v4 = vmul.f32 %v5938_v34, %v815_v52 }
  0xf5   : > { %v708_v59 = vld [vmem:[#allocation2 + $0x16] sm:$0xff]  ;;  %8869 = vst [vmem:[#allocation13_spill] sm:$0xff] %v5971_v61  ;;  %v742_v62 = vadd.f32 %v726_v50, %v689_v49  ;;  %v675_v0 = vmul.f32 %v5928_v32, %v655_v58  ;;  %v709_v3 = vld [vmem:[#allocation2 + $0x1e] sm:$0xff]  ;;  %634 = vst.msk [vmem:[#allocation2 + $0x38] sm:$0xff] %vm626_vm1, %v5971_v61  ;;  %v743_v5 = vadd.f32 %v727_v57, %v690_v56 }
  0xf6   : > { %v761_v60 = vld [vmem:[#allocation2 + $0x17] sm:$0xff]  ;;  %v728_v6 = vmul.f32 %v5933_v33, %v708_v59  ;;  %v676_v7 = vmul.f32 %v5928_v32, %v656_v2  ;;  %v729_v8 = vmul.f32 %v5933_v33, %v709_v3  ;;  %v762_v9 = vld [vmem:[#allocation2 + $0x1f] sm:$0xff] }
  0xf7   : > { %v814_v1 = vld [vmem:[#allocation2 + $0x18] sm:$0xff]  ;;  %v795_v10 = vadd.f32 %v779_v54, %v742_v62  ;;  %v691_v11 = vadd.f32 %v5945_v36, %v675_v0  ;;  %v781_v12 = vmul.f32 %v5950_v37, %v761_v60  ;;  %v817_v14 = vld [vmem:[#allocation2 + $0x30] sm:$0xff]  ;;  %v5984_v15 = vpop.f32.mrb[8].mxu0  ;;  %v796_v16 = vadd.f32 %v780_v63, %v743_v5 }
  0xf8   : > { %v834_v13 = vmul.f32 %v5938_v34, %v814_v1  ;;  %8870 = vst [vmem:[#allocation14_spill] sm:$0xff] %v5984_v15  ;;  %v692_v17 = vadd.f32 %v5945_v36, %v676_v7  ;;  %v782_v18 = vmul.f32 %v5950_v37, %v762_v9  ;;  %v657_v19 = vld [vmem:[#allocation2 + $0x25] sm:$0xff]  ;;  %v5989_v22 = vmul.f32 %v5938_v34, %v817_v14  ;;  %v5993_v23 = vpop.f32.mrb[9].mxu0  ;;  %v658_v42 = vld [vmem:[#allocation2 + $0x2d] sm:$0xff] }
  0xf9   : > { %v710_v20 = vld [vmem:[#allocation2 + $0x26] sm:$0xff]  ;;  %637 = vst.msk [vmem:[#allocation2 + $0x50] sm:$0xff] %vm626_vm1, %v5984_v15  ;;  %8871 = vst [vmem:[#allocation15_spill] sm:$0xff] %v5993_v23  ;;  %v5995_v24 = vadd.f32 %v832_v55, %v795_v10  ;;  %v744_v25 = vadd.f32 %v728_v6, %v691_v11  ;;  %v677_v38 = vmul.f32 %v5928_v32, %v657_v19  ;;  %v711_v43 = vld [vmem:[#allocation2 + $0x2e] sm:$0xff]  ;;  %v8912_v15 = vmov 13  }
  0xfa   : > { %v763_v21 = vld [vmem:[#allocation2 + $0x27] sm:$0xff]  ;;  %v730_v40 = vmul.f32 %v5933_v33, %v710_v20  ;;  %636 = vst.msk [vmem:[#allocation2 + $0x48] sm:$0xff] %vm626_vm1, %v5993_v23  ;;  %v6001_v44 = vadd.f32 %v833_v51, %v796_v16  ;;  %v745_v45 = vadd.f32 %v729_v8, %v692_v17  ;;  %v764_v48 = vld [vmem:[#allocation2 + $0x2f] sm:$0xff]  ;;  %v678_v54 = vmul.f32 %v5928_v32, %v658_v42 }
  0xfb   : > { %v816_v41 = vld [vmem:[#allocation2 + $0x28] sm:$0xff]  ;;  %v783_v46 = vmul.f32 %v5950_v37, %v763_v21  ;;  %v864_v49 = vsub.f32 0.0, %v5995_v24  ;;  %v797_v50 = vadd.f32 %v781_v12, %v744_v25  ;;  %v693_v52 = vadd.f32 %v5945_v36, %v677_v38  ;;  %v6008_v55 = vpop.f32.mrb[10].mxu0  ;;  %v819_v38 = vld [vmem:[#allocation2 + $0x40] sm:$0xff] }
  0xfc   : > { %v836_v47 = vmul.f32 %v5938_v34, %v816_v41  ;;  %8872 = vst [vmem:[#allocation16_spill] sm:$0xff] %v6008_v55  ;;  %v865_v56 = vsub.f32 0.0, %v6001_v44  ;;  %v798_v57 = vadd.f32 %v782_v18, %v745_v45  ;;  %v731_v51 = vmul.f32 %v5933_v33, %v711_v43  ;;  %v659_v59 = vld [vmem:[#allocation2 + $0x35] sm:$0xff]  ;;  %639 = vst.msk [vmem:[#allocation2 + $0x60] sm:$0xff] %vm626_vm1, %v6008_v55  ;;  %v6015_v62 = vpop.f32.mrb[11].mxu0  ;;  %v713_v14 = vld [vmem:[#allocation2 + $0x3e] sm:$0xff] }
  0xfd   : > { %v784_v58 = vmul.f32 %v5950_v37, %v764_v48  ;;  %v712_v60 = vld [vmem:[#allocation2 + $0x36] sm:$0xff]  ;;  %8873 = vst [vmem:[#allocation17_spill] sm:$0xff] %v6015_v62  ;;  %v880_v63 = vmul.f32 1.442695, %v864_v49  ;;  %v6017_v0 = vadd.f32 %v834_v13, %v797_v50  ;;  %v746_v1 = vadd.f32 %v730_v40, %v693_v52  ;;  %638 = vst.msk [vmem:[#allocation2 + $0x58] sm:$0xff] %vm626_vm1, %v6015_v62  ;;  %v766_v18 = vld [vmem:[#allocation2 + $0x3f] sm:$0xff] }
  0xfe   : > { %v694_v2 = vadd.f32 %v5945_v36, %v678_v54  ;;  %v765_v3 = vld [vmem:[#allocation2 + $0x37] sm:$0xff]  ;;  %v882_v5 = vmul.f32 1.442695, %v865_v56  ;;  %v6022_v6 = vadd.f32 %v835_v4, %v798_v57  ;;  %v679_v7 = vmul.f32 %v5928_v32, %v659_v59 }
  0xff   : > { %v732_v8 = vmul.f32 %v5933_v33, %v712_v60  ;;  %v818_v9 = vld [vmem:[#allocation2 + $0x38] sm:$0xff]  ;;  %5329 = vpow2.f32 %v880_v63  ;;  %v866_v10 = vsub.f32 0.0, %v6017_v0  ;;  %v799_v11 = vadd.f32 %v783_v46, %v746_v1 }
 0x100   : > { %v747_v12 = vadd.f32 %v731_v51, %v694_v2  ;;  %v660_v13 = vld [vmem:[#allocation2 + $0x3d] sm:$0xff]  ;;  %5331 = vpow2.f32 %v882_v5  ;;  %v867_v16 = vsub.f32 0.0, %v6022_v6  ;;  %v695_v17 = vadd.f32 %v5945_v36, %v679_v7 }
 0x101   : > { %v785_v4 = vmul.f32 %v5950_v37, %v765_v3  ;;  %v884_v19 = vmul.f32 1.442695, %v866_v10  ;;  %v6030_v20 = vadd.f32 %v836_v47, %v799_v11  ;;  %v838_v25 = vmul.f32 %v5938_v34, %v818_v9  ;;  %v661_v45 = vld [vmem:[#allocation2 + $0x45] sm:$0xff]  ;;  %v662_v51 = vld [vmem:[#allocation2 + $0x4d] sm:$0xff] }
 0x102   : > { %v800_v21 = vadd.f32 %v784_v58, %v747_v12  ;;  %v886_v40 = vmul.f32 1.442695, %v867_v16  ;;  %v748_v41 = vadd.f32 %v732_v8, %v695_v17  ;;  %v680_v42 = vmul.f32 %v5928_v32, %v660_v13  ;;  %v714_v46 = vld [vmem:[#allocation2 + $0x46] sm:$0xff]  ;;  %v768_v1 = vld [vmem:[#allocation2 + $0x4f] sm:$0xff] }
 0x103   : > { %v733_v43 = vmul.f32 %v5933_v33, %v713_v14  ;;  %5333 = vpow2.f32 %v884_v19  ;;  %v868_v48 = vsub.f32 0.0, %v6030_v20  ;;  %v786_v47 = vmul.f32 %v5950_v37, %v766_v18  ;;  %v767_v50 = vld [vmem:[#allocation2 + $0x47] sm:$0xff]  ;;  %v821_v8 = vld [vmem:[#allocation2 + $0x50] sm:$0xff] }
 0x104   : > { %v6037_v49 = vadd.f32 %v5989_v22, %v800_v21  ;;  %v820_v52 = vld [vmem:[#allocation2 + $0x48] sm:$0xff]  ;;  %5335 = vpow2.f32 %v886_v40  ;;  %v801_v54 = vadd.f32 %v785_v4, %v748_v41  ;;  %v696_v56 = vadd.f32 %v5945_v36, %v680_v42  ;;  %v663_v12 = vld [vmem:[#allocation2 + $0x55] sm:$0xff] }
 0x105   : > { %v839_v57 = vmul.f32 %v5938_v34, %v819_v38  ;;  %v888_v58 = vmul.f32 1.442695, %v868_v48  ;;  %v681_v60 = vmul.f32 %v5928_v32, %v661_v45  ;;  %v734_v63 = vmul.f32 %v5933_v33, %v714_v46  ;;  %v715_v22 = vld [vmem:[#allocation2 + $0x4e] sm:$0xff]  ;;  %v716_v4 = vld [vmem:[#allocation2 + $0x56] sm:$0xff] }
 0x106   : > { %v869_v59 = vsub.f32 0.0, %v6037_v49  ;;  %v6045_v2 = vadd.f32 %v838_v25, %v801_v54  ;;  %v749_v3 = vadd.f32 %v733_v43, %v696_v56  ;;  %v787_v5 = vmul.f32 %v5950_v37, %v767_v50  ;;  %v769_v38 = vld [vmem:[#allocation2 + $0x57] sm:$0xff] }
 0x107   : > { %v840_v7 = vmul.f32 %v5938_v34, %v820_v52  ;;  %5337 = vpow2.f32 %v888_v58  ;;  %v697_v10 = vadd.f32 %v5945_v36, %v681_v60  ;;  %v682_v11 = vmul.f32 %v5928_v32, %v662_v51  ;;  %v822_v46 = vld [vmem:[#allocation2 + $0x58] sm:$0xff] }
 0x108   : > { %v890_v9 = vmul.f32 1.442695, %v869_v59  ;;  %v870_v13 = vsub.f32 0.0, %v6045_v2  ;;  %v802_v14 = vadd.f32 %v786_v47, %v749_v3  ;;  %v735_v16 = vmul.f32 %v5933_v33, %v715_v22 }
 0x109   : > { %v788_v17 = vmul.f32 %v5950_v37, %v768_v1  ;;  %v5330_v18 = vpop.eup %5329  ;;  %v750_v19 = vadd.f32 %v734_v63, %v697_v10  ;;  %v698_v21 = vadd.f32 %v5945_v36, %v682_v11  ;;  %v841_v25 = vmul.f32 %v5938_v34, %v821_v8 }
 0x10a   : > { %5339 = vpow2.f32 %v890_v9  ;;  %v5332_v40 = vpop.eup %5331  ;;  %v912_v41 = vadd.f32 1.0, %v5330_v18  ;;  %v892_v42 = vmul.f32 1.442695, %v870_v13  ;;  %v6056_v43 = vadd.f32 %v839_v57, %v802_v14 }
 0x10b   : > { %v683_v45 = vmul.f32 %v5928_v32, %v663_v12  ;;  %v913_v48 = vadd.f32 1.0, %v5332_v40  ;;  %v803_v47 = vadd.f32 %v787_v5, %v750_v19  ;;  %v751_v50 = vadd.f32 %v735_v16, %v698_v21 }
 0x10c   : > { %v736_v52 = vmul.f32 %v5933_v33, %v716_v4  ;;  %5341 = vrcp.f32 %v912_v41  ;;  %v871_v54 = vsub.f32 0.0, %v6056_v43  ;;  %v789_v51 = vmul.f32 %v5950_v37, %v769_v38 }
 0x10d   : > { %v699_v56 = vadd.f32 %v5945_v36, %v683_v45  ;;  %v5334_v58 = vpop.eup %5333  ;;  %5343 = vrcp.f32 %v913_v48  ;;  %v6063_v59 = vadd.f32 %v840_v7, %v803_v47  ;;  %v804_v57 = vadd.f32 %v788_v17, %v751_v50 }
 0x10e   : > { %v842_v60 = vmul.f32 %v5938_v34, %v822_v46  ;;  %v5336_v63 = vpop.eup %5335  ;;  %v914_v22 = vadd.f32 1.0, %v5334_v58  ;;  %5345 = vpow2.f32 %v892_v42  ;;  %v894_v1 = vmul.f32 1.442695, %v871_v54 }
 0x10f   : > { %v752_v3 = vadd.f32 %v736_v52, %v699_v56  ;;  %v915_v5 = vadd.f32 1.0, %v5336_v63  ;;  %v872_v8 = vsub.f32 0.0, %v6063_v59  ;;  %v6067_v9 = vadd.f32 %v841_v25, %v804_v57 }
 0x110   : > { %5347 = vrcp.f32 %v914_v22  ;;  %v8913_v23 = vmov 2  }
 0x111   : > { %v805_v10 = vadd.f32 %v789_v51, %v752_v3  ;;  %v5338_v11 = vpop.eup %5337  ;;  %5349 = vrcp.f32 %v915_v5  ;;  %v896_v12 = vmul.f32 1.442695, %v872_v8  ;;  %v873_v7 = vsub.f32 0.0, %v6067_v9 }
 0x112   : > { %v916_v13 = vadd.f32 1.0, %v5338_v11  ;;  %5351 = vpow2.f32 %v894_v1 }
 0x113   : > { %v858_v14 = vadd.f32 %v842_v60, %v805_v10  ;;  %5353 = vpow2.f32 %v896_v12  ;;  %v898_v17 = vmul.f32 1.442695, %v873_v7  ;;  %v717_v12 = vld [vmem:[#allocation2 + $0x5e] sm:$0xff] }
 0x114   : > { %v5340_v16 = vpop.eup %5339  ;;  %5355 = vrcp.f32 %v916_v13  ;;  %v737_v13 = vmul.f32 %v5933_v33, %v717_v12 }
 0x115   : > { %v917_v4 = vadd.f32 1.0, %v5340_v16  ;;  %v874_v18 = vsub.f32 0.0, %v858_v14  ;;  %5357 = vpow2.f32 %v898_v17 }
 0x116   : > { %v5342_v19 = vpop.eup %5341 }
 0x117   : > { %5359 = vrcp.f32 %v917_v4  ;;  %v900_v21 = vmul.f32 1.442695, %v874_v18  ;;  %v5344_v25 = vpop.eup %5343  ;;  %v6071_v38 = vmul.f32 %v5342_v19, %v5995_v24  ;;  %v823_v4 = vld [vmem:[#allocation2 + $0x60] sm:$0xff] }
 0x118   : > { %v5346_v40 = vpop.eup %5345  ;;  %v6074_v41 = vmul.f32 %v5344_v25, %v6001_v44 }
 0x119   : > { %8874 = vst [vmem:[#allocation18_spill] sm:$0xff] %v6071_v38  ;;  %5361 = vpow2.f32 %v900_v21  ;;  %5020 = vmatprep.mubr.msk.f32.mxu1 %vm626_vm1, %v6071_v38  ;;  %v918_v42 = vadd.f32 1.0, %v5346_v40  ;;  %v843_v21 = vmul.f32 %v5938_v34, %v823_v4 }
 0x11a   : > { %8875 = vst [vmem:[#allocation19_spill] sm:$0xff] %v6074_v41  ;;  %v5348_v45 = vpop.eup %5347  ;;  %5021 = vmatmul.mubr.msk.f32.vlgmr.msra.gmra.mrb[0].mxu1 %vm626_vm1, %v6074_v41 }
 0x11b   : > { %v5350_v46 = vpop.eup %5349  ;;  %v6081_v48 = vmul.f32 %v5348_v45, %v6017_v0  ;;  %5363 = vrcp.f32 %v918_v42 }
 0x11c   : > { %v5352_v24 = vpop.eup %5351  ;;  %v6084_v47 = vmul.f32 %v5350_v46, %v6022_v6 }
 0x11d   : > { %8876 = vst [vmem:[#allocation20_spill] sm:$0xff] %v6081_v48  ;;  %v5354_v44 = vpop.eup %5353  ;;  %5023 = vmatprep.mubr.msk.f32.mxu1 %vm626_vm1, %v6081_v48  ;;  %v919_v50 = vadd.f32 1.0, %v5352_v24 }
 0x11e   : > { %8877 = vst [vmem:[#allocation21_spill] sm:$0xff] %v6084_v47  ;;  %v5356_v52 = vpop.eup %5355  ;;  %5024 = vmatmul.mubr.msk.f32.gmra.mrb[2].mxu1 %vm626_vm1, %v6084_v47  ;;  %v920_v54 = vadd.f32 1.0, %v5354_v44 }
 0x11f   : > { %v5358_v56 = vpop.eup %5357  ;;  %v6091_v51 = vmul.f32 %v5356_v52, %v6030_v20  ;;  %5365 = vrcp.f32 %v919_v50 }
 0x120   : > { %5367 = vrcp.f32 %v920_v54  ;;  %v921_v58 = vadd.f32 1.0, %v5358_v56 }
 0x121   : > { %8878 = vst [vmem:[#allocation22_spill] sm:$0xff] %v6091_v51  ;;  %v5360_v0 = vpop.eup %5359  ;;  %5026 = vmatprep.mubr.msk.f32.mxu1 %vm626_vm1, %v6091_v51 }
 0x122   : > { %v6096_v6 = vmul.f32 %v5360_v0, %v6037_v49  ;;  %5369 = vrcp.f32 %v921_v58 }
 0x123   : > { %v5362_v57 = vpop.eup %5361 }
 0x124   : > { %8879 = vst [vmem:[#allocation23_spill] sm:$0xff] %v6096_v6  ;;  %5027 = vmatmul.mubr.msk.f32.gmra.mrb[4].mxu1 %vm626_vm1, %v6096_v6  ;;  %v922_v60 = vadd.f32 1.0, %v5362_v57 }
 0x125   : > { %v5364_v63 = vpop.eup %5363 }
 0x126   : > { %5371 = vrcp.f32 %v922_v60  ;;  %v6101_v20 = vmul.f32 %v5364_v63, %v6045_v2 }
 0x128   : > { %8880 = vst [vmem:[#allocation24_spill] sm:$0xff] %v6101_v20  ;;  %5029 = vmatprep.mubr.msk.f32.mxu1 %vm626_vm1, %v6101_v20 }
 0x129   : > { %v5366_v22 = vpop.eup %5365 }
 0x12a   : > { %v5368_v1 = vpop.eup %5367  ;;  %v6106_v3 = vmul.f32 %v5366_v22, %v6056_v43  ;;  %v6124_v43 = vpop.f32.mrb[12].mxu0 }
 0x12b   : > { %v6109_v49 = vmul.f32 %v5368_v1, %v6063_v59  ;;  %8885 = vst [vmem:[#allocation29_spill] sm:$0xff] %v6124_v43  ;;  %641 = vst.msk [vmem:[#allocation2 + $0x70] sm:$0xff] %vm626_vm1, %v6124_v43  ;;  %v6128_v59 = vpop.f32.mrb[13].mxu0  ;;  %v8909_v43 = vmov 1  }
 0x12c   : > { %8881 = vst [vmem:[#allocation25_spill] sm:$0xff] %v6106_v3  ;;  %v5370_v5 = vpop.eup %5369  ;;  %5030 = vmatmul.mubr.msk.f32.gmra.mrb[6].mxu1 %vm626_vm1, %v6106_v3  ;;  %8886 = vst [vmem:[#allocation30_spill] sm:$0xff] %v6128_v59 }
 0x12d   : > { %8882 = vst [vmem:[#allocation26_spill] sm:$0xff] %v6109_v49  ;;  %5032 = vmatprep.mubr.msk.f32.mxu1 %vm626_vm1, %v6109_v49  ;;  %v6116_v2 = vmul.f32 %v5370_v5, %v6067_v9  ;;  %640 = vst.msk [vmem:[#allocation2 + $0x68] sm:$0xff] %vm626_vm1, %v6128_v59  ;;  %v664_v9 = vld [vmem:[#allocation2 + $0x5d] sm:$0xff] }
 0x12e   : > { %v684_v11 = vmul.f32 %v5928_v32, %v664_v9 }
 0x12f   : > { %8883 = vst [vmem:[#allocation27_spill] sm:$0xff] %v6116_v2 }
 0x130   : > { %v5372_v8 = vpop.eup %5371  ;;  %5033 = vmatmul.mubr.msk.f32.gmra.mrb[8].mxu1 %vm626_vm1, %v6116_v2  ;;  %v700_v7 = vadd.f32 %v5945_v36, %v684_v11 }
 0x131   : > { %v6120_v10 = vmul.f32 %v5372_v8, %v858_v14  ;;  %v770_v14 = vld [vmem:[#allocation2 + $0x5f] sm:$0xff] }
 0x132   : > { %v753_v16 = vadd.f32 %v737_v13, %v700_v7  ;;  %v790_v17 = vmul.f32 %v5950_v37, %v770_v14  ;;  %v6146_v7 = vpop.f32.mrb[14].mxu0 }
 0x133   : > { %8884 = vst [vmem:[#allocation28_spill] sm:$0xff] %v6120_v10  ;;  %5035 = vmatprep.mubr.msk.f32.mxu1 %vm626_vm1, %v6120_v10  ;;  %8888 = vst [vmem:[#allocation32_spill] sm:$0xff] %v6146_v7  ;;  %v6152_v14 = vpop.f32.mrb[15].mxu0 }
 0x134   : > { %v665_v18 = vld [vmem:[#allocation2 + $0x65] sm:$0xff]  ;;  %v806_v19 = vadd.f32 %v790_v17, %v753_v16  ;;  %643 = vst.msk [vmem:[#allocation2 + $0x80] sm:$0xff] %vm626_vm1, %v6146_v7  ;;  %8890 = vst [vmem:[#allocation34_spill] sm:$0xff] %v6152_v14  ;;  %v666_v16 = vld [vmem:[#allocation2 + $0x6d] sm:$0xff] }
 0x135   : > { %v685_v25 = vmul.f32 %v5928_v32, %v665_v18  ;;  %v718_v40 = vld [vmem:[#allocation2 + $0x66] sm:$0xff]  ;;  %642 = vst.msk [vmem:[#allocation2 + $0x78] sm:$0xff] %vm626_vm1, %v6152_v14  ;;  %v686_v17 = vmul.f32 %v5928_v32, %v666_v16  ;;  %v719_v4 = vld [vmem:[#allocation2 + $0x6e] sm:$0xff]  ;;  %v8908_v14 = vmov 12  }
 0x136   : > { %v859_v42 = vadd.f32 %v843_v21, %v806_v19  ;;  %v738_v46 = vmul.f32 %v5933_v33, %v718_v40  ;;  %v771_v24 = vld [vmem:[#allocation2 + $0x67] sm:$0xff]  ;;  %v739_v19 = vmul.f32 %v5933_v33, %v719_v4  ;;  %v772_v21 = vld [vmem:[#allocation2 + $0x6f] sm:$0xff] }
 0x137   : > { %v701_v45 = vadd.f32 %v5945_v36, %v685_v25  ;;  %v791_v52 = vmul.f32 %v5950_v37, %v771_v24  ;;  %v824_v54 = vld [vmem:[#allocation2 + $0x68] sm:$0xff]  ;;  %v702_v18 = vadd.f32 %v5945_v36, %v686_v17  ;;  %v792_v40 = vmul.f32 %v5950_v37, %v772_v21 }
 0x138   : > { %v875_v44 = vsub.f32 0.0, %v859_v42  ;;  %v844_v58 = vmul.f32 %v5938_v34, %v824_v54 }
 0x139   : > { %v754_v50 = vadd.f32 %v738_v46, %v701_v45  ;;  %v755_v25 = vadd.f32 %v739_v19, %v702_v18 }
 0x13a   : > { %v902_v56 = vmul.f32 1.442695, %v875_v44 }
 0x13b   : > { %v807_v0 = vadd.f32 %v791_v52, %v754_v50  ;;  %v808_v46 = vadd.f32 %v792_v40, %v755_v25 }
 0x13c   : > { %5373 = vpow2.f32 %v902_v56  ;;  %v667_v45 = vld [vmem:[#allocation2 + $0x75] sm:$0xff] }
 0x13d   : > { %v860_v57 = vadd.f32 %v844_v58, %v807_v0  ;;  %v687_v44 = vmul.f32 %v5928_v32, %v667_v45  ;;  %v720_v50 = vld [vmem:[#allocation2 + $0x76] sm:$0xff] }
 0x13e   : > { %v740_v56 = vmul.f32 %v5933_v33, %v720_v50  ;;  %v773_v0 = vld [vmem:[#allocation2 + $0x77] sm:$0xff]  ;;  %v774_v50 = vld [vmem:[#allocation2 + $0x7f] sm:$0xff] }
 0x13f   : > { %v876_v60 = vsub.f32 0.0, %v860_v57  ;;  %v703_v54 = vadd.f32 %v5945_v36, %v687_v44 }
 0x141   : > { %v904_v63 = vmul.f32 1.442695, %v876_v60  ;;  %v793_v60 = vmul.f32 %v5950_v37, %v773_v0 }
 0x143   : > { %5375 = vpow2.f32 %v904_v63  ;;  %v826_v63 = vld [vmem:[#allocation2 + $0x78] sm:$0xff] }
 0x146   : > { %v5374_v22 = vpop.eup %5373 }
 0x147   : > { %v923_v1 = vadd.f32 1.0, %v5374_v22 }
 0x149   : > { %5377 = vrcp.f32 %v923_v1 }
 0x14d   : > { %v5376_v5 = vpop.eup %5375 }
 0x14e   : > { %v924_v8 = vadd.f32 1.0, %v5376_v5  ;;  %v846_v5 = vmul.f32 %v5938_v34, %v826_v63 }
 0x150   : > { %5379 = vrcp.f32 %v924_v8 }
 0x153   : > { %v5378_v9 = vpop.eup %5377 }
 0x154   : > { %v6142_v11 = vmul.f32 %v5378_v9, %v859_v42  ;;  %v825_v42 = vld [vmem:[#allocation2 + $0x70] sm:$0xff] }
 0x155   : > { %v845_v24 = vmul.f32 %v5938_v34, %v825_v42  ;;  %v668_v42 = vld [vmem:[#allocation2 + $0x7d] sm:$0xff] }
 0x156   : > { %8887 = vst [vmem:[#allocation31_spill] sm:$0xff] %v6142_v11  ;;  %5036 = vmatmul.mubr.msk.f32.gmra.mrb[10].mxu1 %vm626_vm1, %v6142_v11  ;;  %v688_v45 = vmul.f32 %v5928_v32, %v668_v42 }
 0x157   : > { %v861_v52 = vadd.f32 %v845_v24, %v808_v46  ;;  %v721_v46 = vld [vmem:[#allocation2 + $0x7e] sm:$0xff] }
 0x158   : > { %v704_v24 = vadd.f32 %v5945_v36, %v688_v45  ;;  %v741_v44 = vmul.f32 %v5933_v33, %v721_v46  ;;  %v8744_v45 = vmov 13   ;;  %v8734_v46 = vmov 4  }
 0x159   : > { %v877_v58 = vsub.f32 0.0, %v861_v52 }
 0x15a   : > { %v5380_v12 = vpop.eup %5379 }
 0x15b   : > { %v6148_v13 = vmul.f32 %v5380_v12, %v860_v57  ;;  %v756_v57 = vadd.f32 %v740_v56, %v703_v54  ;;  %v906_v22 = vmul.f32 1.442695, %v877_v58  ;;  %v794_v54 = vmul.f32 %v5950_v37, %v774_v50  ;;  %v827_v56 = vld [vmem:[#allocation2 + $0x80] sm:$0xff] }
 0x15c   : > { %v847_v58 = vmul.f32 %v5938_v34, %v827_v56  ;;  %v8742_v37 = vmov 10  }
 0x15d   : > { %8889 = vst [vmem:[#allocation33_spill] sm:$0xff] %v6148_v13  ;;  %5038 = vmatprep.mubr.msk.f32.mxu1 %vm626_vm1, %v6148_v13  ;;  %v809_v1 = vadd.f32 %v793_v60, %v756_v57  ;;  %5381 = vpow2.f32 %v906_v22 }
 0x15f   : > { %v862_v8 = vadd.f32 %v846_v5, %v809_v1 }
 0x161   : > { %v878_v9 = vsub.f32 0.0, %v862_v8 }
 0x163   : > { %v908_v12 = vmul.f32 1.442695, %v878_v9 }
 0x165   : > { %5383 = vpow2.f32 %v908_v12 }
 0x167   : > { %v5382_v16 = vpop.eup %5381 }
 0x168   : > { %v925_v17 = vadd.f32 1.0, %v5382_v16  ;;  %v8752_v16 = vmov 11  }
 0x16a   : > { %5385 = vrcp.f32 %v925_v17  ;;  %v8732_v17 = vmov 2  }
 0x16f   : > { %v5384_v4 = vpop.eup %5383 }
 0x170   : > { %v926_v18 = vadd.f32 1.0, %v5384_v4 }
 0x172   : > { %5387 = vrcp.f32 %v926_v18  ;;  %v8740_v18 = vmov 12  }
 0x174   : > { %v5386_v19 = vpop.eup %5385 }
 0x175   : > { %v6168_v21 = vmul.f32 %v5386_v19, %v861_v52  ;;  %v757_v52 = vadd.f32 %v741_v44, %v704_v24  ;;  %v8736_v19 = vmov 3  }
 0x177   : > { %8891 = vst [vmem:[#allocation35_spill] sm:$0xff] %v6168_v21  ;;  %5039 = vmatmul.mubr.msk.f32.gmra.mrb[12].mxu1 %vm626_vm1, %v6168_v21  ;;  %v810_v0 = vadd.f32 %v794_v54, %v757_v52  ;;  %v8729_v54 = vlaneseq }
 0x179   : > { %v863_v57 = vadd.f32 %v847_v58, %v810_v0  ;;  %v6308_v56 = vand.u32 127, %v8729_v54  ;;  %v6318_v0 = vld [vmem:[%s8721_s5] ss:$0 sm:$0xff] }
 0x17b   : > { %v879_v60 = vsub.f32 0.0, %v863_v57  ;;  %vm1175_vm2 = vcmp.lt.s32.totalorder %v6308_v56, 16 }
 0x17c   : > { %v5388_v25 = vpop.eup %5387 }
 0x17d   : > { %v6172_v40 = vmul.f32 %v5388_v25, %v862_v8  ;;  %v910_v63 = vmul.f32 1.442695, %v879_v60  ;;  %v8730_v8 = vmov 1   ;;  %v6323_v60 = vld [vmem:[%s8722_s6] ss:$0 sm:$0xff] }
 0x17f   : > { %8892 = vst [vmem:[#allocation36_spill] sm:$0xff] %v6172_v40  ;;  %5041 = vmatprep.mubr.msk.f32.mxu1 %vm626_vm1, %v6172_v40  ;;  %5389 = vpow2.f32 %v910_v63 }
 0x189   : > { %v5390_v22 = vpop.eup %5389 }
 0x18a   : > { %v927_v1 = vadd.f32 1.0, %v5390_v22 }
 0x18c   : > { %5391 = vrcp.f32 %v927_v1 }
 0x196   : > { %v5392_v32 = vpop.eup %5391 }
 0x197   : > { %v6181_v5 = vmul.f32 %v5392_v32, %v863_v57 }
 0x199   : > { %8893 = vst [vmem:[#allocation37_spill] sm:$0xff] %v6181_v5  ;;  %5042 = vmatmul.mubr.msk.f32.gmra.mrb[14].mxu1 %vm626_vm1, %v6181_v5 }
 0x1ed   : > { %v6185_v33 = vpop.f32.mrb[0].mxu1 }
 0x1ee   : > { %8894 = vst [vmem:[#allocation38_spill] sm:$0xff] %v6185_v33  ;;  %1269 = vperm.xlu1 %5169, %v6185_v33   ;;  %1191 = vperm.xlu0 %5168, %v6185_v33   ;;  %v6189_v34 = vpop.f32.mrb[1].mxu1 }
 0x1ef   : > { %8895 = vst [vmem:[#allocation39_spill] sm:$0xff] %v6189_v34 }
 0x1f1   : > { %v6191_v36 = vpop.f32.mrb[2].mxu1 }
 0x1f2   : > { %8896 = vst [vmem:[#allocation40_spill] sm:$0xff] %v6191_v36  ;;  %5171 = vset.pattern.permute.xlu1 %v8742_v37  ;;  %5170 = vset.pattern.permute.xlu0 %v8730_v8  ;;  %v6195_v9 = vpop.f32.mrb[3].mxu1 }
 0x1f3   : > { %8897 = vst [vmem:[#allocation41_spill] sm:$0xff] %v6195_v9  ;;  %1681 = vperm.xlu1 %5171, %v6185_v33   ;;  %1617 = vperm.xlu0 %5170, %v6185_v33  }
 0x1f7   : > { %v6199_v12 = vpop.f32.mrb[4].mxu1  ;;  %5173 = vset.pattern.permute.xlu1 %v8752_v16  ;;  %5172 = vset.pattern.permute.xlu0 %v8732_v17 }
 0x1f8   : > { %8898 = vst [vmem:[#allocation42_spill] sm:$0xff] %v6199_v12  ;;  %v6203_v4 = vpop.f32.mrb[5].mxu1  ;;  %1991 = vperm.xlu1 %5173, %v6185_v33   ;;  %1927 = vperm.xlu0 %5172, %v6185_v33  }
 0x1f9   : > { %8899 = vst [vmem:[#allocation43_spill] sm:$0xff] %v6203_v4 }
 0x1fc   : > { %5175 = vset.pattern.permute.xlu1 %v8740_v18  ;;  %5174 = vset.pattern.permute.xlu0 %v8736_v19 }
 0x1fd   : > { %2365 = vperm.xlu1 %5175, %v6185_v33   ;;  %2301 = vperm.xlu0 %5174, %v6185_v33  }
 0x1ff   : > { %v6211_v25 = vpop.f32.mrb[6].mxu1 }
 0x200   : > { %8900 = vst [vmem:[#allocation44_spill] sm:$0xff] %v6211_v25  ;;  %v6213_v42 = vpop.f32.mrb[7].mxu1 }
 0x201   : > { %8901 = vst [vmem:[#allocation45_spill] sm:$0xff] %v6213_v42  ;;  %5177 = vset.pattern.permute.xlu1 %v8744_v45  ;;  %5176 = vset.pattern.permute.xlu0 %v8734_v46 }
 0x202   : > { %2739 = vperm.xlu1 %5177, %v6185_v33   ;;  %2675 = vperm.xlu0 %5176, %v6185_v33  }
 0x203   : > { %v6245_v24 = vpop.f32.mrb[8].mxu1 }
 0x204   : > { %8902 = vst [vmem:[#allocation46_spill] sm:$0xff] %v6245_v24  ;;  %v6249_v44 = vpop.f32.mrb[9].mxu1 }
 0x205   : > { %8903 = vst [vmem:[#allocation47_spill] sm:$0xff] %v6249_v44 }
 0x206   : > { %5180 = vset.pattern.permute.xlu1 %v8730_v8  ;;  %5178 = vset.pattern.permute.xlu0 %v8754_v27 }
 0x207   : > { %1613 = vperm.xlu1 %5180, %v6189_v34   ;;  %1186 = vperm.xlu0 %5178, %v6189_v34  }
 0x20b   : > { %5182 = vset.pattern.permute.xlu1 %v8732_v17  ;;  %5179 = vset.pattern.permute.xlu0 %v8738_v26 }
 0x20c   : > { %1923 = vperm.xlu1 %5182, %v6189_v34   ;;  %1265 = vperm.xlu0 %5179, %v6189_v34  }
 0x210   : > { %5184 = vset.pattern.permute.xlu1 %v8736_v19  ;;  %5181 = vset.pattern.permute.xlu0 %v8742_v37 }
 0x211   : > { %2297 = vperm.xlu1 %5184, %v6189_v34   ;;  %1677 = vperm.xlu0 %5181, %v6189_v34  }
 0x215   : > { %5186 = vset.pattern.permute.xlu1 %v8734_v46  ;;  %5183 = vset.pattern.permute.xlu0 %v8752_v16 }
 0x216   : > { %2671 = vperm.xlu1 %5186, %v6189_v34   ;;  %1987 = vperm.xlu0 %5183, %v6189_v34  }
 0x21a   : > { %5188 = vset.pattern.permute.xlu1 %v8754_v27  ;;  %5185 = vset.pattern.permute.xlu0 %v8740_v18 }
 0x21b   : > { %2361 = vperm.xlu0 %5185, %v6189_v34   ;;  %1201 = vperm.xlu1 %5188, %v6191_v36  }
 0x21f   : > { %5187 = vset.pattern.permute.xlu0 %v8744_v45  ;;  %5190 = vset.pattern.permute.xlu1 %v8730_v8 }
 0x220   : > { %2735 = vperm.xlu0 %5187, %v6189_v34   ;;  %1625 = vperm.xlu1 %5190, %v6191_v36  }
 0x224   : > { %5189 = vset.pattern.permute.xlu0 %v8738_v26  ;;  %5192 = vset.pattern.permute.xlu1 %v8732_v17 }
 0x225   : > { %1277 = vperm.xlu0 %5189, %v6191_v36   ;;  %1935 = vperm.xlu1 %5192, %v6191_v36  }
 0x229   : > { %5191 = vset.pattern.permute.xlu0 %v8742_v37  ;;  %5194 = vset.pattern.permute.xlu1 %v8736_v19  ;;  %v6291_v50 = vpop.f32.mrb[10].mxu1 }
 0x22a   : > { %1689 = vperm.xlu0 %5191, %v6191_v36   ;;  %2309 = vperm.xlu1 %5194, %v6191_v36   ;;  %8904 = vst [vmem:[#allocation48_spill] sm:$0xff] %v6291_v50  ;;  %v6295_v52 = vpop.f32.mrb[11].mxu1 }
 0x22b   : > { %8905 = vst [vmem:[#allocation49_spill] sm:$0xff] %v6295_v52 }
 0x22e   : > { %5193 = vset.pattern.permute.xlu0 %v8752_v16  ;;  %5196 = vset.pattern.permute.xlu1 %v8734_v46 }
 0x22f   : > { %1999 = vperm.xlu0 %5193, %v6191_v36   ;;  %2683 = vperm.xlu1 %5196, %v6191_v36  }
 0x233   : > { %5195 = vset.pattern.permute.xlu0 %v8740_v18  ;;  %5198 = vset.pattern.permute.xlu1 %v8754_v27 }
 0x234   : > { %2373 = vperm.xlu0 %5195, %v6191_v36   ;;  %1196 = vperm.xlu1 %5198, %v6195_v9  }
 0x238   : > { %5197 = vset.pattern.permute.xlu0 %v8744_v45  ;;  %5199 = vset.pattern.permute.xlu1 %v8738_v26 }
 0x239   : > { %2747 = vperm.xlu0 %5197, %v6191_v36   ;;  %1273 = vperm.xlu1 %5199, %v6195_v9   ;;  %v8922_v36 = vmov 10  }
 0x23d   : > { %5209 = vset.pattern.permute.xlu0 %v8738_v26  ;;  %5200 = vset.pattern.permute.xlu1 %v8730_v8 }
 0x23e   : > { %1621 = vperm.xlu1 %5200, %v6195_v9   ;;  %1285 = vperm.xlu0 %5209, %v6199_v12  }
 0x242   : > { %5201 = vset.pattern.permute.xlu1 %v8742_v37  ;;  %5211 = vset.pattern.permute.xlu0 %v8742_v37 }
 0x243   : > { %1685 = vperm.xlu1 %5201, %v6195_v9   ;;  %1697 = vperm.xlu0 %5211, %v6199_v12  }
 0x247   : > { %5202 = vset.pattern.permute.xlu1 %v8732_v17  ;;  %5213 = vset.pattern.permute.xlu0 %v8752_v16 }
 0x248   : > { %1931 = vperm.xlu1 %5202, %v6195_v9   ;;  %2007 = vperm.xlu0 %5213, %v6199_v12  }
 0x24c   : > { %5203 = vset.pattern.permute.xlu1 %v8752_v16  ;;  %5215 = vset.pattern.permute.xlu0 %v8740_v18 }
 0x24d   : > { %1995 = vperm.xlu1 %5203, %v6195_v9   ;;  %2381 = vperm.xlu0 %5215, %v6199_v12  }
 0x251   : > { %5204 = vset.pattern.permute.xlu1 %v8736_v19  ;;  %5217 = vset.pattern.permute.xlu0 %v8744_v45 }
 0x252   : > { %2305 = vperm.xlu1 %5204, %v6195_v9   ;;  %2755 = vperm.xlu0 %5217, %v6199_v12  }
 0x256   : > { %5205 = vset.pattern.permute.xlu1 %v8740_v18  ;;  %5218 = vset.pattern.permute.xlu0 %v8754_v27 }
 0x257   : > { %2369 = vperm.xlu1 %5205, %v6195_v9   ;;  %1206 = vperm.xlu0 %5218, %v6203_v4  }
 0x25b   : > { %5206 = vset.pattern.permute.xlu1 %v8734_v46  ;;  %5220 = vset.pattern.permute.xlu0 %v8730_v8 }
 0x25c   : > { %2679 = vperm.xlu1 %5206, %v6195_v9   ;;  %1629 = vperm.xlu0 %5220, %v6203_v4  }
 0x260   : > { %5207 = vset.pattern.permute.xlu1 %v8744_v45  ;;  %5222 = vset.pattern.permute.xlu0 %v8732_v17 }
 0x261   : > { %2743 = vperm.xlu1 %5207, %v6195_v9   ;;  %1939 = vperm.xlu0 %5222, %v6203_v4  }
 0x265   : > { %5208 = vset.pattern.permute.xlu1 %v8754_v27  ;;  %5224 = vset.pattern.permute.xlu0 %v8736_v19 }
 0x266   : > { %1211 = vperm.xlu1 %5208, %v6199_v12   ;;  %2313 = vperm.xlu0 %5224, %v6203_v4  }
 0x26a   : > { %5210 = vset.pattern.permute.xlu1 %v8730_v8  ;;  %5226 = vset.pattern.permute.xlu0 %v8734_v46 }
 0x26b   : > { %1633 = vperm.xlu1 %5210, %v6199_v12   ;;  %2687 = vperm.xlu0 %5226, %v6203_v4  }
 0x26d   : > { %v1270_v58 = vpop.permute.xlu1 %1269  ;;  %v1192_v57 = vpop.permute.xlu0 %1191 }
 0x26e   : > { %v1329_v63 = vsel %vm1175_vm2, %v1192_v57, %v1270_v58 }
 0x26f   : > { %v1352_v22 = vmul.f32 %v6318_v0, %v1329_v63  ;;  %5212 = vset.pattern.permute.xlu1 %v8732_v17  ;;  %5229 = vset.pattern.permute.xlu0 %v8738_v26 }
 0x270   : > { %1943 = vperm.xlu1 %5212, %v6199_v12   ;;  %1293 = vperm.xlu0 %5229, %v6211_v25  }
 0x271   : > { %v1368_v1 = vadd.f32 %v6323_v60, %v1352_v22 }
 0x272   : > { %v6333_v32 = vpop.permute.xlu1 %1681  ;;  %v6335_v54 = vpop.permute.xlu0 %1617 }
 0x273   : > { %v1400_v8 = vand.u32 2147483647, %v1368_v1 }
 0x274   : > { %5214 = vset.pattern.permute.xlu1 %v8736_v19  ;;  %5231 = vset.pattern.permute.xlu0 %v8742_v37 }
 0x275   : > { %v1416_v58 = vsub.f32 0.0, %v1400_v8  ;;  %2317 = vperm.xlu1 %5214, %v6199_v12   ;;  %1705 = vperm.xlu0 %5231, %v6211_v25  }
 0x277   : > { %v1433_v57 = vmul.f32 1.442695, %v1416_v58  ;;  %v6341_v63 = vpop.permute.xlu1 %1991  ;;  %v6343_v17 = vpop.permute.xlu0 %1927 }
 0x279   : > { %5393 = vpow2.f32 %v1433_v57  ;;  %5216 = vset.pattern.permute.xlu1 %v8734_v46  ;;  %5233 = vset.pattern.permute.xlu0 %v8752_v16 }
 0x27a   : > { %2691 = vperm.xlu1 %5216, %v6199_v12   ;;  %2015 = vperm.xlu0 %5233, %v6211_v25  }
 0x27c   : > { %v6349_v22 = vpop.permute.xlu1 %2365  ;;  %v6351_v8 = vpop.permute.xlu0 %2301 }
 0x27e   : > { %5219 = vset.pattern.permute.xlu1 %v8738_v26  ;;  %5235 = vset.pattern.permute.xlu0 %v8740_v18 }
 0x27f   : > { %1281 = vperm.xlu1 %5219, %v6203_v4   ;;  %2389 = vperm.xlu0 %5235, %v6211_v25  }
 0x281   : > { %v6357_v58 = vpop.permute.xlu1 %2739  ;;  %v6359_v57 = vpop.permute.xlu0 %2675 }
 0x283   : > { %v5394_v46 = vpop.eup %5393  ;;  %5221 = vset.pattern.permute.xlu1 %v8742_v37  ;;  %5237 = vset.pattern.permute.xlu0 %v8744_v45  ;;  %v6371_v37 = vpop.f32.mrb[12].mxu1 }
 0x284   : > { %v1464_v19 = vadd.f32 1.0, %v5394_v46  ;;  %1693 = vperm.xlu1 %5221, %v6203_v4   ;;  %2763 = vperm.xlu0 %5237, %v6211_v25   ;;  %8906 = vst [vmem:[#allocation50_spill] sm:$0xff] %v6371_v37 }
 0x286   : > { %5395 = vlog2.f32 %v1464_v19  ;;  %v6365_v26 = vpop.permute.xlu1 %1613  ;;  %v1187_v18 = vpop.permute.xlu0 %1186 }
 0x288   : > { %5223 = vset.pattern.permute.xlu1 %v8752_v16  ;;  %5238 = vset.pattern.permute.xlu0 %v8754_v27  ;;  %v6380_v16 = vpop.f32.mrb[13].mxu1 }
 0x289   : > { %2003 = vperm.xlu1 %5223, %v6203_v4   ;;  %1216 = vperm.xlu0 %5238, %v6213_v42   ;;  %8910 = vst [vmem:[#allocation52_spill] sm:$0xff] %v6380_v16 }
 0x28b   : > { %v6373_v45 = vpop.permute.xlu1 %1923  ;;  %v1266_v46 = vpop.permute.xlu0 %1265 }
 0x28c   : > { %8907 = vst [vmem:[#allocation51_spill] sm:$0xff] %v6373_v45  ;;  %v1328_v7 = vsel %vm1175_vm2, %v1187_v18, %v1266_v46  ;;  %v1384_v18 = vmax.f32 %v1368_v1, 0.0 }
 0x28d   : > { %v1351_v19 = vmul.f32 %v6318_v0, %v1328_v7  ;;  %5225 = vset.pattern.permute.xlu1 %v8908_v14  ;;  %5240 = vset.pattern.permute.xlu0 %v8909_v43 }
 0x28e   : > { %2377 = vperm.xlu1 %5225, %v6203_v4   ;;  %1637 = vperm.xlu0 %5240, %v6213_v42  }
 0x28f   : > { %v6385_v27 = vadd.f32 %v6323_v60, %v1351_v19  ;;  %v6401_v19 = vld [vmem:[%s8723_s7] ss:$0 sm:$0xff] }
 0x290   : > { %v5396_v59 = vpop.eup %5395  ;;  %v6387_v55 = vpop.permute.xlu1 %2297 }
 0x291   : > { %8911 = vst [vmem:[#allocation53_spill] sm:$0xff] %v6387_v55  ;;  %v6389_v62 = vpop.permute.xlu0 %1677  ;;  %v1482_v7 = vmul.f32 0.6931472, %v5396_v59  ;;  %v1399_v46 = vand.u32 2147483647, %v6385_v27  ;;  %v1383_v5 = vmax.f32 %v6385_v27, 0.0 }
 0x292   : > { %5227 = vset.pattern.permute.xlu1 %v8912_v15  ;;  %5242 = vset.pattern.permute.xlu0 %v8913_v23  ;;  %v1740_v27 = vsel %vm1175_vm2, %v6365_v26, %v6389_v62 }
 0x293   : > { %v6394_v53 = vadd.f32 %v1482_v7, %v1384_v18  ;;  %v1415_v61 = vsub.f32 0.0, %v1399_v46  ;;  %2751 = vperm.xlu1 %5227, %v6203_v4   ;;  %1947 = vperm.xlu0 %5242, %v6213_v42   ;;  %v1741_v18 = vsel %vm1175_vm2, %v6335_v54, %v6333_v32  ;;  %v8919_v54 = vmov 4  }
 0x295   : > { %v6405_v59 = vmul.f32 %v6394_v53, %v6074_v41  ;;  %v6407_v1 = vpop.permute.xlu1 %2671  ;;  %v6409_v35 = vpop.permute.xlu0 %1987  ;;  %v1431_v7 = vmul.f32 1.442695, %v1415_v61  ;;  %v1549_v46 = vmul.f32 %v6401_v19, %v6394_v53 }
 0x296   : > { %8914 = vst [vmem:[#allocation54_spill] sm:$0xff] %v6407_v1  ;;  %8915 = vst [vmem:[#allocation55_spill] sm:$0xff] %v6409_v35 }
 0x297   : > { %v1757_v39 = vmul.f32 %v1741_v18, %v6405_v59  ;;  %5228 = vset.pattern.permute.xlu1 %v8916_v30  ;;  %5244 = vset.pattern.permute.xlu0 %v8917_v31  ;;  %5397 = vpow2.f32 %v1431_v7  ;;  %v1566_v41 = vmul.f32 1.442695, %v1549_v46 }
 0x298   : > { %1221 = vperm.xlu1 %5228, %v6211_v25   ;;  %2321 = vperm.xlu0 %5244, %v6213_v42  }
 0x299   : > { %1773 = vst.msk [vmem:[#allocation4 + $0x8] sm:$0xff] %vm626_vm1, %v1757_v39  ;;  %5399 = vpow2.f32 %v1566_v41  ;;  %v8921_v39 = vmov 9  }
 0x29a   : > { %v6423_v28 = vpop.permute.xlu0 %2361  ;;  %v1202_v61 = vpop.permute.xlu1 %1201 }
 0x29b   : > { %8918 = vst [vmem:[#allocation56_spill] sm:$0xff] %v6423_v28 }
 0x29c   : > { %5230 = vset.pattern.permute.xlu1 %v8909_v43  ;;  %5246 = vset.pattern.permute.xlu0 %v8919_v54 }
 0x29d   : > { %1641 = vperm.xlu1 %5230, %v6211_v25   ;;  %2695 = vperm.xlu0 %5246, %v6213_v42  }
 0x29f   : > { %v6429_v32 = vpop.permute.xlu0 %2735  ;;  %v6431_v18 = vpop.permute.xlu1 %1625 }
 0x2a0   : > { %8920 = vst [vmem:[#allocation57_spill] sm:$0xff] %v6429_v32 }
 0x2a1   : > { %5232 = vset.pattern.permute.xlu1 %v8913_v23  ;;  %5249 = vset.pattern.permute.xlu0 %v8921_v39  ;;  %v5398_v7 = vpop.eup %5397 }
 0x2a2   : > { %1951 = vperm.xlu1 %5232, %v6211_v25   ;;  %1301 = vperm.xlu0 %5249, %v6245_v24   ;;  %v1463_v46 = vadd.f32 1.0, %v5398_v7 }
 0x2a3   : > { %v5400_v12 = vpop.eup %5399 }
 0x2a4   : > { %v1278_v29 = vpop.permute.xlu0 %1277  ;;  %v6437_v41 = vpop.permute.xlu1 %1935  ;;  %5401 = vlog2.f32 %v1463_v46  ;;  %1597 = vst.msk [vmem:[#allocation3 + $0x8] sm:$0xff] %vm626_vm1, %v5400_v12 }
 0x2a5   : > { %v1331_v4 = vsel %vm1175_vm2, %v1202_v61, %v1278_v29 }
 0x2a6   : > { %v1354_v33 = vmul.f32 %v6318_v0, %v1331_v4  ;;  %5234 = vset.pattern.permute.xlu1 %v8917_v31  ;;  %5251 = vset.pattern.permute.xlu0 %v8922_v36  ;;  %v8923_v4 = vmov 11  }
 0x2a7   : > { %2325 = vperm.xlu1 %5234, %v6211_v25   ;;  %1713 = vperm.xlu0 %5251, %v6245_v24  }
 0x2a8   : > { %v6448_v7 = vadd.f32 %v6323_v60, %v1354_v33 }
 0x2a9   : > { %v6450_v46 = vpop.permute.xlu0 %1689  ;;  %v6452_v34 = vpop.permute.xlu1 %2309 }
 0x2aa   : > { %v1402_v29 = vand.u32 2147483647, %v6448_v7  ;;  %v1386_v32 = vmax.f32 %v6448_v7, 0.0  ;;  %v1743_v7 = vsel %vm1175_vm2, %v6431_v18, %v6450_v46 }
 0x2ab   : > { %5236 = vset.pattern.permute.xlu1 %v8919_v54  ;;  %5253 = vset.pattern.permute.xlu0 %v8923_v4 }
 0x2ac   : > { %v1418_v61 = vsub.f32 0.0, %v1402_v29  ;;  %2699 = vperm.xlu1 %5236, %v6211_v25   ;;  %2023 = vperm.xlu0 %5253, %v6245_v24  }
 0x2ae   : > { %v1437_v9 = vmul.f32 1.442695, %v1418_v61  ;;  %v6459_v12 = vpop.permute.xlu0 %1999  ;;  %v6461_v33 = vpop.permute.xlu1 %2683 }
 0x2af   : > { %v5402_v40 = vpop.eup %5401 }
 0x2b0   : > { %v1480_v13 = vmul.f32 0.6931472, %v5402_v40  ;;  %5403 = vpow2.f32 %v1437_v9  ;;  %5239 = vset.pattern.permute.xlu1 %v8921_v39  ;;  %5255 = vset.pattern.permute.xlu0 %v8908_v14 }
 0x2b1   : > { %1289 = vperm.xlu1 %5239, %v6213_v42   ;;  %2397 = vperm.xlu0 %5255, %v6245_v24  }
 0x2b2   : > { %v6468_v29 = vadd.f32 %v1480_v13, %v1383_v5 }
 0x2b3   : > { %v6470_v61 = vpop.permute.xlu0 %2373  ;;  %v1197_v25 = vpop.permute.xlu1 %1196 }
 0x2b4   : > { %8924 = vst [vmem:[#allocation58_spill] sm:$0xff] %v6468_v29  ;;  %v6474_v21 = vmul.f32 %v6468_v29, %v6071_v38  ;;  %v1548_v13 = vmul.f32 %v6401_v19, %v6468_v29 }
 0x2b5   : > { %5241 = vset.pattern.permute.xlu1 %v8922_v36  ;;  %5257 = vset.pattern.permute.xlu0 %v8912_v15 }
 0x2b6   : > { %8925 = vst [vmem:[#allocation59_spill] sm:$0xff] %v6474_v21  ;;  %v1756_v40 = vmul.f32 %v1740_v27, %v6474_v21  ;;  %1701 = vperm.xlu1 %5241, %v6213_v42   ;;  %2771 = vperm.xlu0 %5257, %v6245_v24   ;;  %v1564_v5 = vmul.f32 1.442695, %v1548_v13  ;;  %v6497_v13 = vpop.f32.mrb[14].mxu1 }
 0x2b7   : > { %8926 = vst [vmem:[#allocation60_spill] sm:$0xff] %v6497_v13 }
 0x2b8   : > { %1772 = vst.msk [vmem:[#allocation4] sm:$0xff] %vm626_vm1, %v1756_v40  ;;  %v1274_v9 = vpop.permute.xlu1 %1273  ;;  %v6488_v38 = vpop.permute.xlu0 %2747  ;;  %5405 = vpow2.f32 %v1564_v5 }
 0x2b9   : > { %v1330_v26 = vsel %vm1175_vm2, %v1197_v25, %v1274_v9 }
 0x2ba   : > { %v5404_v62 = vpop.eup %5403  ;;  %v1353_v10 = vmul.f32 %v6318_v0, %v1330_v26  ;;  %5243 = vset.pattern.permute.xlu1 %v8923_v4  ;;  %5258 = vset.pattern.permute.xlu0 %v8916_v30 }
 0x2bb   : > { %v1466_v27 = vadd.f32 1.0, %v5404_v62  ;;  %2011 = vperm.xlu1 %5243, %v6213_v42   ;;  %1226 = vperm.xlu0 %5258, %v6249_v44   ;;  %v6509_v62 = vpop.f32.mrb[15].mxu1 }
 0x2bc   : > { %v6500_v40 = vadd.f32 %v6323_v60, %v1353_v10  ;;  %8927 = vst [vmem:[#allocation61_spill] sm:$0xff] %v6509_v62 }
 0x2bd   : > { %5407 = vlog2.f32 %v1466_v27  ;;  %v6502_v25 = vpop.permute.xlu1 %1621  ;;  %v6504_v9 = vpop.permute.xlu0 %1285 }
 0x2be   : > { %v1401_v26 = vand.u32 2147483647, %v6500_v40 }
 0x2bf   : > { %5245 = vset.pattern.permute.xlu1 %v8908_v14  ;;  %5260 = vset.pattern.permute.xlu0 %v8909_v43 }
 0x2c0   : > { %v1417_v11 = vsub.f32 0.0, %v1401_v26  ;;  %2385 = vperm.xlu1 %5245, %v6213_v42   ;;  %1645 = vperm.xlu0 %5260, %v6249_v44  }
 0x2c2   : > { %v1435_v10 = vmul.f32 1.442695, %v1417_v11  ;;  %v6513_v5 = vpop.permute.xlu1 %1685  ;;  %v6515_v27 = vpop.permute.xlu0 %1697 }
 0x2c3   : > { %v5406_v29 = vpop.eup %5405 }
 0x2c4   : > { %5409 = vpow2.f32 %v1435_v10  ;;  %5247 = vset.pattern.permute.xlu1 %v8912_v15  ;;  %5262 = vset.pattern.permute.xlu0 %v8913_v23  ;;  %1596 = vst.msk [vmem:[#allocation3] sm:$0xff] %vm626_vm1, %v5406_v29 }
 0x2c5   : > { %2759 = vperm.xlu1 %5247, %v6213_v42   ;;  %1955 = vperm.xlu0 %5262, %v6249_v44  }
 0x2c7   : > { %v5408_v26 = vpop.eup %5407  ;;  %v6522_v1 = vpop.permute.xlu1 %1931 }
 0x2c8   : > { %8928 = vst [vmem:[#allocation62_spill] sm:$0xff] %v6522_v1  ;;  %v6524_v11 = vpop.permute.xlu0 %2007  ;;  %v1486_v55 = vmul.f32 0.6931472, %v5408_v26 }
 0x2c9   : > { %5248 = vset.pattern.permute.xlu1 %v8916_v30  ;;  %5264 = vset.pattern.permute.xlu0 %v8917_v31 }
 0x2ca   : > { %v6529_v10 = vadd.f32 %v1486_v55, %v1386_v32  ;;  %1231 = vperm.xlu1 %5248, %v6245_v24   ;;  %2329 = vperm.xlu0 %5264, %v6249_v44  }
 0x2cc   : > { %8929 = vst [vmem:[#allocation63_spill] sm:$0xff] %v6529_v10  ;;  %v6535_v29 = vmul.f32 %v6529_v10, %v6084_v47  ;;  %v6537_v42 = vpop.permute.xlu1 %1995  ;;  %v6539_v1 = vpop.permute.xlu0 %2381  ;;  %v1551_v55 = vmul.f32 %v6401_v19, %v6529_v10 }
 0x2cd   : > { %8930 = vst [vmem:[#allocation64_spill] sm:$0xff] %v6537_v42 }
 0x2ce   : > { %v5410_v32 = vpop.eup %5409  ;;  %v1759_v26 = vmul.f32 %v1743_v7, %v6535_v29  ;;  %5250 = vset.pattern.permute.xlu1 %v8909_v43  ;;  %5266 = vset.pattern.permute.xlu0 %v8919_v54  ;;  %v1570_v42 = vmul.f32 1.442695, %v1551_v55 }
 0x2cf   : > { %v1465_v47 = vadd.f32 1.0, %v5410_v32  ;;  %1649 = vperm.xlu1 %5250, %v6245_v24   ;;  %2703 = vperm.xlu0 %5266, %v6249_v44  }
 0x2d0   : > { %1775 = vst.msk [vmem:[#allocation4 + $0x18] sm:$0xff] %vm626_vm1, %v1759_v26  ;;  %v1385_v26 = vmax.f32 %v6500_v40, 0.0  ;;  %v1742_v40 = vsel %vm1175_vm2, %v6502_v25, %v6513_v5 }
 0x2d1   : > { %v6553_v28 = vpop.permute.xlu1 %2305  ;;  %v6555_v18 = vpop.permute.xlu0 %2755  ;;  %5411 = vlog2.f32 %v1465_v47 }
 0x2d2   : > { %8931 = vst [vmem:[#allocation65_spill] sm:$0xff] %v6553_v28  ;;  %5413 = vpow2.f32 %v1570_v42 }
 0x2d3   : > { %5252 = vset.pattern.permute.xlu1 %v8913_v23  ;;  %5269 = vset.pattern.permute.xlu0 %v8921_v39 }
 0x2d4   : > { %1959 = vperm.xlu1 %5252, %v6245_v24   ;;  %1309 = vperm.xlu0 %5269, %v6291_v50  }
 0x2d6   : > { %v6561_v46 = vpop.permute.xlu1 %2369  ;;  %v6563_v7 = vpop.permute.xlu0 %1206 }
 0x2d7   : > { %8932 = vst [vmem:[#allocation66_spill] sm:$0xff] %v6561_v46 }
 0x2d8   : > { %5254 = vset.pattern.permute.xlu1 %v8917_v31  ;;  %5271 = vset.pattern.permute.xlu0 %v8922_v36 }
 0x2d9   : > { %2333 = vperm.xlu1 %5254, %v6245_v24   ;;  %1721 = vperm.xlu0 %5271, %v6291_v50  }
 0x2db   : > { %v6569_v47 = vpop.permute.xlu1 %2679  ;;  %v6571_v55 = vpop.permute.xlu0 %1629 }
 0x2dc   : > { %8933 = vst [vmem:[#allocation67_spill] sm:$0xff] %v6569_v47  ;;  %v5412_v32 = vpop.eup %5411 }
 0x2dd   : > { %5256 = vset.pattern.permute.xlu1 %v8919_v54  ;;  %5273 = vset.pattern.permute.xlu0 %v8923_v4  ;;  %v5414_v42 = vpop.eup %5413  ;;  %v1484_v28 = vmul.f32 0.6931472, %v5412_v32 }
 0x2de   : > { %2707 = vperm.xlu1 %5256, %v6245_v24   ;;  %2031 = vperm.xlu0 %5273, %v6291_v50   ;;  %1599 = vst.msk [vmem:[#allocation3 + $0x18] sm:$0xff] %vm626_vm1, %v5414_v42 }
 0x2df   : > { %v6579_v46 = vadd.f32 %v1484_v28, %v1385_v26 }
 0x2e0   : > { %v6581_v47 = vpop.permute.xlu1 %2743  ;;  %v6583_v10 = vpop.permute.xlu0 %1939 }
 0x2e1   : > { %8934 = vst [vmem:[#allocation68_spill] sm:$0xff] %v6579_v46  ;;  %8935 = vst [vmem:[#allocation69_spill] sm:$0xff] %v6581_v47  ;;  %v6587_v21 = vmul.f32 %v6579_v46, %v6081_v48  ;;  %v1550_v28 = vmul.f32 %v6401_v19, %v6579_v46 }
 0x2e2   : > { %8936 = vst [vmem:[#allocation70_spill] sm:$0xff] %v6583_v10  ;;  %5259 = vset.pattern.permute.xlu1 %v8921_v39  ;;  %5275 = vset.pattern.permute.xlu0 %v8908_v14 }
 0x2e3   : > { %8937 = vst [vmem:[#allocation71_spill] sm:$0xff] %v6587_v21  ;;  %1297 = vperm.xlu1 %5259, %v6249_v44   ;;  %v1758_v32 = vmul.f32 %v1742_v40, %v6587_v21  ;;  %2405 = vperm.xlu0 %5275, %v6291_v50   ;;  %v1568_v48 = vmul.f32 1.442695, %v1550_v28 }
 0x2e5   : > { %v1212_v42 = vpop.permute.xlu1 %1211  ;;  %v6600_v26 = vpop.permute.xlu0 %2313  ;;  %1774 = vst.msk [vmem:[#allocation4 + $0x10] sm:$0xff] %vm626_vm1, %v1758_v32  ;;  %5415 = vpow2.f32 %v1568_v48 }
 0x2e6   : > { %8938 = vst [vmem:[#allocation72_spill] sm:$0xff] %v6600_v26  ;;  %v1333_v25 = vsel %vm1175_vm2, %v1212_v42, %v6504_v9 }
 0x2e7   : > { %v1356_v5 = vmul.f32 %v6318_v0, %v1333_v25  ;;  %5261 = vset.pattern.permute.xlu1 %v8922_v36  ;;  %5277 = vset.pattern.permute.xlu0 %v8912_v15 }
 0x2e8   : > { %1709 = vperm.xlu1 %5261, %v6249_v44   ;;  %2779 = vperm.xlu0 %5277, %v6291_v50  }
 0x2e9   : > { %v1372_v40 = vadd.f32 %v6323_v60, %v1356_v5 }
 0x2ea   : > { %v6612_v28 = vpop.permute.xlu1 %1633  ;;  %v6614_v24 = vpop.permute.xlu0 %2687 }
 0x2eb   : > { %v1404_v32 = vand.u32 2147483647, %v1372_v40  ;;  %8939 = vst [vmem:[#allocation73_spill] sm:$0xff] %v6614_v24  ;;  %v1388_v45 = vmax.f32 %v1372_v40, 0.0 }
 0x2ec   : > { %5263 = vset.pattern.permute.xlu1 %v8923_v4  ;;  %5278 = vset.pattern.permute.xlu0 %v8916_v30 }
 0x2ed   : > { %v1420_v9 = vsub.f32 0.0, %v1404_v32  ;;  %2019 = vperm.xlu1 %5263, %v6249_v44   ;;  %1236 = vperm.xlu0 %5278, %v6295_v52  }
 0x2ef   : > { %v1441_v42 = vmul.f32 1.442695, %v1420_v9  ;;  %v6620_v25 = vpop.permute.xlu1 %1943  ;;  %v6622_v5 = vpop.permute.xlu0 %1293 }
 0x2f0   : > { %v5416_v48 = vpop.eup %5415 }
 0x2f1   : > { %5417 = vpow2.f32 %v1441_v42  ;;  %5265 = vset.pattern.permute.xlu1 %v8908_v14  ;;  %5280 = vset.pattern.permute.xlu0 %v8909_v43  ;;  %1598 = vst.msk [vmem:[#allocation3 + $0x10] sm:$0xff] %vm626_vm1, %v5416_v48 }
 0x2f2   : > { %2393 = vperm.xlu1 %5265, %v6249_v44   ;;  %1653 = vperm.xlu0 %5280, %v6295_v52  }
 0x2f4   : > { %v6628_v32 = vpop.permute.xlu1 %2317  ;;  %v6630_v46 = vpop.permute.xlu0 %1705 }
 0x2f6   : > { %5267 = vset.pattern.permute.xlu1 %v8912_v15  ;;  %5282 = vset.pattern.permute.xlu0 %v8913_v23 }
 0x2f7   : > { %2767 = vperm.xlu1 %5267, %v6249_v44   ;;  %1963 = vperm.xlu0 %5282, %v6295_v52  }
 0x2f9   : > { %v6637_v9 = vpop.permute.xlu1 %2691  ;;  %v6639_v42 = vpop.permute.xlu0 %2015 }
 0x2fa   : > { %8940 = vst [vmem:[#allocation74_spill] sm:$0xff] %v6639_v42 }
 0x2fb   : > { %v5418_v24 = vpop.eup %5417  ;;  %5268 = vset.pattern.permute.xlu1 %v8916_v30  ;;  %5284 = vset.pattern.permute.xlu0 %v8917_v31 }
 0x2fc   : > { %v1468_v26 = vadd.f32 1.0, %v5418_v24  ;;  %1241 = vperm.xlu1 %5268, %v6291_v50   ;;  %2337 = vperm.xlu0 %5284, %v6295_v52  }
 0x2fe   : > { %5419 = vlog2.f32 %v1468_v26  ;;  %v1282_v48 = vpop.permute.xlu1 %1281  ;;  %v6645_v10 = vpop.permute.xlu0 %2389 }
 0x2ff   : > { %8941 = vst [vmem:[#allocation75_spill] sm:$0xff] %v6645_v10  ;;  %v1332_v44 = vsel %vm1175_vm2, %v6563_v7, %v1282_v48 }
 0x300   : > { %v1355_v47 = vmul.f32 %v6318_v0, %v1332_v44  ;;  %5270 = vset.pattern.permute.xlu1 %v8909_v43  ;;  %5286 = vset.pattern.permute.xlu0 %v8919_v54 }
 0x301   : > { %1657 = vperm.xlu1 %5270, %v6291_v50   ;;  %2711 = vperm.xlu0 %5286, %v6295_v52  }
 0x302   : > { %v6655_v24 = vadd.f32 %v6323_v60, %v1355_v47 }
 0x303   : > { %v6658_v26 = vpop.permute.xlu1 %1693  ;;  %v6660_v10 = vpop.permute.xlu0 %2763 }
 0x304   : > { %8942 = vst [vmem:[#allocation76_spill] sm:$0xff] %v6660_v10  ;;  %v1403_v21 = vand.u32 2147483647, %v6655_v24 }
 0x305   : > { %5272 = vset.pattern.permute.xlu1 %v8913_v23  ;;  %5289 = vset.pattern.permute.xlu0 %v8921_v39 }
 0x306   : > { %v1419_v44 = vsub.f32 0.0, %v1403_v21  ;;  %1967 = vperm.xlu1 %5272, %v6291_v50   ;;  %1317 = vperm.xlu0 %5289, %v6371_v37  }
 0x308   : > { %v5420_v7 = vpop.eup %5419  ;;  %v1439_v47 = vmul.f32 1.442695, %v1419_v44  ;;  %v6667_v48 = vpop.permute.xlu1 %2003 }
 0x309   : > { %8943 = vst [vmem:[#allocation77_spill] sm:$0xff] %v6667_v48  ;;  %v6669_v42 = vpop.permute.xlu0 %1216  ;;  %v1490_v35 = vmul.f32 0.6931472, %v5420_v7  ;;  %v8946_v7 = vlaneseq }
 0x30a   : > { %5421 = vpow2.f32 %v1439_v47  ;;  %5274 = vset.pattern.permute.xlu1 %v8917_v31  ;;  %5291 = vset.pattern.permute.xlu0 %v8922_v36 }
 0x30b   : > { %v6672_v10 = vadd.f32 %v1490_v35, %v1388_v45  ;;  %2341 = vperm.xlu1 %5274, %v6291_v50   ;;  %1729 = vperm.xlu0 %5291, %v6371_v37   ;;  %v1745_v35 = vsel %vm1175_vm2, %v6612_v28, %v6515_v27  ;;  %v6696_v47 = vshrl.u32 %v8946_v7, 7 }
 0x30d   : > { %8944 = vst [vmem:[#allocation78_spill] sm:$0xff] %v6672_v10  ;;  %v6679_v21 = vmul.f32 %v6672_v10, %v6096_v6  ;;  %v6681_v44 = vpop.permute.xlu1 %2377  ;;  %v6683_v48 = vpop.permute.xlu0 %1637  ;;  %v1553_v45 = vmul.f32 %v6401_v19, %v6672_v10  ;;  %8947 = vst [vmem:[#allocation80_spill] sm:$0xff] %v6696_v47 }
 0x30e   : > { %8945 = vst [vmem:[#allocation79_spill] sm:$0xff] %v6681_v44 }
 0x30f   : > { %v1761_v40 = vmul.f32 %v1745_v35, %v6679_v21  ;;  %5276 = vset.pattern.permute.xlu1 %v8919_v54  ;;  %5293 = vset.pattern.permute.xlu0 %v8923_v4  ;;  %v1574_v6 = vmul.f32 1.442695, %v1553_v45 }
 0x310   : > { %2715 = vperm.xlu1 %5276, %v6291_v50   ;;  %2039 = vperm.xlu0 %5293, %v6371_v37  }
 0x311   : > { %1777 = vst.msk [vmem:[#allocation4 + $0x28] sm:$0xff] %vm626_vm1, %v1761_v40  ;;  %5423 = vpow2.f32 %v1574_v6 }
 0x312   : > { %v6700_v27 = vpop.permute.xlu1 %2751  ;;  %v6702_v28 = vpop.permute.xlu0 %1947 }
 0x313   : > { %8948 = vst [vmem:[#allocation81_spill] sm:$0xff] %v6700_v27  ;;  %8949 = vst [vmem:[#allocation82_spill] sm:$0xff] %v6702_v28 }
 0x314   : > { %v5422_v10 = vpop.eup %5421  ;;  %5279 = vset.pattern.permute.xlu1 %v8921_v39  ;;  %5295 = vset.pattern.permute.xlu0 %v8908_v14 }
 0x315   : > { %v1467_v35 = vadd.f32 1.0, %v5422_v10  ;;  %1305 = vperm.xlu1 %5279, %v6295_v52   ;;  %2413 = vperm.xlu0 %5295, %v6371_v37  }
 0x317   : > { %5425 = vlog2.f32 %v1467_v35  ;;  %v1222_v40 = vpop.permute.xlu1 %1221  ;;  %v6708_v7 = vpop.permute.xlu0 %2321 }
 0x318   : > { %8950 = vst [vmem:[#allocation83_spill] sm:$0xff] %v6708_v7  ;;  %v1335_v45 = vsel %vm1175_vm2, %v1222_v40, %v6622_v5 }
 0x319   : > { %v1358_v50 = vmul.f32 %v6318_v0, %v1335_v45  ;;  %5281 = vset.pattern.permute.xlu1 %v8922_v36  ;;  %5297 = vset.pattern.permute.xlu0 %v8912_v15 }
 0x31a   : > { %1717 = vperm.xlu1 %5281, %v6295_v52   ;;  %2787 = vperm.xlu0 %5297, %v6371_v37  }
 0x31b   : > { %v6718_v6 = vadd.f32 %v6323_v60, %v1358_v50  ;;  %v5424_v5 = vpop.eup %5423 }
 0x31c   : > { %v6721_v10 = vpop.permute.xlu1 %1641  ;;  %v6724_v47 = vpop.permute.xlu0 %2695  ;;  %1601 = vst.msk [vmem:[#allocation3 + $0x28] sm:$0xff] %vm626_vm1, %v5424_v5 }
 0x31d   : > { %v1406_v35 = vand.u32 2147483647, %v6718_v6  ;;  %8951 = vst [vmem:[#allocation84_spill] sm:$0xff] %v6724_v47  ;;  %v1387_v47 = vmax.f32 %v6655_v24, 0.0  ;;  %v1744_v24 = vsel %vm1175_vm2, %v6571_v55, %v6658_v26 }
 0x31e   : > { %5283 = vset.pattern.permute.xlu1 %v8923_v4  ;;  %5298 = vset.pattern.permute.xlu0 %v8916_v30 }
 0x31f   : > { %v1422_v40 = vsub.f32 0.0, %v1406_v35  ;;  %2027 = vperm.xlu1 %5283, %v6295_v52   ;;  %1246 = vperm.xlu0 %5298, %v6380_v16  }
 0x321   : > { %v5426_v50 = vpop.eup %5425  ;;  %v1445_v45 = vmul.f32 1.442695, %v1422_v40  ;;  %v6731_v7 = vpop.permute.xlu1 %1951 }
 0x322   : > { %v6733_v28 = vpop.permute.xlu0 %1301  ;;  %v1488_v27 = vmul.f32 0.6931472, %v5426_v50 }
 0x323   : > { %5427 = vpow2.f32 %v1445_v45  ;;  %5285 = vset.pattern.permute.xlu1 %v8908_v14  ;;  %5300 = vset.pattern.permute.xlu0 %v8909_v43 }
 0x324   : > { %v6737_v35 = vadd.f32 %v1488_v27, %v1387_v47  ;;  %2401 = vperm.xlu1 %5285, %v6295_v52   ;;  %1661 = vperm.xlu0 %5300, %v6380_v16  }
 0x326   : > { %8952 = vst [vmem:[#allocation85_spill] sm:$0xff] %v6737_v35  ;;  %v6744_v5 = vmul.f32 %v6737_v35, %v6091_v51  ;;  %v6746_v40 = vpop.permute.xlu1 %2325  ;;  %v6748_v44 = vpop.permute.xlu0 %1713  ;;  %v1552_v47 = vmul.f32 %v6401_v19, %v6737_v35 }
 0x328   : > { %8953 = vst [vmem:[#allocation86_spill] sm:$0xff] %v6744_v5  ;;  %v1760_v27 = vmul.f32 %v1744_v24, %v6744_v5  ;;  %5287 = vset.pattern.permute.xlu1 %v8912_v15  ;;  %5302 = vset.pattern.permute.xlu0 %v8913_v23  ;;  %v1572_v50 = vmul.f32 1.442695, %v1552_v47 }
 0x329   : > { %2775 = vperm.xlu1 %5287, %v6295_v52   ;;  %1971 = vperm.xlu0 %5302, %v6380_v16  }
 0x32a   : > { %1776 = vst.msk [vmem:[#allocation4 + $0x20] sm:$0xff] %vm626_vm1, %v1760_v27  ;;  %5429 = vpow2.f32 %v1572_v50 }
 0x32b   : > { %v6762_v45 = vpop.permute.xlu1 %2699  ;;  %v6764_v51 = vpop.permute.xlu0 %2023 }
 0x32c   : > { %8954 = vst [vmem:[#allocation87_spill] sm:$0xff] %v6764_v51 }
 0x32d   : > { %v5428_v55 = vpop.eup %5427  ;;  %5288 = vset.pattern.permute.xlu1 %v8916_v30  ;;  %5304 = vset.pattern.permute.xlu0 %v8917_v31 }
 0x32e   : > { %v1470_v26 = vadd.f32 1.0, %v5428_v55  ;;  %1251 = vperm.xlu1 %5288, %v6371_v37   ;;  %2345 = vperm.xlu0 %5304, %v6380_v16  }
 0x330   : > { %5431 = vlog2.f32 %v1470_v26  ;;  %v1290_v24 = vpop.permute.xlu1 %1289  ;;  %v6770_v47 = vpop.permute.xlu0 %2397 }
 0x331   : > { %8955 = vst [vmem:[#allocation88_spill] sm:$0xff] %v6770_v47  ;;  %v1334_v27 = vsel %vm1175_vm2, %v6669_v42, %v1290_v24 }
 0x332   : > { %v1357_v52 = vmul.f32 %v6318_v0, %v1334_v27  ;;  %5290 = vset.pattern.permute.xlu1 %v8909_v43  ;;  %5306 = vset.pattern.permute.xlu0 %v8919_v54 }
 0x333   : > { %1665 = vperm.xlu1 %5290, %v6371_v37   ;;  %2719 = vperm.xlu0 %5306, %v6380_v16  }
 0x334   : > { %v6780_v50 = vadd.f32 %v6323_v60, %v1357_v52  ;;  %v5430_v42 = vpop.eup %5429 }
 0x335   : > { %v6783_v55 = vpop.permute.xlu1 %1701  ;;  %v6785_v26 = vpop.permute.xlu0 %2771  ;;  %1600 = vst.msk [vmem:[#allocation3 + $0x20] sm:$0xff] %vm626_vm1, %v5430_v42 }
 0x336   : > { %8956 = vst [vmem:[#allocation89_spill] sm:$0xff] %v6785_v26  ;;  %v1405_v35 = vand.u32 2147483647, %v6780_v50  ;;  %v1390_v26 = vmax.f32 %v6718_v6, 0.0  ;;  %v1747_v6 = vsel %vm1175_vm2, %v6721_v10, %v6630_v46 }
 0x337   : > { %5292 = vset.pattern.permute.xlu1 %v8913_v23  ;;  %5309 = vset.pattern.permute.xlu0 %v8921_v39 }
 0x338   : > { %v1421_v24 = vsub.f32 0.0, %v1405_v35  ;;  %1975 = vperm.xlu1 %5292, %v6371_v37   ;;  %1325 = vperm.xlu0 %5309, %v6497_v13  }
 0x33a   : > { %v5432_v52 = vpop.eup %5431  ;;  %v1443_v27 = vmul.f32 1.442695, %v1421_v24  ;;  %v6793_v47 = vpop.permute.xlu1 %2011 }
 0x33b   : > { %8957 = vst [vmem:[#allocation90_spill] sm:$0xff] %v6793_v47  ;;  %v6795_v51 = vpop.permute.xlu0 %1226  ;;  %v1494_v5 = vmul.f32 0.6931472, %v5432_v52 }
 0x33c   : > { %5433 = vpow2.f32 %v1443_v27  ;;  %5294 = vset.pattern.permute.xlu1 %v8917_v31  ;;  %5311 = vset.pattern.permute.xlu0 %v8922_v36 }
 0x33d   : > { %v6799_v35 = vadd.f32 %v1494_v5, %v1390_v26  ;;  %2349 = vperm.xlu1 %5294, %v6371_v37   ;;  %1737 = vperm.xlu0 %5311, %v6497_v13  }
 0x33f   : > { %8958 = vst [vmem:[#allocation91_spill] sm:$0xff] %v6799_v35  ;;  %v6806_v42 = vmul.f32 %v6799_v35, %v6106_v3  ;;  %v6808_v24 = vpop.permute.xlu1 %2385  ;;  %v6810_v47 = vpop.permute.xlu0 %1645  ;;  %v1555_v5 = vmul.f32 %v6401_v19, %v6799_v35 }
 0x340   : > { %8959 = vst [vmem:[#allocation92_spill] sm:$0xff] %v6808_v24 }
 0x341   : > { %v1763_v26 = vmul.f32 %v1747_v6, %v6806_v42  ;;  %5296 = vset.pattern.permute.xlu1 %v8919_v54  ;;  %5313 = vset.pattern.permute.xlu0 %v8923_v4  ;;  %v1578_v52 = vmul.f32 1.442695, %v1555_v5 }
 0x342   : > { %2723 = vperm.xlu1 %5296, %v6371_v37   ;;  %2047 = vperm.xlu0 %5313, %v6497_v13  }
 0x343   : > { %1779 = vst.msk [vmem:[#allocation4 + $0x38] sm:$0xff] %vm626_vm1, %v1763_v26  ;;  %5435 = vpow2.f32 %v1578_v52 }
 0x344   : > { %v6824_v27 = vpop.permute.xlu1 %2759  ;;  %v6826_v3 = vpop.permute.xlu0 %1955 }
 0x345   : > { %8960 = vst [vmem:[#allocation93_spill] sm:$0xff] %v6824_v27  ;;  %8961 = vst [vmem:[#allocation94_spill] sm:$0xff] %v6826_v3 }
 0x346   : > { %v5434_v46 = vpop.eup %5433  ;;  %5299 = vset.pattern.permute.xlu1 %v8921_v39  ;;  %5315 = vset.pattern.permute.xlu0 %v8908_v14 }
 0x347   : > { %v1469_v10 = vadd.f32 1.0, %v5434_v46  ;;  %1313 = vperm.xlu1 %5299, %v6380_v16   ;;  %2421 = vperm.xlu0 %5315, %v6497_v13  }
 0x349   : > { %5437 = vlog2.f32 %v1469_v10  ;;  %v1232_v6 = vpop.permute.xlu1 %1231  ;;  %v6832_v5 = vpop.permute.xlu0 %2329 }
 0x34a   : > { %8962 = vst [vmem:[#allocation95_spill] sm:$0xff] %v6832_v5  ;;  %v1337_v26 = vsel %vm1175_vm2, %v1232_v6, %v6733_v28 }
 0x34b   : > { %v1360_v37 = vmul.f32 %v6318_v0, %v1337_v26  ;;  %5301 = vset.pattern.permute.xlu1 %v8922_v36  ;;  %5317 = vset.pattern.permute.xlu0 %v8912_v15 }
 0x34c   : > { %1725 = vperm.xlu1 %5301, %v6380_v16   ;;  %2795 = vperm.xlu0 %5317, %v6497_v13  }
 0x34d   : > { %v6842_v52 = vadd.f32 %v6323_v60, %v1360_v37  ;;  %v5436_v28 = vpop.eup %5435 }
 0x34e   : > { %v6845_v46 = vpop.permute.xlu1 %1649  ;;  %v6848_v5 = vpop.permute.xlu0 %2703  ;;  %1603 = vst.msk [vmem:[#allocation3 + $0x38] sm:$0xff] %vm626_vm1, %v5436_v28 }
 0x34f   : > { %v1408_v10 = vand.u32 2147483647, %v6842_v52  ;;  %8963 = vst [vmem:[#allocation96_spill] sm:$0xff] %v6848_v5  ;;  %v1389_v5 = vmax.f32 %v6780_v50, 0.0  ;;  %v1746_v50 = vsel %vm1175_vm2, %v6683_v48, %v6783_v55 }
 0x350   : > { %5303 = vset.pattern.permute.xlu1 %v8923_v4  ;;  %5318 = vset.pattern.permute.xlu0 %v8916_v30 }
 0x351   : > { %v1424_v6 = vsub.f32 0.0, %v1408_v10  ;;  %2035 = vperm.xlu1 %5303, %v6380_v16   ;;  %1256 = vperm.xlu0 %5318, %v6509_v62  }
 0x353   : > { %v5438_v37 = vpop.eup %5437  ;;  %v1449_v26 = vmul.f32 1.442695, %v1424_v6  ;;  %v6855_v3 = vpop.permute.xlu1 %1959 }
 0x354   : > { %v6857_v27 = vpop.permute.xlu0 %1309  ;;  %v1492_v35 = vmul.f32 0.6931472, %v5438_v37 }
 0x355   : > { %5439 = vpow2.f32 %v1449_v26  ;;  %5305 = vset.pattern.permute.xlu1 %v8908_v14  ;;  %5320 = vset.pattern.permute.xlu0 %v8909_v43 }
 0x356   : > { %v6861_v10 = vadd.f32 %v1492_v35, %v1389_v5  ;;  %2409 = vperm.xlu1 %5305, %v6380_v16   ;;  %1669 = vperm.xlu0 %5320, %v6509_v62  }
 0x358   : > { %v6868_v28 = vmul.f32 %v6861_v10, %v6101_v20  ;;  %v6870_v6 = vpop.permute.xlu1 %2333  ;;  %v6872_v24 = vpop.permute.xlu0 %1721  ;;  %v1554_v35 = vmul.f32 %v6401_v19, %v6861_v10 }
 0x35a   : > { %v1762_v5 = vmul.f32 %v1746_v50, %v6868_v28  ;;  %5307 = vset.pattern.permute.xlu1 %v8912_v15  ;;  %5322 = vset.pattern.permute.xlu0 %v8913_v23  ;;  %v1576_v37 = vmul.f32 1.442695, %v1554_v35 }
 0x35b   : > { %2783 = vperm.xlu1 %5307, %v6380_v16   ;;  %1979 = vperm.xlu0 %5322, %v6509_v62  }
 0x35c   : > { %1778 = vst.msk [vmem:[#allocation4 + $0x30] sm:$0xff] %vm626_vm1, %v1762_v5  ;;  %5441 = vpow2.f32 %v1576_v37 }
 0x35d   : > { %v6886_v26 = vpop.permute.xlu1 %2707  ;;  %v6888_v20 = vpop.permute.xlu0 %2031 }
 0x35f   : > { %v5440_v48 = vpop.eup %5439  ;;  %5308 = vset.pattern.permute.xlu1 %v8916_v30  ;;  %5324 = vset.pattern.permute.xlu0 %v8917_v31 }
 0x360   : > { %v1472_v55 = vadd.f32 1.0, %v5440_v48  ;;  %1261 = vperm.xlu1 %5308, %v6497_v13   ;;  %2353 = vperm.xlu0 %5324, %v6509_v62  }
 0x362   : > { %5443 = vlog2.f32 %v1472_v55  ;;  %v1298_v50 = vpop.permute.xlu1 %1297  ;;  %v6897_v5 = vpop.permute.xlu0 %2405 }
 0x363   : > { %v1336_v35 = vsel %vm1175_vm2, %v6795_v51, %v1298_v50  ;;  %v2051_v51 = vsel %vm1175_vm2, %v6343_v17, %v6341_v63  ;;  %v2425_v17 = vsel %vm1175_vm2, %v6351_v8, %v6349_v22  ;;  %v2799_v22 = vsel %vm1175_vm2, %v6359_v57, %v6357_v58 }
 0x364   : > { %v1359_v16 = vmul.f32 %v6318_v0, %v1336_v35  ;;  %5310 = vset.pattern.permute.xlu1 %v8909_v43  ;;  %5326 = vset.pattern.permute.xlu0 %v8919_v54  ;;  %v2067_v0 = vmul.f32 %v2051_v51, %v6405_v59  ;;  %v2441_v63 = vmul.f32 %v2425_v17, %v6405_v59  ;;  %v1392_v35 = vmax.f32 %v6842_v52, 0.0 }
 0x365   : > { %1673 = vperm.xlu1 %5310, %v6497_v13   ;;  %2727 = vperm.xlu0 %5326, %v6509_v62   ;;  %v2815_v52 = vmul.f32 %v2799_v22, %v6405_v59  ;;  %v2053_v57 = vsel %vm1175_vm2, %v6437_v41, %v6459_v12 }
 0x366   : > { %v6904_v30 = vadd.f32 %v6323_v60, %v1359_v16  ;;  %v5442_v55 = vpop.eup %5441  ;;  %v2069_v17 = vmul.f32 %v2053_v57, %v6535_v29 }
 0x367   : > { %v6911_v37 = vpop.permute.xlu1 %1709  ;;  %v6915_v48 = vpop.permute.xlu0 %2779  ;;  %1602 = vst.msk [vmem:[#allocation3 + $0x30] sm:$0xff] %vm626_vm1, %v5442_v55 }
 0x368   : > { %v1407_v43 = vand.u32 2147483647, %v6904_v30 }
 0x369   : > { %5312 = vset.pattern.permute.xlu1 %v8913_v23  ;;  %2100 = vrot.lane.b32.xlu0 %v2067_v0, %s5762_s25 }
 0x36a   : > { %v1423_v16 = vsub.f32 0.0, %v1407_v43  ;;  %1983 = vperm.xlu1 %5312, %v6497_v13   ;;  %5328 = vset.pattern.permute.xlu0 %v8912_v15 }
 0x36c   : > { %v5444_v60 = vpop.eup %5443  ;;  %v1447_v50 = vmul.f32 1.442695, %v1423_v16  ;;  %v6927_v23 = vpop.permute.xlu1 %2019 }
 0x36d   : > { %v1498_v51 = vmul.f32 0.6931472, %v5444_v60  ;;  %v6930_v0 = vpop.permute.xlu0 %1236  ;;  %2474 = vrot.lane.b32.xlu0 %v2441_v63, %s5763_s26 }
 0x36e   : > { %5445 = vpow2.f32 %v1447_v50  ;;  %5314 = vset.pattern.permute.xlu1 %v8917_v31  ;;  %v1749_v31 = vsel %vm1175_vm2, %v6845_v46, %v6748_v44  ;;  %v2801_v50 = vsel %vm1175_vm2, %v6461_v33, %v6488_v38 }
 0x36f   : > { %v6938_v8 = vadd.f32 %v1498_v51, %v1392_v35  ;;  %2357 = vperm.xlu1 %5314, %v6497_v13   ;;  %v2817_v35 = vmul.f32 %v2801_v50, %v6535_v29 }
 0x371   : > { %v6944_v43 = vmul.f32 %v6938_v8, %v6116_v2  ;;  %v6946_v55 = vpop.permute.xlu1 %2393  ;;  %v6952_v16 = vpop.permute.xlu0 %1653  ;;  %2848 = vrot.lane.b32.xlu0 %v2815_v52, %s5764_s27  ;;  %v1557_v58 = vmul.f32 %v6401_v19, %v6938_v8  ;;  %v2427_v19 = vsel %vm1175_vm2, %v6452_v34, %v6470_v61  ;;  %v6987_v34 = vld [vmem:[%s8723_s7 + $0x2] ss:$0 sm:$0xff]  ;;  %v7004_v52 = vld [vmem:[%s8721_s5] ss:$0 sm:$0xff] }
 0x372   : > { %v2443_v60 = vmul.f32 %v2427_v19, %v6535_v29  ;;  %v2168_v38 = vmul.f32 %v6987_v34, %v6394_v53  ;;  %v2055_v29 = vsel %vm1175_vm2, %v6620_v25, %v6524_v11 }
 0x373   : > { %v1765_v59 = vmul.f32 %v1749_v31, %v6944_v43  ;;  %5316 = vset.pattern.permute.xlu1 %v8919_v54  ;;  %v1582_v44 = vmul.f32 1.442695, %v1557_v58  ;;  %v6978_v54 = vld [vmem:[%s8723_s7 + $0x1] ss:$0 sm:$0xff]  ;;  %v7027_v58 = vld [vmem:[%s8723_s7 + $0x3] ss:$0 sm:$0xff]  ;;  %v2071_v57 = vmul.f32 %v2055_v29, %v6679_v21 }
 0x374   : > { %2731 = vperm.xlu1 %5316, %v6497_v13   ;;  %v1794_v61 = vmul.f32 %v6978_v54, %v6394_v53  ;;  %v2185_v25 = vmul.f32 1.442695, %v2168_v38  ;;  %v2542_v19 = vmul.f32 %v7027_v58, %v6394_v53 }
 0x375   : > { %1781 = vst.msk [vmem:[#allocation4 + $0x48] sm:$0xff] %vm626_vm1, %v1765_v59  ;;  %2104 = vrot.lane.b32.xlu0 %v2069_v17, %s5762_s25  ;;  %5447 = vpow2.f32 %v1582_v44 }
 0x376   : > { %v6967_v46 = vpop.permute.xlu1 %2767  ;;  %v6973_v41 = vpop.permute.xlu0 %1963  ;;  %v1811_v33 = vmul.f32 1.442695, %v1794_v61 }
 0x378   : > { %v5446_v12 = vpop.eup %5445  ;;  %5319 = vset.pattern.permute.xlu1 %v8921_v39 }
 0x379   : > { %v1471_v63 = vadd.f32 1.0, %v5446_v12  ;;  %1321 = vperm.xlu1 %5319, %v6509_v62   ;;  %2478 = vrot.lane.b32.xlu0 %v2443_v60, %s5763_s26  ;;  %v2429_v12 = vsel %vm1175_vm2, %v6628_v32, %v6539_v1  ;;  %v2559_v1 = vmul.f32 1.442695, %v2542_v19  ;;  %v2803_v32 = vsel %vm1175_vm2, %v6637_v9, %v6555_v18  ;;  %v7077_v9 = vld [vmem:[%s8723_s7] ss:$0 sm:$0xff] }
 0x37b   : > { %5449 = vlog2.f32 %v1471_v63  ;;  %v1242_v39 = vpop.permute.xlu1 %1241  ;;  %v6999_v22 = vpop.permute.xlu0 %2337  ;;  %v2445_v63 = vmul.f32 %v2429_v12, %v6679_v21 }
 0x37c   : > { %v1339_v51 = vsel %vm1175_vm2, %v1242_v39, %v6857_v27  ;;  %v7019_v27 = vld [vmem:[%s8722_s6] ss:$0 sm:$0xff]  ;;  %5451 = vpow2.f32 %v1811_v33 }
 0x37d   : > { %v1362_v31 = vmul.f32 %v7004_v52, %v1339_v51  ;;  %5321 = vset.pattern.permute.xlu1 %v8922_v36  ;;  %2852 = vrot.lane.b32.xlu0 %v2817_v35, %s5764_s27  ;;  %5453 = vpow2.f32 %v2185_v25  ;;  %v2819_v51 = vmul.f32 %v2803_v32, %v6679_v21 }
 0x37e   : > { %1733 = vperm.xlu1 %5321, %v6509_v62  }
 0x37f   : > { %v7022_v36 = vadd.f32 %v7019_v27, %v1362_v31  ;;  %v5448_v11 = vpop.eup %5447 }
 0x380   : > { %v7030_v59 = vpop.permute.xlu1 %1657  ;;  %v7033_v44 = vpop.permute.xlu0 %2711  ;;  %1605 = vst.msk [vmem:[#allocation3 + $0x48] sm:$0xff] %vm626_vm1, %v5448_v11  ;;  %v8966_v11 = vld [vmem:[#allocation59_spill] sm:$0xff] }
 0x381   : > { %v1410_v17 = vand.u32 2147483647, %v7022_v36  ;;  %2108 = vrot.lane.b32.xlu0 %v2071_v57, %s5762_s25 }
 0x382   : > { %5323 = vset.pattern.permute.xlu1 %v8923_v4  ;;  %v1391_v4 = vmax.f32 %v6904_v30, 0.0 }
 0x383   : > { %v1426_v60 = vsub.f32 0.0, %v1410_v17  ;;  %2043 = vperm.xlu1 %5323, %v6509_v62   ;;  %v8964_v17 = vld [vmem:[#allocation55_spill] sm:$0xff] }
 0x385   : > { %v5450_v61 = vpop.eup %5449  ;;  %v1453_v50 = vmul.f32 1.442695, %v1426_v60  ;;  %v7046_v39 = vpop.permute.xlu1 %1967  ;;  %2482 = vrot.lane.b32.xlu0 %v2445_v63, %s5763_s26  ;;  %v8967_v63 = vld [vmem:[#allocation56_spill] sm:$0xff] }
 0x386   : > { %v1496_v53 = vmul.f32 0.6931472, %v5450_v61  ;;  %v7050_v35 = vpop.permute.xlu0 %1317  ;;  %v5452_v29 = vpop.eup %5451  ;;  %v8968_v61 = vld [vmem:[#allocation53_spill] sm:$0xff] }
 0x387   : > { %5455 = vpow2.f32 %v1453_v50  ;;  %5325 = vset.pattern.permute.xlu1 %v8908_v14  ;;  %v1748_v14 = vsel %vm1175_vm2, %v6810_v47, %v6911_v37  ;;  %v8965_v47 = vld [vmem:[#allocation51_spill] sm:$0xff]  ;;  %v5454_v12 = vpop.eup %5453  ;;  %v2424_v50 = vsel %vm1175_vm2, %v8968_v61, %v8967_v63 }
 0x388   : > { %v7058_v31 = vadd.f32 %v1496_v53, %v1391_v4  ;;  %2417 = vperm.xlu1 %5325, %v6509_v62   ;;  %5457 = vpow2.f32 %v2559_v1  ;;  %v2050_v37 = vsel %vm1175_vm2, %v8965_v47, %v8964_v17  ;;  %v2440_v53 = vmul.f32 %v2424_v50, %v8966_v11  ;;  %v8969_v1 = vld [vmem:[#allocation63_spill] sm:$0xff] }
 0x389   : > { %2856 = vrot.lane.b32.xlu0 %v2819_v51, %s5764_s27  ;;  %v2066_v25 = vmul.f32 %v2050_v37, %v8966_v11  ;;  %v1796_v32 = vmul.f32 %v6978_v54, %v8969_v1  ;;  %v2170_v47 = vmul.f32 %v6987_v34, %v8969_v1 }
 0x38a   : > { %v7063_v30 = vmul.f32 %v7058_v31, %v6109_v49  ;;  %v7066_v38 = vpop.permute.xlu1 %2341  ;;  %v7072_v18 = vpop.permute.xlu0 %1729  ;;  %v1556_v21 = vmul.f32 %v7077_v9, %v7058_v31 }
 0x38c   : > { %v1764_v33 = vmul.f32 %v1748_v14, %v7063_v30  ;;  %5327 = vset.pattern.permute.xlu1 %v8912_v15  ;;  %v1580_v57 = vmul.f32 1.442695, %v1556_v21 }
 0x38d   : > { %2791 = vperm.xlu1 %5327, %v6509_v62   ;;  %1859 = vrot.lane.b32.xlu0 %v5452_v29, %s5762_s25  ;;  %v8970_v29 = vld [vmem:[#allocation57_spill] sm:$0xff]  ;;  %v9003_v62 = vld [vmem:[#allocation84_spill] sm:$0xff] }
 0x38e   : > { %1780 = vst.msk [vmem:[#allocation4 + $0x40] sm:$0xff] %vm626_vm1, %v1764_v33  ;;  %5459 = vpow2.f32 %v1580_v57  ;;  %v8971_v57 = vld [vmem:[#allocation54_spill] sm:$0xff] }
 0x38f   : > { %v7091_v19 = vpop.permute.xlu1 %2715  ;;  %v7093_v60 = vpop.permute.xlu0 %2039  ;;  %v2798_v17 = vsel %vm1175_vm2, %v8971_v57, %v8970_v29  ;;  %v8975_v29 = vld [vmem:[#allocation71_spill] sm:$0xff] }
 0x391   : > { %v5456_v15 = vpop.eup %5455  ;;  %2098 = vrot.lane.b32.xlu1 %v2066_v25, %s5762_s25  ;;  %2233 = vrot.lane.b32.xlu0 %v5454_v12, %s5763_s26  ;;  %v2814_v25 = vmul.f32 %v2798_v17, %v8966_v11  ;;  %v1815_v12 = vmul.f32 1.442695, %v1796_v32  ;;  %v8973_v11 = vld [vmem:[#allocation64_spill] sm:$0xff]  ;;  %v8974_v32 = vld [vmem:[#allocation62_spill] sm:$0xff]  ;;  %v8976_v17 = vld [vmem:[#allocation75_spill] sm:$0xff] }
 0x392   : > { %v1474_v4 = vadd.f32 1.0, %v5456_v15  ;;  %v5458_v14 = vpop.eup %5457 }
 0x394   : > { %5461 = vlog2.f32 %v1474_v4  ;;  %v1306_v51 = vpop.permute.xlu1 %1305  ;;  %v7107_v33 = vpop.permute.xlu0 %2413  ;;  %v2189_v4 = vmul.f32 1.442695, %v2170_v47 }
 0x395   : > { %v1338_v21 = vsel %vm1175_vm2, %v6930_v0, %v1306_v51  ;;  %2472 = vrot.lane.b32.xlu1 %v2440_v53, %s5763_s26  ;;  %2607 = vrot.lane.b32.xlu0 %v5458_v14, %s5764_s27  ;;  %v8972_v0 = vld [vmem:[#allocation74_spill] sm:$0xff]  ;;  %v2544_v53 = vmul.f32 %v7027_v58, %v8969_v1  ;;  %v2052_v51 = vsel %vm1175_vm2, %v8974_v32, %v8973_v11  ;;  %5463 = vpow2.f32 %v1815_v12 }
 0x396   : > { %v1361_v37 = vmul.f32 %v7004_v52, %v1338_v21  ;;  %v2057_v15 = vsel %vm1175_vm2, %v6731_v7, %v8972_v0  ;;  %v2068_v57 = vmul.f32 %v2052_v51, %v8975_v29  ;;  %v2431_v1 = vsel %vm1175_vm2, %v6746_v40, %v8976_v17  ;;  %v8979_v51 = vld [vmem:[#allocation76_spill] sm:$0xff]  ;;  %v8981_v17 = vld [vmem:[#allocation67_spill] sm:$0xff] }
 0x397   : > { %v2073_v63 = vmul.f32 %v2057_v15, %v6806_v42  ;;  %v2447_v47 = vmul.f32 %v2431_v1, %v6806_v42  ;;  %5465 = vpow2.f32 %v2189_v4  ;;  %v2563_v0 = vmul.f32 1.442695, %v2544_v53  ;;  %v8977_v15 = vld [vmem:[#allocation66_spill] sm:$0xff] }
 0x398   : > { %v7125_v61 = vadd.f32 %v7019_v27, %v1361_v37  ;;  %v5460_v21 = vpop.eup %5459  ;;  %v1394_v4 = vmax.f32 %v7022_v36, 0.0  ;;  %v8983_v36 = vld [vmem:[#allocation31_spill] sm:$0xff] }
 0x399   : > { %v7127_v50 = vpop.permute.xlu1 %1717  ;;  %2846 = vrot.lane.b32.xlu1 %v2814_v25, %s5764_s27  ;;  %v7137_v14 = vpop.permute.xlu0 %2787  ;;  %2112 = vrot.lane.b32.xlu0 %v2073_v63, %s5762_s25  ;;  %1604 = vst.msk [vmem:[#allocation3 + $0x40] sm:$0xff] %vm626_vm1, %v5460_v21  ;;  %v8978_v63 = vld [vmem:[#allocation65_spill] sm:$0xff] }
 0x39a   : > { %v1409_v7 = vand.u32 2147483647, %v7125_v61  ;;  %v2426_v12 = vsel %vm1175_vm2, %v8978_v63, %v8977_v15 }
 0x39b   : > { %v2442_v40 = vmul.f32 %v2426_v12, %v8975_v29 }
 0x39c   : > { %v1425_v37 = vsub.f32 0.0, %v1409_v7  ;;  %v2805_v7 = vsel %vm1175_vm2, %v6762_v45, %v8979_v51 }
 0x39d   : > { %2102 = vrot.lane.b32.xlu1 %v2068_v57, %s5762_s25  ;;  %2486 = vrot.lane.b32.xlu0 %v2447_v47, %s5763_s26  ;;  %v8980_v57 = vld [vmem:[#allocation69_spill] sm:$0xff]  ;;  %v2821_v47 = vmul.f32 %v2805_v7, %v6806_v42  ;;  %v1751_v42 = vsel %vm1175_vm2, %v7030_v59, %v6872_v24  ;;  %v8986_v59 = vld [vmem:[#allocation86_spill] sm:$0xff] }
 0x39e   : > { %v5462_v25 = vpop.eup %5461  ;;  %v1451_v11 = vmul.f32 1.442695, %v1425_v37  ;;  %v7153_v32 = vpop.permute.xlu1 %2027  ;;  %v2800_v1 = vsel %vm1175_vm2, %v8981_v17, %v8980_v57  ;;  %v8982_v37 = vld [vmem:[#allocation58_spill] sm:$0xff] }
 0x39f   : > { %v1502_v53 = vmul.f32 0.6931472, %v5462_v25  ;;  %v7161_v21 = vpop.permute.xlu0 %1246  ;;  %v1793_v15 = vmul.f32 %v6978_v54, %v8982_v37  ;;  %v2816_v45 = vmul.f32 %v2800_v1, %v8975_v29  ;;  %v5464_v51 = vpop.eup %5463  ;;  %v2167_v7 = vmul.f32 %v6987_v34, %v8982_v37 }
 0x3a0   : > { %5467 = vpow2.f32 %v1451_v11 }
 0x3a1   : > { %v7170_v63 = vadd.f32 %v1502_v53, %v1394_v4  ;;  %2476 = vrot.lane.b32.xlu1 %v2442_v40, %s5763_s26  ;;  %2860 = vrot.lane.b32.xlu0 %v2821_v47, %s5764_s27  ;;  %5469 = vpow2.f32 %v2563_v0  ;;  %v1809_v0 = vmul.f32 1.442695, %v1793_v15  ;;  %v8984_v4 = vld [vmem:[#allocation77_spill] sm:$0xff]  ;;  %v8985_v53 = vld [vmem:[#allocation70_spill] sm:$0xff]  ;;  %v5466_v1 = vpop.eup %5465  ;;  %v2541_v15 = vmul.f32 %v7027_v58, %v8982_v37 }
 0x3a2   : > { %v2054_v57 = vsel %vm1175_vm2, %v8985_v53, %v8984_v4  ;;  %v8987_v4 = vld [vmem:[#allocation79_spill] sm:$0xff] }
 0x3a3   : > { %v7177_v25 = vmul.f32 %v7170_v63, %v8983_v36  ;;  %v7179_v12 = vpop.permute.xlu1 %2401  ;;  %v7185_v11 = vpop.permute.xlu0 %1661  ;;  %v1559_v40 = vmul.f32 %v7077_v9, %v7170_v63  ;;  %v2070_v17 = vmul.f32 %v2054_v57, %v8986_v59  ;;  %5471 = vpow2.f32 %v1809_v0 }
 0x3a4   : > { %v2557_v2 = vmul.f32 1.442695, %v2541_v15 }
 0x3a5   : > { %v1767_v29 = vmul.f32 %v1751_v42, %v7177_v25  ;;  %2850 = vrot.lane.b32.xlu1 %v2816_v45, %s5764_s27  ;;  %1863 = vrot.lane.b32.xlu0 %v5464_v51, %s5762_s25  ;;  %v1586_v24 = vmul.f32 1.442695, %v1559_v40  ;;  %v2183_v42 = vmul.f32 1.442695, %v2167_v7  ;;  %v8988_v51 = vld [vmem:[#allocation72_spill] sm:$0xff] }
 0x3a6   : > { %v2428_v40 = vsel %vm1175_vm2, %v8988_v51, %v8987_v4  ;;  %v8990_v4 = vld [vmem:[#allocation81_spill] sm:$0xff] }
 0x3a7   : > { %1783 = vst.msk [vmem:[#allocation4 + $0x58] sm:$0xff] %vm626_vm1, %v1767_v29  ;;  %5473 = vpow2.f32 %v1586_v24  ;;  %v8989_v29 = vld [vmem:[#allocation78_spill] sm:$0xff]  ;;  %v2444_v53 = vmul.f32 %v2428_v40, %v8986_v59  ;;  %v8991_v51 = vld [vmem:[#allocation73_spill] sm:$0xff] }
 0x3a8   : > { %v7200_v47 = vpop.permute.xlu1 %2775  ;;  %v7204_v45 = vpop.permute.xlu0 %1971  ;;  %v1798_v0 = vmul.f32 %v6978_v54, %v8989_v29  ;;  %v2172_v7 = vmul.f32 %v6987_v34, %v8989_v29  ;;  %v2802_v24 = vsel %vm1175_vm2, %v8991_v51, %v8990_v4 }
 0x3a9   : > { %2106 = vrot.lane.b32.xlu1 %v2070_v17, %s5762_s25  ;;  %2237 = vrot.lane.b32.xlu0 %v5466_v1, %s5763_s26  ;;  %v2818_v40 = vmul.f32 %v2802_v24, %v8986_v59 }
 0x3aa   : > { %v5468_v36 = vpop.eup %5467  ;;  %v1819_v15 = vmul.f32 1.442695, %v1798_v0 }
 0x3ab   : > { %v1473_v37 = vadd.f32 1.0, %v5468_v36  ;;  %v5470_v57 = vpop.eup %5469 }
 0x3ad   : > { %5475 = vlog2.f32 %v1473_v37  ;;  %v1252_v17 = vpop.permute.xlu1 %1251  ;;  %2480 = vrot.lane.b32.xlu1 %v2444_v53, %s5763_s26  ;;  %v7225_v36 = vpop.permute.xlu0 %2345  ;;  %2611 = vrot.lane.b32.xlu0 %v5470_v57, %s5764_s27  ;;  %v8993_v57 = vld [vmem:[#allocation88_spill] sm:$0xff] }
 0x3ae   : > { %5477 = vpow2.f32 %v2183_v42  ;;  %v1341_v1 = vsel %vm1175_vm2, %v1252_v17, %v7050_v35  ;;  %v8992_v42 = vld [vmem:[#allocation87_spill] sm:$0xff]  ;;  %v2546_v35 = vmul.f32 %v7027_v58, %v8989_v29  ;;  %v5472_v0 = vpop.eup %5471  ;;  %v2433_v17 = vsel %vm1175_vm2, %v6870_v6, %v8993_v57 }
 0x3af   : > { %v2059_v53 = vsel %vm1175_vm2, %v6855_v3, %v8992_v42  ;;  %v1364_v37 = vmul.f32 %v7004_v52, %v1341_v1  ;;  %5479 = vpow2.f32 %v2557_v2  ;;  %v2193_v3 = vmul.f32 1.442695, %v2172_v7  ;;  %v8994_v42 = vld [vmem:[#allocation89_spill] sm:$0xff] }
 0x3b0   : > { %v2075_v4 = vmul.f32 %v2059_v53, %v6944_v43  ;;  %5481 = vpow2.f32 %v1819_v15  ;;  %v2449_v2 = vmul.f32 %v2433_v17, %v6944_v43  ;;  %v2567_v15 = vmul.f32 1.442695, %v2546_v35  ;;  %v8995_v35 = vld [vmem:[#allocation68_spill] sm:$0xff] }
 0x3b1   : > { %v7236_v51 = vadd.f32 %v7019_v27, %v1364_v37  ;;  %2854 = vrot.lane.b32.xlu1 %v2818_v40, %s5764_s27  ;;  %v5474_v1 = vpop.eup %5473  ;;  %5483 = vpow2.f32 %v2193_v3  ;;  %v2807_v6 = vsel %vm1175_vm2, %v6886_v26, %v8994_v42  ;;  %v1795_v3 = vmul.f32 %v6978_v54, %v8995_v35 }
 0x3b2   : > { %2116 = vrot.lane.b32.xlu0 %v2075_v4, %s5762_s25  ;;  %v7242_v59 = vpop.permute.xlu1 %1665  ;;  %v7250_v40 = vpop.permute.xlu0 %2719  ;;  %1607 = vst.msk [vmem:[#allocation3 + $0x58] sm:$0xff] %vm626_vm1, %v5474_v1  ;;  %v2823_v57 = vmul.f32 %v2807_v6, %v6944_v43  ;;  %v1750_v42 = vsel %vm1175_vm2, %v6952_v16, %v7127_v50 }
 0x3b3   : > { %v1412_v24 = vand.u32 2147483647, %v7236_v51 }
 0x3b5   : > { %v1428_v29 = vsub.f32 0.0, %v1412_v24  ;;  %1857 = vrot.lane.b32.xlu1 %v5472_v0, %s5762_s25  ;;  %v1393_v0 = vmax.f32 %v7125_v61, 0.0 }
 0x3b6   : > { %2490 = vrot.lane.b32.xlu0 %v2449_v2, %s5763_s26  ;;  %v8996_v2 = vld [vmem:[#allocation28_spill] sm:$0xff] }
 0x3b7   : > { %v5476_v7 = vpop.eup %5475  ;;  %v1457_v53 = vmul.f32 1.442695, %v1428_v29  ;;  %v7259_v37 = vpop.permute.xlu1 %1975 }
 0x3b8   : > { %v5478_v4 = vpop.eup %5477  ;;  %v1500_v17 = vmul.f32 0.6931472, %v5476_v7  ;;  %v7263_v24 = vpop.permute.xlu0 %1325  ;;  %v2169_v7 = vmul.f32 %v6987_v34, %v8995_v35 }
 0x3b9   : > { %5485 = vpow2.f32 %v1457_v53  ;;  %2231 = vrot.lane.b32.xlu1 %v5478_v4, %s5763_s26  ;;  %v5480_v26 = vpop.eup %5479  ;;  %v1813_v53 = vmul.f32 1.442695, %v1795_v3  ;;  %v8997_v4 = vld [vmem:[#allocation90_spill] sm:$0xff]  ;;  %v2543_v3 = vmul.f32 %v7027_v58, %v8995_v35 }
 0x3ba   : > { %v7268_v1 = vadd.f32 %v1500_v17, %v1393_v0  ;;  %2864 = vrot.lane.b32.xlu0 %v2823_v57, %s5764_s27  ;;  %5487 = vpow2.f32 %v2567_v15  ;;  %v5482_v29 = vpop.eup %5481  ;;  %v8998_v57 = vld [vmem:[#allocation82_spill] sm:$0xff] }
 0x3bb   : > { %v2056_v0 = vsel %vm1175_vm2, %v8998_v57, %v8997_v4  ;;  %v5484_v50 = vpop.eup %5483  ;;  %5489 = vpow2.f32 %v1813_v53  ;;  %v8999_v4 = vld [vmem:[#allocation92_spill] sm:$0xff]  ;;  %v9000_v57 = vld [vmem:[#allocation83_spill] sm:$0xff]  ;;  %v2561_v35 = vmul.f32 1.442695, %v2543_v3 }
 0x3bc   : > { %v7273_v43 = vmul.f32 %v7268_v1, %v8996_v2  ;;  %v7275_v61 = vpop.permute.xlu1 %2349  ;;  %v7283_v6 = vpop.permute.xlu0 %1737  ;;  %v1558_v15 = vmul.f32 %v7077_v9, %v7268_v1  ;;  %v2072_v2 = vmul.f32 %v2056_v0, %v6868_v28  ;;  %v9001_v0 = vld [vmem:[#allocation91_spill] sm:$0xff] }
 0x3bd   : > { %2605 = vrot.lane.b32.xlu1 %v5480_v26, %s5764_s27  ;;  %v2187_v26 = vmul.f32 1.442695, %v2169_v7  ;;  %v1800_v7 = vmul.f32 %v6978_v54, %v9001_v0 }
 0x3be   : > { %v1766_v17 = vmul.f32 %v1750_v42, %v7273_v43  ;;  %1867 = vrot.lane.b32.xlu0 %v5482_v29, %s5762_s25  ;;  %v1584_v16 = vmul.f32 1.442695, %v1558_v15  ;;  %v2430_v29 = vsel %vm1175_vm2, %v9000_v57, %v8999_v4  ;;  %v2174_v4 = vmul.f32 %v6987_v34, %v9001_v0  ;;  %v9002_v57 = vld [vmem:[#allocation93_spill] sm:$0xff] }
 0x3c0   : > { %1782 = vst.msk [vmem:[#allocation4 + $0x50] sm:$0xff] %vm626_vm1, %v1766_v17  ;;  %v2446_v17 = vmul.f32 %v2430_v29, %v6868_v28  ;;  %5491 = vpow2.f32 %v1584_v16  ;;  %v1823_v29 = vmul.f32 1.442695, %v1800_v7 }
 0x3c1   : > { %v7296_v49 = vpop.permute.xlu1 %2723  ;;  %2110 = vrot.lane.b32.xlu1 %v2072_v2, %s5762_s25  ;;  %v7305_v42 = vpop.permute.xlu0 %2047  ;;  %5493 = vpow2.f32 %v2187_v26  ;;  %v2061_v26 = vsel %vm1175_vm2, %v7046_v39, %v6888_v20  ;;  %v2197_v20 = vmul.f32 1.442695, %v2174_v4  ;;  %v2548_v39 = vmul.f32 %v7027_v58, %v9001_v0 }
 0x3c2   : > { %2241 = vrot.lane.b32.xlu0 %v5484_v50, %s5763_s26  ;;  %v2804_v50 = vsel %vm1175_vm2, %v9003_v62, %v9002_v57  ;;  %v2077_v62 = vmul.f32 %v2061_v26, %v7177_v25 }
 0x3c3   : > { %v5486_v15 = vpop.eup %5485  ;;  %v2820_v16 = vmul.f32 %v2804_v50, %v6868_v28 }
 0x3c4   : > { %v1476_v53 = vadd.f32 1.0, %v5486_v15  ;;  %v5488_v2 = vpop.eup %5487 }
 0x3c5   : > { %2484 = vrot.lane.b32.xlu1 %v2446_v17, %s5763_s26  ;;  %v5490_v7 = vpop.eup %5489 }
 0x3c6   : > { %5495 = vlog2.f32 %v1476_v53  ;;  %2615 = vrot.lane.b32.xlu0 %v5488_v2, %s5764_s27  ;;  %v1314_v13 = vpop.permute.xlu1 %1313  ;;  %v7327_v15 = vpop.permute.xlu0 %2421 }
 0x3c7   : > { %v1340_v3 = vsel %vm1175_vm2, %v7161_v21, %v1314_v13  ;;  %5497 = vpow2.f32 %v2561_v35  ;;  %v2435_v13 = vsel %vm1175_vm2, %v7066_v38, %v6897_v5  ;;  %v2571_v5 = vmul.f32 1.442695, %v2548_v39 }
 0x3c8   : > { %v1363_v17 = vmul.f32 %v7004_v52, %v1340_v3  ;;  %5499 = vpow2.f32 %v1823_v29  ;;  %v2451_v53 = vmul.f32 %v2435_v13, %v7177_v25  ;;  %v2809_v38 = vsel %vm1175_vm2, %v7091_v19, %v6915_v48 }
 0x3c9   : > { %2858 = vrot.lane.b32.xlu1 %v2820_v16, %s5764_s27  ;;  %5501 = vpow2.f32 %v2197_v20  ;;  %v2825_v29 = vmul.f32 %v2809_v38, %v7177_v25  ;;  %v1396_v3 = vmax.f32 %v7236_v51, 0.0  ;;  %v9004_v20 = vld [vmem:[#allocation85_spill] sm:$0xff]  ;;  %v9005_v51 = vld [vmem:[#allocation35_spill] sm:$0xff] }
 0x3ca   : > { %v7333_v28 = vadd.f32 %v7019_v27, %v1363_v17  ;;  %2120 = vrot.lane.b32.xlu0 %v2077_v62, %s5762_s25  ;;  %v5492_v57 = vpop.eup %5491  ;;  %v1797_v39 = vmul.f32 %v6978_v54, %v9004_v20  ;;  %v2171_v13 = vmul.f32 %v6987_v34, %v9004_v20 }
 0x3cb   : > { %v7342_v21 = vpop.permute.xlu1 %1725  ;;  %v7346_v35 = vpop.permute.xlu0 %2795  ;;  %1606 = vst.msk [vmem:[#allocation3 + $0x50] sm:$0xff] %vm626_vm1, %v5492_v57  ;;  %v9006_v57 = vld [vmem:[#allocation94_spill] sm:$0xff] }
 0x3cc   : > { %v1411_v2 = vand.u32 2147483647, %v7333_v28  ;;  %v5494_v0 = vpop.eup %5493 }
 0x3cd   : > { %1861 = vrot.lane.b32.xlu1 %v5490_v7, %s5762_s25 }
 0x3ce   : > { %v1427_v4 = vsub.f32 0.0, %v1411_v2  ;;  %2494 = vrot.lane.b32.xlu0 %v2451_v53, %s5763_s26  ;;  %v1817_v2 = vmul.f32 1.442695, %v1797_v39 }
 0x3d0   : > { %v5496_v50 = vpop.eup %5495  ;;  %v1455_v16 = vmul.f32 1.442695, %v1427_v4  ;;  %v7356_v26 = vpop.permute.xlu1 %2035  ;;  %v2058_v4 = vsel %vm1175_vm2, %v9006_v57, %v6927_v23  ;;  %v2191_v23 = vmul.f32 1.442695, %v2171_v13 }
 0x3d1   : > { %v1506_v62 = vmul.f32 0.6931472, %v5496_v50  ;;  %v7359_v17 = vpop.permute.xlu0 %1256  ;;  %2235 = vrot.lane.b32.xlu1 %v5494_v0, %s5763_s26  ;;  %v5498_v19 = vpop.eup %5497  ;;  %v1753_v0 = vsel %vm1175_vm2, %v7242_v59, %v7072_v18  ;;  %v2074_v50 = vmul.f32 %v2058_v4, %v7063_v30  ;;  %v2545_v18 = vmul.f32 %v7027_v58, %v9004_v20  ;;  %v9007_v59 = vld [vmem:[#allocation95_spill] sm:$0xff]  ;;  %v9008_v4 = vld [vmem:[#allocation96_spill] sm:$0xff] }
 0x3d2   : > { %5503 = vpow2.f32 %v1455_v16  ;;  %2868 = vrot.lane.b32.xlu0 %v2825_v29, %s5764_s27  ;;  %v5500_v25 = vpop.eup %5499 }
 0x3d3   : > { %5505 = vpow2.f32 %v2571_v5  ;;  %v7365_v48 = vadd.f32 %v1506_v62, %v1396_v3  ;;  %v5502_v3 = vpop.eup %5501  ;;  %v2432_v62 = vsel %vm1175_vm2, %v9007_v59, %v6946_v55  ;;  %v2565_v57 = vmul.f32 1.442695, %v2545_v18 }
 0x3d4   : > { %5507 = vpow2.f32 %v1817_v2  ;;  %v2176_v55 = vmul.f32 %v6987_v34, %v6938_v8 }
 0x3d5   : > { %v7371_v7 = vmul.f32 %v7365_v48, %v9005_v51  ;;  %v7373_v53 = vpop.permute.xlu1 %2409  ;;  %2609 = vrot.lane.b32.xlu1 %v5498_v19, %s5764_s27  ;;  %v7385_v5 = vpop.permute.xlu0 %1669  ;;  %v1561_v38 = vmul.f32 %v7077_v9, %v7365_v48  ;;  %v1802_v19 = vmul.f32 %v6978_v54, %v6938_v8 }
 0x3d6   : > { %1871 = vrot.lane.b32.xlu0 %v5500_v25, %s5762_s25  ;;  %v2448_v25 = vmul.f32 %v2432_v62, %v7063_v30 }
 0x3d7   : > { %v1769_v29 = vmul.f32 %v1753_v0, %v7371_v7  ;;  %v1590_v16 = vmul.f32 1.442695, %v1561_v38  ;;  %v2806_v0 = vsel %vm1175_vm2, %v9008_v4, %v6967_v46  ;;  %v1827_v38 = vmul.f32 1.442695, %v1802_v19 }
 0x3d9   : > { %1785 = vst.msk [vmem:[#allocation4 + $0x68] sm:$0xff] %vm626_vm1, %v1769_v29  ;;  %2114 = vrot.lane.b32.xlu1 %v2074_v50, %s5762_s25  ;;  %5509 = vpow2.f32 %v1590_v16  ;;  %v2822_v50 = vmul.f32 %v2806_v0, %v7063_v30  ;;  %v2063_v29 = vsel %vm1175_vm2, %v7259_v37, %v7093_v60  ;;  %v2550_v30 = vmul.f32 %v7027_v58, %v6938_v8 }
 0x3da   : > { %2245 = vrot.lane.b32.xlu0 %v5502_v3, %s5763_s26  ;;  %v7400_v39 = vpop.permute.xlu1 %2783  ;;  %v7405_v51 = vpop.permute.xlu0 %1979  ;;  %5511 = vpow2.f32 %v2191_v23  ;;  %v2079_v3 = vmul.f32 %v2063_v29, %v7371_v7  ;;  %v2201_v60 = vmul.f32 1.442695, %v2176_v55  ;;  %v2437_v37 = vsel %vm1175_vm2, %v7275_v61, %v7107_v33 }
 0x3db   : > { %v2453_v62 = vmul.f32 %v2437_v37, %v7371_v7  ;;  %v2811_v33 = vsel %vm1175_vm2, %v7296_v49, %v7137_v14  ;;  %v1395_v49 = vmax.f32 %v7333_v28, 0.0  ;;  %v2060_v28 = vsel %vm1175_vm2, %v6973_v41, %v7153_v32 }
 0x3dc   : > { %v5504_v13 = vpop.eup %5503 }
 0x3dd   : > { %v5506_v2 = vpop.eup %5505  ;;  %v1475_v20 = vadd.f32 1.0, %v5504_v13  ;;  %2488 = vrot.lane.b32.xlu1 %v2448_v25, %s5763_s26 }
 0x3de   : > { %2619 = vrot.lane.b32.xlu0 %v5506_v2, %s5764_s27  ;;  %v5508_v59 = vpop.eup %5507  ;;  %v2575_v2 = vmul.f32 1.442695, %v2550_v30  ;;  %v9009_v30 = vld [vmem:[#allocation33_spill] sm:$0xff] }
 0x3df   : > { %5513 = vlog2.f32 %v1475_v20  ;;  %v1262_v16 = vpop.permute.xlu1 %1261  ;;  %v7424_v18 = vpop.permute.xlu0 %2353 }
 0x3e0   : > { %v1343_v23 = vsel %vm1175_vm2, %v1262_v16, %v7263_v24  ;;  %5515 = vpow2.f32 %v2565_v57  ;;  %v2827_v57 = vmul.f32 %v2811_v33, %v7371_v7 }
 0x3e1   : > { %v1366_v46 = vmul.f32 %v7004_v52, %v1343_v23  ;;  %2862 = vrot.lane.b32.xlu1 %v2822_v50, %s5764_s27  ;;  %5517 = vpow2.f32 %v1827_v38  ;;  %v1799_v50 = vmul.f32 %v6978_v54, %v6861_v10 }
 0x3e2   : > { %2124 = vrot.lane.b32.xlu0 %v2079_v3, %s5762_s25  ;;  %5519 = vpow2.f32 %v2201_v60 }
 0x3e3   : > { %v7436_v24 = vadd.f32 %v7019_v27, %v1366_v46  ;;  %v5510_v13 = vpop.eup %5509  ;;  %5521 = vpow2.f32 %v2575_v2  ;;  %v1821_v23 = vmul.f32 1.442695, %v1799_v50  ;;  %v2173_v46 = vmul.f32 %v6987_v34, %v6861_v10 }
 0x3e4   : > { %v7439_v19 = vpop.permute.xlu1 %1673  ;;  %v7442_v8 = vpop.permute.xlu0 %2727  ;;  %1609 = vst.msk [vmem:[#allocation3 + $0x68] sm:$0xff] %vm626_vm1, %v5510_v13 }
 0x3e5   : > { %v1414_v25 = vand.u32 2147483647, %v7436_v24  ;;  %1865 = vrot.lane.b32.xlu1 %v5508_v59, %s5762_s25  ;;  %v5512_v20 = vpop.eup %5511  ;;  %v2076_v59 = vmul.f32 %v2060_v28, %v7273_v43  ;;  %v2195_v33 = vmul.f32 1.442695, %v2173_v46 }
 0x3e6   : > { %2498 = vrot.lane.b32.xlu0 %v2453_v62, %s5763_s26  ;;  %v1752_v62 = vsel %vm1175_vm2, %v7185_v11, %v7342_v21  ;;  %v2434_v11 = vsel %vm1175_vm2, %v6999_v22, %v7179_v12  ;;  %v2808_v22 = vsel %vm1175_vm2, %v7033_v44, %v7200_v47 }
 0x3e7   : > { %v1430_v61 = vsub.f32 0.0, %v1414_v25  ;;  %v2450_v21 = vmul.f32 %v2434_v11, %v7273_v43 }
 0x3e8   : > { %v2101_v0 = vpop.permute.xlu0 %2100 }
 0x3e9   : > { %v5514_v55 = vpop.eup %5513  ;;  %v1461_v4 = vmul.f32 1.442695, %v1430_v61  ;;  %v7452_v38 = vpop.permute.xlu1 %1983  ;;  %2239 = vrot.lane.b32.xlu1 %v5512_v20, %s5763_s26  ;;  %2147 = vst.msk [vmem:[#allocation4 + $0x8] sm:$0xff] %vm1905_vm3, %v2101_v0  ;;  %v2547_v61 = vmul.f32 %v7027_v58, %v6861_v10  ;;  %v2824_v0 = vmul.f32 %v2808_v22, %v7273_v43 }
 0x3ea   : > { %v1504_v14 = vmul.f32 0.6931472, %v5514_v55  ;;  %2872 = vrot.lane.b32.xlu0 %v2827_v57, %s5764_s27  ;;  %v5516_v7 = vpop.eup %5515 }
 0x3eb   : > { %5523 = vpow2.f32 %v1461_v4  ;;  %v5518_v16 = vpop.eup %5517  ;;  %v2569_v10 = vmul.f32 1.442695, %v2547_v61 }
 0x3ec   : > { %v7460_v29 = vadd.f32 %v1504_v14, %v1395_v49  ;;  %v2475_v3 = vpop.permute.xlu0 %2474  ;;  %v5520_v25 = vpop.eup %5519  ;;  %5525 = vpow2.f32 %v1821_v23 }
 0x3ed   : > { %2613 = vrot.lane.b32.xlu1 %v5516_v7, %s5764_s27  ;;  %2521 = vst.msk [vmem:[#allocation4 + $0x8] sm:$0xff] %vm2279_vm4, %v2475_v3  ;;  %v5522_v57 = vpop.eup %5521 }
 0x3ee   : > { %v7471_v60 = vmul.f32 %v7460_v29, %v9009_v30  ;;  %1875 = vrot.lane.b32.xlu0 %v5518_v16, %s5762_s25  ;;  %v7475_v37 = vpop.permute.xlu1 %2357  ;;  %v1560_v41 = vmul.f32 %v7077_v9, %v7460_v29  ;;  %v1801_v30 = vmul.f32 %v6978_v54, %v7058_v31 }
 0x3f0   : > { %v1768_v32 = vmul.f32 %v1752_v62, %v7471_v60  ;;  %v2849_v13 = vpop.permute.xlu0 %2848  ;;  %v1588_v2 = vmul.f32 1.442695, %v1560_v41  ;;  %v1398_v41 = vmax.f32 %v7436_v24, 0.0  ;;  %v2062_v24 = vsel %vm1175_vm2, %v7204_v45, %v7356_v26 }
 0x3f1   : > { %2118 = vrot.lane.b32.xlu1 %v2076_v59, %s5762_s25  ;;  %2895 = vst.msk [vmem:[#allocation4 + $0x8] sm:$0xff] %vm2653_vm5, %v2849_v13  ;;  %v2175_v13 = vmul.f32 %v6987_v34, %v7058_v31  ;;  %v1755_v45 = vsel %vm1175_vm2, %v7439_v19, %v7283_v6 }
 0x3f2   : > { %1784 = vst.msk [vmem:[#allocation4 + $0x60] sm:$0xff] %vm626_vm1, %v1768_v32  ;;  %2249 = vrot.lane.b32.xlu0 %v5520_v25, %s5763_s26  ;;  %5527 = vpow2.f32 %v1588_v2 }
 0x3f3   : > { %v7496_v20 = vpop.permute.xlu1 %2731  ;;  %5529 = vpow2.f32 %v2195_v33  ;;  %v2178_v33 = vmul.f32 %v6987_v34, %v7170_v63 }
 0x3f4   : > { %v2105_v4 = vpop.permute.xlu0 %2104 }
 0x3f5   : > { %v5524_v55 = vpop.eup %5523  ;;  %2492 = vrot.lane.b32.xlu1 %v2450_v21, %s5763_s26  ;;  %2149 = vst.msk [vmem:[#allocation4 + $0x18] sm:$0xff] %vm1905_vm3, %v2105_v4  ;;  %v1825_v21 = vmul.f32 1.442695, %v1801_v30  ;;  %v9010_v4 = vld [vmem:[#allocation37_spill] sm:$0xff]  ;;  %v2205_v26 = vmul.f32 1.442695, %v2178_v33  ;;  %v2554_v30 = vmul.f32 %v7027_v58, %v7365_v48 }
 0x3f6   : > { %v1478_v12 = vadd.f32 1.0, %v5524_v55  ;;  %2623 = vrot.lane.b32.xlu0 %v5522_v57, %s5764_s27  ;;  %v5526_v44 = vpop.eup %5525  ;;  %v2549_v57 = vmul.f32 %v7027_v58, %v7058_v31  ;;  %v2078_v55 = vmul.f32 %v2062_v24, %v7471_v60 }
 0x3f8   : > { %5531 = vlog2.f32 %v1478_v12  ;;  %v1322_v50 = vpop.permute.xlu1 %1321  ;;  %v2479_v14 = vpop.permute.xlu0 %2478  ;;  %v2199_v12 = vmul.f32 1.442695, %v2175_v13  ;;  %v2583_v13 = vmul.f32 1.442695, %v2554_v30 }
 0x3f9   : > { %v1342_v49 = vsel %vm1175_vm2, %v7359_v17, %v1322_v50  ;;  %2866 = vrot.lane.b32.xlu1 %v2824_v0, %s5764_s27  ;;  %5533 = vpow2.f32 %v2569_v10  ;;  %2523 = vst.msk [vmem:[#allocation4 + $0x18] sm:$0xff] %vm2279_vm4, %v2479_v14  ;;  %v2552_v0 = vmul.f32 %v7027_v58, %v7170_v63 }
 0x3fa   : > { %v1365_v7 = vmul.f32 %v7004_v52, %v1342_v49  ;;  %v1804_v52 = vmul.f32 %v6978_v54, %v7170_v63  ;;  %v2065_v49 = vsel %vm1175_vm2, %v7452_v38, %v7305_v42  ;;  %v2436_v63 = vsel %vm1175_vm2, %v7225_v36, %v7373_v53 }
 0x3fb   : > { %v2579_v42 = vmul.f32 1.442695, %v2552_v0  ;;  %v2439_v36 = vsel %vm1175_vm2, %v7475_v37, %v7327_v15  ;;  %v7624_v0 = vld [vmem:[%s8723_s7 + $0x2] ss:$0 sm:$0xff] }
 0x3fc   : > { %v7513_v47 = vadd.f32 %v7019_v27, %v1365_v7  ;;  %v2853_v16 = vpop.permute.xlu0 %2852  ;;  %v5528_v17 = vpop.eup %5527  ;;  %v1831_v2 = vmul.f32 1.442695, %v1804_v52  ;;  %v2452_v7 = vmul.f32 %v2436_v63, %v7471_v60  ;;  %v2180_v52 = vmul.f32 %v6987_v34, %v7365_v48 }
 0x3fd   : > { %1869 = vrot.lane.b32.xlu1 %v5526_v44, %s5762_s25  ;;  %v7516_v43 = vpop.permute.xlu1 %1733  ;;  %2897 = vst.msk [vmem:[#allocation4 + $0x18] sm:$0xff] %vm2653_vm5, %v2853_v16  ;;  %v5530_v23 = vpop.eup %5529  ;;  %v1806_v44 = vmul.f32 %v6978_v54, %v7365_v48  ;;  %v2810_v54 = vsel %vm1175_vm2, %v7250_v40, %v7400_v39 }
 0x3fe   : > { %v1413_v3 = vand.u32 2147483647, %v7513_v47  ;;  %1608 = vst.msk [vmem:[#allocation3 + $0x60] sm:$0xff] %vm626_vm1, %v5528_v17  ;;  %v2573_v17 = vmul.f32 1.442695, %v2549_v57  ;;  %v2826_v15 = vmul.f32 %v2810_v54, %v7471_v60  ;;  %v1397_v57 = vmax.f32 %v7513_v47, 0.0 }
 0x400   : > { %v1429_v46 = vsub.f32 0.0, %v1413_v3  ;;  %v2109_v28 = vpop.permute.xlu0 %2108 }
 0x401   : > { %2243 = vrot.lane.b32.xlu1 %v5530_v23, %s5763_s26  ;;  %2151 = vst.msk [vmem:[#allocation4 + $0x28] sm:$0xff] %vm1905_vm3, %v2109_v28 }
 0x402   : > { %v5532_v27 = vpop.eup %5531  ;;  %v1459_v59 = vmul.f32 1.442695, %v1429_v46  ;;  %v7527_v62 = vpop.permute.xlu1 %2043  ;;  %v1835_v46 = vmul.f32 1.442695, %v1806_v44 }
 0x403   : > { %v1510_v32 = vmul.f32 0.6931472, %v5532_v27  ;;  %v5534_v25 = vpop.eup %5533  ;;  %v2209_v27 = vmul.f32 1.442695, %v2180_v52 }
 0x404   : > { %5535 = vpow2.f32 %v1459_v59  ;;  %v2483_v11 = vpop.permute.xlu0 %2482 }
 0x405   : > { %v7534_v61 = vadd.f32 %v1510_v32, %v1398_v41  ;;  %2617 = vrot.lane.b32.xlu1 %v5534_v25, %s5764_s27  ;;  %2525 = vst.msk [vmem:[#allocation4 + $0x28] sm:$0xff] %vm2279_vm4, %v2483_v11  ;;  %5537 = vpow2.f32 %v1831_v2  ;;  %v7609_v2 = vld [vmem:[%s8723_s7 + $0x1] ss:$0 sm:$0xff] }
 0x406   : > { %5539 = vpow2.f32 %v1825_v21  ;;  %v1803_v11 = vmul.f32 %v7609_v2, %v7268_v1 }
 0x407   : > { %v7547_v10 = vmul.f32 %v7534_v61, %v9010_v4  ;;  %v7549_v22 = vpop.permute.xlu1 %2417  ;;  %v1563_v31 = vmul.f32 %v7077_v9, %v7534_v61  ;;  %5541 = vpow2.f32 %v2199_v12  ;;  %v1808_v58 = vmul.f32 %v7609_v2, %v7534_v61 }
 0x408   : > { %v2857_v14 = vpop.permute.xlu0 %2856  ;;  %5543 = vpow2.f32 %v2205_v26  ;;  %v1829_v47 = vmul.f32 1.442695, %v1803_v11  ;;  %v2177_v26 = vmul.f32 %v7624_v0, %v7268_v1  ;;  %v2813_v11 = vsel %vm1175_vm2, %v7496_v20, %v7346_v35 }
 0x409   : > { %v1771_v50 = vmul.f32 %v1755_v45, %v7547_v10  ;;  %2122 = vrot.lane.b32.xlu1 %v2078_v55, %s5762_s25  ;;  %v2081_v6 = vmul.f32 %v2065_v49, %v7547_v10  ;;  %2899 = vst.msk [vmem:[#allocation4 + $0x28] sm:$0xff] %vm2653_vm5, %v2857_v14  ;;  %v1594_v19 = vmul.f32 1.442695, %v1563_v31  ;;  %v2455_v23 = vmul.f32 %v2439_v36, %v7547_v10  ;;  %v7638_v14 = vld [vmem:[%s8723_s7 + $0x3] ss:$0 sm:$0xff] }
 0x40a   : > { %v1839_v12 = vmul.f32 1.442695, %v1808_v58  ;;  %v2182_v45 = vmul.f32 %v7624_v0, %v7534_v61  ;;  %v2551_v63 = vmul.f32 %v7638_v14, %v7268_v1  ;;  %v2556_v44 = vmul.f32 %v7638_v14, %v7534_v61 }
 0x40b   : > { %1787 = vst.msk [vmem:[#allocation4 + $0x78] sm:$0xff] %vm626_vm1, %v1771_v50  ;;  %2128 = vrot.lane.b32.xlu0 %v2081_v6, %s5762_s25  ;;  %5545 = vpow2.f32 %v1594_v19  ;;  %v9011_v6 = vld [vmem:[#allocation36_spill] sm:$0xff]  ;;  %v2553_v30 = vmul.f32 %v7638_v14, %v7460_v29 }
 0x40c   : > { %v2792_v38 = vpop.permute.xlu1 %2791  ;;  %v1860_v16 = vpop.permute.xlu0 %1859  ;;  %5547 = vpow2.f32 %v2579_v42  ;;  %v2587_v54 = vmul.f32 1.442695, %v2556_v44 }
 0x40d   : > { %v7583_v53 = vsel %vm1175_vm2, %v7442_v8, %v2792_v38  ;;  %2496 = vrot.lane.b32.xlu1 %v2452_v7, %s5763_s26  ;;  %1907 = vst.msk [vmem:[#allocation3 + $0x8] sm:$0xff] %vm1905_vm3, %v1860_v16  ;;  %v1754_v7 = vsel %vm1175_vm2, %v7385_v5, %v7516_v43  ;;  %v2213_v38 = vmul.f32 1.442695, %v2182_v45  ;;  %v2203_v16 = vmul.f32 1.442695, %v2177_v26 }
 0x40e   : > { %v5536_v3 = vpop.eup %5535  ;;  %v2064_v5 = vsel %vm1175_vm2, %v7405_v51, %v7527_v62  ;;  %v2577_v51 = vmul.f32 1.442695, %v2551_v63  ;;  %v1805_v62 = vmul.f32 %v7609_v2, %v7460_v29 }
 0x40f   : > { %v1477_v37 = vadd.f32 1.0, %v5536_v3  ;;  %2502 = vrot.lane.b32.xlu0 %v2455_v23, %s5763_s26  ;;  %v5538_v39 = vpop.eup %5537 }
 0x410   : > { %v2099_v8 = vpop.permute.xlu1 %2098  ;;  %v2234_v40 = vpop.permute.xlu0 %2233 }
 0x411   : > { %5549 = vlog2.f32 %v1477_v37  ;;  %2146 = vst.msk [vmem:[#allocation4] sm:$0xff] %vm1905_vm3, %v2099_v8  ;;  %2870 = vrot.lane.b32.xlu1 %v2826_v15, %s5764_s27  ;;  %v5540_v60 = vpop.eup %5539  ;;  %v2438_v15 = vsel %vm1175_vm2, %v7424_v18, %v7549_v22  ;;  %v2179_v18 = vmul.f32 %v7624_v0, %v7460_v29 }
 0x412   : > { %5551 = vpow2.f32 %v2573_v17  ;;  %2281 = vst.msk [vmem:[#allocation3 + $0x8] sm:$0xff] %vm2279_vm4, %v2234_v40  ;;  %v5542_v59 = vpop.eup %5541  ;;  %v1833_v40 = vmul.f32 1.442695, %v1805_v62 }
 0x413   : > { %1879 = vrot.lane.b32.xlu0 %v5538_v39, %s5762_s25  ;;  %5553 = vpow2.f32 %v1835_v46  ;;  %v5544_v41 = vpop.eup %5543 }
 0x414   : > { %v2473_v28 = vpop.permute.xlu1 %2472  ;;  %v2608_v34 = vpop.permute.xlu0 %2607  ;;  %5555 = vpow2.f32 %v2209_v27  ;;  %v2207_v27 = vmul.f32 1.442695, %v2179_v18 }
 0x415   : > { %2520 = vst.msk [vmem:[#allocation4] sm:$0xff] %vm2279_vm4, %v2473_v28  ;;  %1873 = vrot.lane.b32.xlu1 %v5540_v60, %s5762_s25  ;;  %v5546_v32 = vpop.eup %5545  ;;  %5557 = vpow2.f32 %v2583_v13  ;;  %v2581_v13 = vmul.f32 1.442695, %v2553_v30 }
 0x416   : > { %2655 = vst.msk [vmem:[#allocation3 + $0x8] sm:$0xff] %vm2653_vm5, %v2608_v34  ;;  %v5548_v33 = vpop.eup %5547  ;;  %5559 = vpow2.f32 %v1839_v12 }
 0x417   : > { %2253 = vrot.lane.b32.xlu0 %v5544_v41, %s5763_s26  ;;  %1611 = vst.msk [vmem:[#allocation3 + $0x78] sm:$0xff] %vm626_vm1, %v5546_v32  ;;  %5561 = vpow2.f32 %v1829_v47 }
 0x418   : > { %v2847_v25 = vpop.permute.xlu1 %2846  ;;  %v2113_v48 = vpop.permute.xlu0 %2112  ;;  %5563 = vpow2.f32 %v2213_v38 }
 0x419   : > { %2894 = vst.msk [vmem:[#allocation4] sm:$0xff] %vm2653_vm5, %v2847_v25  ;;  %2247 = vrot.lane.b32.xlu1 %v5542_v59, %s5763_s26  ;;  %5565 = vpow2.f32 %v2203_v16 }
 0x41a   : > { %2153 = vst.msk [vmem:[#allocation4 + $0x38] sm:$0xff] %vm1905_vm3, %v2113_v48 }
 0x41b   : > { %v5550_v21 = vpop.eup %5549  ;;  %2627 = vrot.lane.b32.xlu0 %v5548_v33, %s5764_s27 }
 0x41c   : > { %v5552_v24 = vpop.eup %5551  ;;  %v1508_v55 = vmul.f32 0.6931472, %v5550_v21  ;;  %v2103_v4 = vpop.permute.xlu1 %2102 }
 0x41d   : > { %2148 = vst.msk [vmem:[#allocation4 + $0x10] sm:$0xff] %vm1905_vm3, %v2103_v4  ;;  %v2487_v31 = vpop.permute.xlu0 %2486  ;;  %2621 = vrot.lane.b32.xlu1 %v5552_v24, %s5764_s27  ;;  %v5554_v49 = vpop.eup %5553 }
 0x41e   : > { %v7632_v50 = vadd.f32 %v1508_v55, %v1397_v57  ;;  %2527 = vst.msk [vmem:[#allocation4 + $0x38] sm:$0xff] %vm2279_vm4, %v2487_v31  ;;  %v5556_v43 = vpop.eup %5555 }
 0x41f   : > { %1883 = vrot.lane.b32.xlu0 %v5554_v49, %s5762_s25  ;;  %v5558_v37 = vpop.eup %5557 }
 0x420   : > { %v7644_v19 = vmul.f32 %v7632_v50, %v9011_v6  ;;  %v2477_v42 = vpop.permute.xlu1 %2476  ;;  %v1562_v36 = vmul.f32 %v7077_v9, %v7632_v50  ;;  %v5560_v22 = vpop.eup %5559  ;;  %v1807_v58 = vmul.f32 %v7609_v2, %v7632_v50  ;;  %v2829_v2 = vmul.f32 %v2813_v11, %v7547_v10 }
 0x421   : > { %2522 = vst.msk [vmem:[#allocation4 + $0x10] sm:$0xff] %vm2279_vm4, %v2477_v42  ;;  %v2861_v1 = vpop.permute.xlu0 %2860  ;;  %v5562_v39 = vpop.eup %5561  ;;  %v2181_v57 = vmul.f32 %v7624_v0, %v7632_v50  ;;  %v2555_v10 = vmul.f32 %v7638_v14, %v7632_v50 }
 0x422   : > { %v1770_v3 = vmul.f32 %v1754_v7, %v7644_v19  ;;  %2901 = vst.msk [vmem:[#allocation4 + $0x38] sm:$0xff] %vm2653_vm5, %v2861_v1  ;;  %v2080_v61 = vmul.f32 %v2064_v5, %v7644_v19  ;;  %v1592_v17 = vmul.f32 1.442695, %v1562_v36  ;;  %v2454_v8 = vmul.f32 %v2438_v15, %v7644_v19  ;;  %v5564_v34 = vpop.eup %5563 }
 0x423   : > { %2257 = vrot.lane.b32.xlu0 %v5556_v43, %s5763_s26  ;;  %v5566_v59 = vpop.eup %5565  ;;  %v1837_v24 = vmul.f32 1.442695, %v1807_v58  ;;  %v2211_v20 = vmul.f32 1.442695, %v2181_v57  ;;  %v2585_v31 = vmul.f32 1.442695, %v2555_v10  ;;  %v2828_v36 = vmul.f32 %v7583_v53, %v7644_v19 }
 0x424   : > { %1786 = vst.msk [vmem:[#allocation4 + $0x70] sm:$0xff] %vm626_vm1, %v1770_v3  ;;  %v2851_v9 = vpop.permute.xlu1 %2850  ;;  %2126 = vrot.lane.b32.xlu1 %v2080_v61, %s5762_s25  ;;  %5567 = vpow2.f32 %v1592_v17 }
 0x425   : > { %2896 = vst.msk [vmem:[#allocation4 + $0x10] sm:$0xff] %vm2653_vm5, %v2851_v9  ;;  %v1864_v23 = vpop.permute.xlu0 %1863  ;;  %5569 = vpow2.f32 %v2587_v54 }
 0x426   : > { %1909 = vst.msk [vmem:[#allocation3 + $0x18] sm:$0xff] %vm1905_vm3, %v1864_v23  ;;  %5571 = vpow2.f32 %v2577_v51 }
 0x427   : > { %2631 = vrot.lane.b32.xlu0 %v5558_v37, %s5764_s27  ;;  %5573 = vpow2.f32 %v1833_v40 }
 0x428   : > { %v2107_v46 = vpop.permute.xlu1 %2106  ;;  %2500 = vrot.lane.b32.xlu1 %v2454_v8, %s5763_s26  ;;  %5575 = vpow2.f32 %v2207_v27 }
 0x429   : > { %2150 = vst.msk [vmem:[#allocation4 + $0x20] sm:$0xff] %vm1905_vm3, %v2107_v46  ;;  %v2238_v52 = vpop.permute.xlu0 %2237  ;;  %5577 = vpow2.f32 %v2581_v13 }
 0x42a   : > { %2283 = vst.msk [vmem:[#allocation3 + $0x18] sm:$0xff] %vm2279_vm4, %v2238_v52  ;;  %5579 = vpow2.f32 %v1837_v24 }
 0x42b   : > { %1887 = vrot.lane.b32.xlu0 %v5560_v22, %s5762_s25  ;;  %5581 = vpow2.f32 %v2211_v20 }
 0x42c   : > { %v2481_v60 = vpop.permute.xlu1 %2480  ;;  %1877 = vrot.lane.b32.xlu1 %v5562_v39, %s5762_s25  ;;  %5583 = vpow2.f32 %v2585_v31 }
 0x42d   : > { %2524 = vst.msk [vmem:[#allocation4 + $0x20] sm:$0xff] %vm2279_vm4, %v2481_v60  ;;  %v2612_v28 = vpop.permute.xlu0 %2611 }
 0x42e   : > { %2657 = vst.msk [vmem:[#allocation3 + $0x18] sm:$0xff] %vm2653_vm5, %v2612_v28  ;;  %v5568_v32 = vpop.eup %5567 }
 0x42f   : > { %2261 = vrot.lane.b32.xlu0 %v5564_v34, %s5763_s26  ;;  %1610 = vst.msk [vmem:[#allocation3 + $0x70] sm:$0xff] %vm626_vm1, %v5568_v32  ;;  %v5570_v29 = vpop.eup %5569 }
 0x430   : > { %v2855_v41 = vpop.permute.xlu1 %2854  ;;  %2251 = vrot.lane.b32.xlu1 %v5566_v59, %s5763_s26  ;;  %v5572_v48 = vpop.eup %5571 }
 0x431   : > { %2898 = vst.msk [vmem:[#allocation4 + $0x20] sm:$0xff] %vm2653_vm5, %v2855_v41  ;;  %v2117_v25 = vpop.permute.xlu0 %2116  ;;  %v5574_v55 = vpop.eup %5573 }
 0x432   : > { %2155 = vst.msk [vmem:[#allocation4 + $0x48] sm:$0xff] %vm1905_vm3, %v2117_v25  ;;  %v5576_v12 = vpop.eup %5575 }
 0x433   : > { %2635 = vrot.lane.b32.xlu0 %v5570_v29, %s5764_s27  ;;  %v5578_v47 = vpop.eup %5577 }
 0x434   : > { %v1858_v33 = vpop.permute.xlu1 %1857  ;;  %2625 = vrot.lane.b32.xlu1 %v5572_v48, %s5764_s27  ;;  %v5580_v49 = vpop.eup %5579 }
 0x435   : > { %1906 = vst.msk [vmem:[#allocation3] sm:$0xff] %vm1905_vm3, %v1858_v33  ;;  %v2491_v21 = vpop.permute.xlu0 %2490  ;;  %v5582_v6 = vpop.eup %5581 }
 0x436   : > { %2529 = vst.msk [vmem:[#allocation4 + $0x48] sm:$0xff] %vm2279_vm4, %v2491_v21  ;;  %v5584_v38 = vpop.eup %5583 }
 0x437   : > { %2876 = vrot.lane.b32.xlu0 %v2829_v2, %s5764_s27 }
 0x438   : > { %v2232_v4 = vpop.permute.xlu1 %2231  ;;  %1881 = vrot.lane.b32.xlu1 %v5574_v55, %s5762_s25 }
 0x439   : > { %2280 = vst.msk [vmem:[#allocation3] sm:$0xff] %vm2279_vm4, %v2232_v4  ;;  %v2865_v35 = vpop.permute.xlu0 %2864 }
 0x43a   : > { %2903 = vst.msk [vmem:[#allocation4 + $0x48] sm:$0xff] %vm2653_vm5, %v2865_v35 }
 0x43c   : > { %v2606_v0 = vpop.permute.xlu1 %2605  ;;  %2255 = vrot.lane.b32.xlu1 %v5576_v12, %s5763_s26 }
 0x43d   : > { %2654 = vst.msk [vmem:[#allocation3] sm:$0xff] %vm2653_vm5, %v2606_v0  ;;  %v1868_v45 = vpop.permute.xlu0 %1867 }
 0x43e   : > { %1911 = vst.msk [vmem:[#allocation3 + $0x28] sm:$0xff] %vm1905_vm3, %v1868_v45 }
 0x440   : > { %v2111_v26 = vpop.permute.xlu1 %2110  ;;  %2629 = vrot.lane.b32.xlu1 %v5578_v47, %s5764_s27 }
 0x441   : > { %2152 = vst.msk [vmem:[#allocation4 + $0x30] sm:$0xff] %vm1905_vm3, %v2111_v26  ;;  %v2242_v50 = vpop.permute.xlu0 %2241 }
 0x442   : > { %2285 = vst.msk [vmem:[#allocation3 + $0x28] sm:$0xff] %vm2279_vm4, %v2242_v50 }
 0x444   : > { %v2485_v14 = vpop.permute.xlu1 %2484  ;;  %1885 = vrot.lane.b32.xlu1 %v5580_v49, %s5762_s25 }
 0x445   : > { %2526 = vst.msk [vmem:[#allocation4 + $0x30] sm:$0xff] %vm2279_vm4, %v2485_v14  ;;  %v2616_v63 = vpop.permute.xlu0 %2615  ;;  %v7783_v14 = vmov 0.0  }
 0x446   : > { %2659 = vst.msk [vmem:[#allocation3 + $0x28] sm:$0xff] %vm2653_vm5, %v2616_v63 }
 0x448   : > { %v2859_v7 = vpop.permute.xlu1 %2858  ;;  %2259 = vrot.lane.b32.xlu1 %v5582_v6, %s5763_s26 }
 0x449   : > { %2900 = vst.msk [vmem:[#allocation4 + $0x30] sm:$0xff] %vm2653_vm5, %v2859_v7  ;;  %v2121_v42 = vpop.permute.xlu0 %2120 }
 0x44a   : > { %2157 = vst.msk [vmem:[#allocation4 + $0x58] sm:$0xff] %vm1905_vm3, %v2121_v42 }
 0x44c   : > { %v1862_v44 = vpop.permute.xlu1 %1861  ;;  %2633 = vrot.lane.b32.xlu1 %v5584_v38, %s5764_s27 }
 0x44d   : > { %1908 = vst.msk [vmem:[#allocation3 + $0x10] sm:$0xff] %vm1905_vm3, %v1862_v44  ;;  %v2495_v1 = vpop.permute.xlu0 %2494 }
 0x44e   : > { %2531 = vst.msk [vmem:[#allocation4 + $0x58] sm:$0xff] %vm2279_vm4, %v2495_v1 }
 0x450   : > { %v2236_v16 = vpop.permute.xlu1 %2235  ;;  %2874 = vrot.lane.b32.xlu1 %v2828_v36, %s5764_s27 }
 0x451   : > { %2282 = vst.msk [vmem:[#allocation3 + $0x10] sm:$0xff] %vm2279_vm4, %v2236_v16  ;;  %v2869_v3 = vpop.permute.xlu0 %2868 }
 0x452   : > { %2905 = vst.msk [vmem:[#allocation4 + $0x58] sm:$0xff] %vm2653_vm5, %v2869_v3 }
 0x454   : > { %v2610_v5 = vpop.permute.xlu1 %2609 }
 0x455   : > { %2656 = vst.msk [vmem:[#allocation3 + $0x10] sm:$0xff] %vm2653_vm5, %v2610_v5  ;;  %v1872_v43 = vpop.permute.xlu0 %1871 }
 0x456   : > { %1913 = vst.msk [vmem:[#allocation3 + $0x38] sm:$0xff] %vm1905_vm3, %v1872_v43 }
 0x458   : > { %v2115_v61 = vpop.permute.xlu1 %2114 }
 0x459   : > { %2154 = vst.msk [vmem:[#allocation4 + $0x40] sm:$0xff] %vm1905_vm3, %v2115_v61  ;;  %v2246_v17 = vpop.permute.xlu0 %2245 }
 0x45a   : > { %2287 = vst.msk [vmem:[#allocation3 + $0x38] sm:$0xff] %vm2279_vm4, %v2246_v17 }
 0x45c   : > { %v2489_v53 = vpop.permute.xlu1 %2488 }
 0x45d   : > { %2528 = vst.msk [vmem:[#allocation4 + $0x40] sm:$0xff] %vm2279_vm4, %v2489_v53  ;;  %v2620_v19 = vpop.permute.xlu0 %2619 }
 0x45e   : > { %2661 = vst.msk [vmem:[#allocation3 + $0x38] sm:$0xff] %vm2653_vm5, %v2620_v19 }
 0x460   : > { %v2863_v9 = vpop.permute.xlu1 %2862 }
 0x461   : > { %2902 = vst.msk [vmem:[#allocation4 + $0x40] sm:$0xff] %vm2653_vm5, %v2863_v9  ;;  %v2125_v54 = vpop.permute.xlu0 %2124 }
 0x462   : > { %2159 = vst.msk [vmem:[#allocation4 + $0x68] sm:$0xff] %vm1905_vm3, %v2125_v54 }
 0x464   : > { %v1866_v23 = vpop.permute.xlu1 %1865 }
 0x465   : > { %1910 = vst.msk [vmem:[#allocation3 + $0x20] sm:$0xff] %vm1905_vm3, %v1866_v23  ;;  %v2499_v51 = vpop.permute.xlu0 %2498 }
 0x466   : > { %2533 = vst.msk [vmem:[#allocation4 + $0x68] sm:$0xff] %vm2279_vm4, %v2499_v51 }
 0x468   : > { %v2240_v62 = vpop.permute.xlu1 %2239 }
 0x469   : > { %2284 = vst.msk [vmem:[#allocation3 + $0x20] sm:$0xff] %vm2279_vm4, %v2240_v62  ;;  %v2873_v15 = vpop.permute.xlu0 %2872 }
 0x46a   : > { %2907 = vst.msk [vmem:[#allocation4 + $0x68] sm:$0xff] %vm2653_vm5, %v2873_v15 }
 0x46c   : > { %v2614_v37 = vpop.permute.xlu1 %2613 }
 0x46d   : > { %2658 = vst.msk [vmem:[#allocation3 + $0x20] sm:$0xff] %vm2653_vm5, %v2614_v37  ;;  %v1876_v8 = vpop.permute.xlu0 %1875 }
 0x46e   : > { %1915 = vst.msk [vmem:[#allocation3 + $0x48] sm:$0xff] %vm1905_vm3, %v1876_v8 }
 0x470   : > { %v2119_v46 = vpop.permute.xlu1 %2118 }
 0x471   : > { %2156 = vst.msk [vmem:[#allocation4 + $0x50] sm:$0xff] %vm1905_vm3, %v2119_v46  ;;  %v2250_v52 = vpop.permute.xlu0 %2249 }
 0x472   : > { %2289 = vst.msk [vmem:[#allocation3 + $0x48] sm:$0xff] %vm2279_vm4, %v2250_v52 }
 0x474   : > { %v2493_v40 = vpop.permute.xlu1 %2492 }
 0x475   : > { %2530 = vst.msk [vmem:[#allocation4 + $0x50] sm:$0xff] %vm2279_vm4, %v2493_v40  ;;  %v2624_v18 = vpop.permute.xlu0 %2623 }
 0x476   : > { %2663 = vst.msk [vmem:[#allocation3 + $0x48] sm:$0xff] %vm2653_vm5, %v2624_v18 }
 0x478   : > { %v2867_v22 = vpop.permute.xlu1 %2866 }
 0x479   : > { %2904 = vst.msk [vmem:[#allocation4 + $0x50] sm:$0xff] %vm2653_vm5, %v2867_v22 }
 0x47c   : > { %v1870_v39 = vpop.permute.xlu1 %1869 }
 0x47d   : > { %1912 = vst.msk [vmem:[#allocation3 + $0x30] sm:$0xff] %vm1905_vm3, %v1870_v39  ;;  %v2129_v60 = vpop.permute.xlu0 %2128 }
 0x47e   : > { %2161 = vst.msk [vmem:[#allocation4 + $0x78] sm:$0xff] %vm1905_vm3, %v2129_v60 }
 0x480   : > { %v2244_v28 = vpop.permute.xlu1 %2243 }
 0x481   : > { %2286 = vst.msk [vmem:[#allocation3 + $0x30] sm:$0xff] %vm2279_vm4, %v2244_v28  ;;  %v2503_v27 = vpop.permute.xlu0 %2502 }
 0x482   : > { %2535 = vst.msk [vmem:[#allocation4 + $0x78] sm:$0xff] %vm2279_vm4, %v2503_v27 }
 0x484   : > { %v2618_v30 = vpop.permute.xlu1 %2617 }
 0x485   : > { %2660 = vst.msk [vmem:[#allocation3 + $0x30] sm:$0xff] %vm2653_vm5, %v2618_v30  ;;  %v1880_v34 = vpop.permute.xlu0 %1879 }
 0x486   : > { %1917 = vst.msk [vmem:[#allocation3 + $0x58] sm:$0xff] %vm1905_vm3, %v1880_v34 }
 0x488   : > { %v2123_v59 = vpop.permute.xlu1 %2122 }
 0x489   : > { %2158 = vst.msk [vmem:[#allocation4 + $0x60] sm:$0xff] %vm1905_vm3, %v2123_v59  ;;  %v2254_v41 = vpop.permute.xlu0 %2253 }
 0x48a   : > { %2291 = vst.msk [vmem:[#allocation3 + $0x58] sm:$0xff] %vm2279_vm4, %v2254_v41 }
 0x48c   : > { %v2497_v32 = vpop.permute.xlu1 %2496 }
 0x48d   : > { %2532 = vst.msk [vmem:[#allocation4 + $0x60] sm:$0xff] %vm2279_vm4, %v2497_v32  ;;  %v2628_v25 = vpop.permute.xlu0 %2627 }
 0x48e   : > { %2665 = vst.msk [vmem:[#allocation3 + $0x58] sm:$0xff] %vm2653_vm5, %v2628_v25 }
 0x490   : > { %v2871_v13 = vpop.permute.xlu1 %2870 }
 0x491   : > { %2906 = vst.msk [vmem:[#allocation4 + $0x60] sm:$0xff] %vm2653_vm5, %v2871_v13  ;;  %v1884_v58 = vpop.permute.xlu0 %1883 }
 0x492   : > { %1919 = vst.msk [vmem:[#allocation3 + $0x68] sm:$0xff] %vm1905_vm3, %v1884_v58 }
 0x494   : > { %v1874_v29 = vpop.permute.xlu1 %1873 }
 0x495   : > { %1914 = vst.msk [vmem:[#allocation3 + $0x40] sm:$0xff] %vm1905_vm3, %v1874_v29  ;;  %v2258_v48 = vpop.permute.xlu0 %2257 }
 0x496   : > { %2293 = vst.msk [vmem:[#allocation3 + $0x68] sm:$0xff] %vm2279_vm4, %v2258_v48 }
 0x498   : > { %v2248_v33 = vpop.permute.xlu1 %2247 }
 0x499   : > { %2288 = vst.msk [vmem:[#allocation3 + $0x40] sm:$0xff] %vm2279_vm4, %v2248_v33  ;;  %v2632_v11 = vpop.permute.xlu0 %2631 }
 0x49a   : > { %2667 = vst.msk [vmem:[#allocation3 + $0x68] sm:$0xff] %vm2653_vm5, %v2632_v11 }
 0x49c   : > { %v2622_v21 = vpop.permute.xlu1 %2621 }
 0x49d   : > { %2662 = vst.msk [vmem:[#allocation3 + $0x40] sm:$0xff] %vm2653_vm5, %v2622_v21  ;;  %v1888_v2 = vpop.permute.xlu0 %1887 }
 0x49e   : > { %1921 = vst.msk [vmem:[#allocation3 + $0x78] sm:$0xff] %vm1905_vm3, %v1888_v2 }
 0x4a0   : > { %v2127_v24 = vpop.permute.xlu1 %2126 }
 0x4a1   : > { %2160 = vst.msk [vmem:[#allocation4 + $0x70] sm:$0xff] %vm1905_vm3, %v2127_v24  ;;  %v2262_v57 = vpop.permute.xlu0 %2261 }
 0x4a2   : > { %2295 = vst.msk [vmem:[#allocation3 + $0x78] sm:$0xff] %vm2279_vm4, %v2262_v57 }
 0x4a4   : > { %v2501_v55 = vpop.permute.xlu1 %2500 }
 0x4a5   : > { %2534 = vst.msk [vmem:[#allocation4 + $0x70] sm:$0xff] %vm2279_vm4, %v2501_v55  ;;  %v2636_v4 = vpop.permute.xlu0 %2635 }
 0x4a6   : > { %2669 = vst.msk [vmem:[#allocation3 + $0x78] sm:$0xff] %vm2653_vm5, %v2636_v4 }
 0x4a8   : > { %v1878_v35 = vpop.permute.xlu1 %1877 }
 0x4a9   : > { %1916 = vst.msk [vmem:[#allocation3 + $0x50] sm:$0xff] %vm1905_vm3, %v1878_v35  ;;  %v2877_v20 = vpop.permute.xlu0 %2876 }
 0x4aa   : > { %2909 = vst.msk [vmem:[#allocation4 + $0x78] sm:$0xff] %vm2653_vm5, %v2877_v20 }
 0x4ac   : > { %v2252_v10 = vpop.permute.xlu1 %2251 }
 0x4ad   : > { %2290 = vst.msk [vmem:[#allocation3 + $0x50] sm:$0xff] %vm2279_vm4, %v2252_v10 }
 0x4b0   : > { %v2626_v12 = vpop.permute.xlu1 %2625 }
 0x4b1   : > { %2664 = vst.msk [vmem:[#allocation3 + $0x50] sm:$0xff] %vm2653_vm5, %v2626_v12 }
 0x4b4   : > { %v1882_v0 = vpop.permute.xlu1 %1881 }
 0x4b5   : > { %1918 = vst.msk [vmem:[#allocation3 + $0x60] sm:$0xff] %vm1905_vm3, %v1882_v0 }
 0x4b8   : > { %v2256_v45 = vpop.permute.xlu1 %2255 }
 0x4b9   : > { %2292 = vst.msk [vmem:[#allocation3 + $0x60] sm:$0xff] %vm2279_vm4, %v2256_v45 }
 0x4bc   : > { %v2630_v31 = vpop.permute.xlu1 %2629 }
 0x4bd   : > { %2666 = vst.msk [vmem:[#allocation3 + $0x60] sm:$0xff] %vm2653_vm5, %v2630_v31 }
 0x4c0   : > { %v1886_v47 = vpop.permute.xlu1 %1885 }
 0x4c1   : > { %1920 = vst.msk [vmem:[#allocation3 + $0x70] sm:$0xff] %vm1905_vm3, %v1886_v47 }
 0x4c4   : > { %v2260_v26 = vpop.permute.xlu1 %2259 }
 0x4c5   : > { %2294 = vst.msk [vmem:[#allocation3 + $0x70] sm:$0xff] %vm2279_vm4, %v2260_v26 }
 0x4c8   : > { %v2634_v50 = vpop.permute.xlu1 %2633 }
 0x4c9   : > { %2668 = vst.msk [vmem:[#allocation3 + $0x70] sm:$0xff] %vm2653_vm5, %v2634_v50 }
 0x4cc   : > { %v2875_v49 = vpop.permute.xlu1 %2874 }
 0x4cd   : > { %2908 = vst.msk [vmem:[#allocation4 + $0x70] sm:$0xff] %vm2653_vm5, %v2875_v49 }
 0x4ce LB: >> { %s7792_s17 = sshll.u32 %s5749_s16, 3  ;;  %v2925_v63 = vrot.slane %v5745_v14, 7  ;;  %v9012_v17 = vld [vmem:[#allocation80_spill] sm:$0xff]  ;;  %s2917_s16 = sadd.s32 1, %s5749_s16   ;;  %s5749_s16 = sphi %s7785_s16, %s2917_s16   ;;  %v5745_v14 = vphi %v7783_v14, %v3005_v14  }
 0x4cf   : >> { %s2920_s18 = scalar_lea.vmem [#allocation3], %s7792_s17  ;;  %s2922_s19 = scalar_lea.vmem [#allocation4], %s7792_s17  ;;  %v2932_v53 = vsub.s32 0, %v9012_v17  ;;  %v2943_v9 = vsub.s32 1, %v9012_v17  ;;  %vm2929_vm6 = vcmp.eq.s32.totalorder %v9012_v17, 0  ;;  %v2954_v62 = vsub.s32 2, %v9012_v17 }
 0x4d0   : >> { %v2921_v6 = vld [vmem:[%s2920_s18] sm:$0xff]  ;;  %vm2940_vm7 = vcmp.eq.s32.totalorder %v9012_v17, 1  ;;  %v2965_v46 = vsub.s32 3, %v9012_v17  ;;  %vm2951_vm8 = vcmp.eq.s32.totalorder %v9012_v17, 2  ;;  %v2976_v39 = vsub.s32 4, %v9012_v17  ;;  %s3012_s20 = scalar_lea.vmem [#allocation5], %s7792_s17 }
 0x4d1   : >> { %v2927_v42 = vmul.f32 %v2925_v63, %v2921_v6  ;;  %vm2962_vm9 = vcmp.eq.s32.totalorder %v9012_v17, 3  ;;  %v2987_v30 = vsub.s32 5, %v9012_v17  ;;  %vm2973_vm10 = vcmp.eq.s32.totalorder %v9012_v17, 4  ;;  %p2914_p4 = scmp.ge.s32.totalorder %s2917_s16, 16  }
 0x4d2   : >> { %v2998_v25 = vsub.s32 6, %v9012_v17  ;;  %vm2984_vm11 = vcmp.eq.s32.totalorder %v9012_v17, 5  ;;  %vm2995_vm12 = vcmp.eq.s32.totalorder %v9012_v17, 6  ;;  %v3009_v2 = vsub.s32 7, %v9012_v17  ;;  %v9013_v35 = vld [vmem:[#allocation41_spill] sm:$0xff] (%p2914_p4)  ;;  %v9014_v20 = vld [vmem:[#allocation39_spill] sm:$0xff] (%p2914_p4) }
 0x4d3   : >> { %vm3006_vm13 = vcmp.eq.s32.totalorder %v9012_v17, 7  ;;  %v5765_v4 = vmov (%p2914_p4), 5   ;;  %v9015_v10 = vld [vmem:[#allocation40_spill] sm:$0xff] (%p2914_p4)  ;;  %v9016_v12 = vld [vmem:[#allocation38_spill] sm:$0xff] (%p2914_p4)  ;;  %v9018_v45 = vld [vmem:[#allocation43_spill] sm:$0xff] (%p2914_p4)  ;;  %vm4538_vm14 = vcmask (%p2914_p4), 64512  }
 0x4d4   : >> { %v2923_v7 = vld [vmem:[%s2922_s19] sm:$0xff]  ;;  %5592 = vset.pattern.permute.xlu1 (%p2914_p4), %v5765_v4  ;;  %5591 = vset.pattern.permute.xlu0 (%p2914_p4), %v5765_v4  ;;  %v9017_v0 = vld [vmem:[#allocation42_spill] sm:$0xff] (%p2914_p4)  ;;  %v9019_v31 = vld [vmem:[#allocation44_spill] sm:$0xff] (%p2914_p4)  ;;  %vm4732_vm15 = vcmask (%p2914_p4), 23552  }
 0x4d5   : >> { %v2928_v38 = vadd.f32 %v2927_v42, %v2923_v7  ;;  %3062 = vperm.xlu1 (%p2914_p4), %5592, %v9013_v35   ;;  %3054 = vperm.xlu0 (%p2914_p4), %5591, %v9014_v20   ;;  %v9020_v47 = vld [vmem:[#allocation45_spill] sm:$0xff] (%p2914_p4)  ;;  %v9021_v26 = vld [vmem:[#allocation46_spill] sm:$0xff] (%p2914_p4)  ;;  %v9022_v50 = vld [vmem:[#allocation47_spill] sm:$0xff] (%p2914_p4) }
 0x4d6   : > { %v9023_v49 = vld [vmem:[#allocation48_spill] sm:$0xff] (%p2914_p4)  ;;  %v9025_v63 = vld [vmem:[#allocation50_spill] sm:$0xff] (%p2914_p4)  ;;  %v9028_v42 = vld [vmem:[#allocation61_spill] sm:$0xff] (%p2914_p4) }
 0x4d7   : >> { %v2936_v44 = vrot.slane %v2928_v38, 7  ;;  %v2933_v23 = vrot.slane %v2928_v38, %v2932_v53  ;;  %v8849_v38 = vmov (%p2914_p4), 14  }
 0x4d9   : >> { %v2938_v1 = vmul.f32 %v2936_v44, %v2921_v6  ;;  %v2934_v8 = vsel %vm2929_vm6, %v2933_v23, 0.0  ;;  %3066 = vperm.xlu1 (%p2914_p4), %5592, %v9015_v10   ;;  %3058 = vperm.xlu0 (%p2914_p4), %5591, %v9016_v12   ;;  %v8858_v44 = vmov (%p2914_p4), 15  }
 0x4db   : >> { %v2939_v36 = vadd.f32 %v2938_v1, %v2923_v7  ;;  %v8860_v1 = vmov (%p2914_p4), 6  }
 0x4dd   : >> { %v2947_v16 = vrot.slane %v2939_v36, 7  ;;  %v2944_v15 = vrot.slane %v2939_v36, %v2943_v9  ;;  %3074 = vperm.xlu1 (%p2914_p4), %5592, %v9017_v0   ;;  %3070 = vperm.xlu0 (%p2914_p4), %5591, %v9018_v45   ;;  %v8850_v36 = vmov (%p2914_p4), 16  }
 0x4df   : >> { %v2949_v3 = vmul.f32 %v2947_v16, %v2921_v6  ;;  %v2945_v18 = vsel %vm2940_vm7, %v2944_v15, %v2934_v8  ;;  %v8856_v16 = vmov (%p2914_p4), 7  }
 0x4e1   : >> { %v2950_v5 = vadd.f32 %v2949_v3, %v2923_v7  ;;  %3082 = vperm.xlu1 (%p2914_p4), %5592, %v9019_v31   ;;  %3078 = vperm.xlu0 (%p2914_p4), %5591, %v9020_v47   ;;  %v8854_v3 = vmov (%p2914_p4), 17  }
 0x4e3   : >> { %v2958_v43 = vrot.slane %v2950_v5, 7  ;;  %v2955_v40 = vrot.slane %v2950_v5, %v2954_v62  ;;  %v8852_v5 = vmov (%p2914_p4), 8  }
 0x4e5   : >> { %v2960_v61 = vmul.f32 %v2958_v43, %v2921_v6  ;;  %v2956_v27 = vsel %vm2951_vm8, %v2955_v40, %v2945_v18  ;;  %3090 = vperm.xlu1 (%p2914_p4), %5592, %v9021_v26   ;;  %3086 = vperm.xlu0 (%p2914_p4), %5591, %v9022_v50  }
 0x4e7   : >> { %v2961_v19 = vadd.f32 %v2960_v61, %v2923_v7 }
 0x4e9   : >> { %v2969_v54 = vrot.slane %v2961_v19, 7  ;;  %v2966_v60 = vrot.slane %v2961_v19, %v2965_v46  ;;  %3098 = vperm.xlu1 (%p2914_p4), %5592, %v9023_v49  }
 0x4eb   : >> { %v2971_v51 = vmul.f32 %v2969_v54, %v2921_v6  ;;  %v2967_v41 = vsel %vm2962_vm9, %v2966_v60, %v2956_v27 }
 0x4ed   : >> { %v2972_v37 = vadd.f32 %v2971_v51, %v2923_v7  ;;  %3106 = vperm.xlu1 (%p2914_p4), %5592, %v9025_v63  }
 0x4ef   : >> { %v2980_v52 = vrot.slane %v2972_v37, 7  ;;  %v2977_v59 = vrot.slane %v2972_v37, %v2976_v39 }
 0x4f1   : >> { %v2982_v22 = vmul.f32 %v2980_v52, %v2921_v6  ;;  %v2978_v29 = vsel %vm2973_vm10, %v2977_v59, %v2967_v41 }
 0x4f3   : >> { %v2983_v28 = vadd.f32 %v2982_v22, %v2923_v7 }
 0x4f5   : >> { %v2991_v34 = vrot.slane %v2983_v28, 7  ;;  %v2988_v13 = vrot.slane %v2983_v28, %v2987_v30 }
 0x4f7   : >> { %v2993_v32 = vmul.f32 %v2991_v34, %v2921_v6  ;;  %v2989_v11 = vsel %vm2984_vm11, %v2988_v13, %v2978_v29 }
 0x4f9   : >> { %v2994_v58 = vadd.f32 %v2993_v32, %v2923_v7 }
 0x4fb   : >> { %v3002_v48 = vrot.slane %v2994_v58, 7  ;;  %v2999_v33 = vrot.slane %v2994_v58, %v2998_v25 }
 0x4fd   : >> { %v3004_v21 = vmul.f32 %v3002_v48, %v2921_v6  ;;  %v3000_v24 = vsel %vm2995_vm12, %v2999_v33, %v2989_v11  ;;  %v9026_v6 = vld [vmem:[#allocation52_spill] sm:$0xff] (%p2914_p4) }
 0x4fe   : > { %2916 = sbr.rel (!%p2914_p4) target bundleno = 1230 (0x4ce), region = 108 }
 0x4ff   : >> { %v3005_v14 = vadd.f32 %v3004_v21, %v2923_v7   ;;  %v9027_v7 = vld [vmem:[#allocation60_spill] sm:$0xff] (%p2914_p4) }
 0x500   : > { %3114 = vperm.xlu1 (%p2914_p4), %5592, %v9027_v7  }
 0x501   : >> { %v3010_v57 = vrot.slane %v3005_v14, %v3009_v2  ;;  %v9024_v14 = vld [vmem:[#allocation49_spill] sm:$0xff] (%p2914_p4) }
 0x502   : > { %3094 = vperm.xlu0 (%p2914_p4), %5591, %v9024_v14  }
 0x503   : >> { %v3011_v55 = vsel %vm3006_vm13, %v3010_v57, %v3000_v24 }
 0x504   : >> { %3013 = vst [vmem:[%s3012_s20] sm:$0xff] %v3011_v55  ;;  %5593 = vset.pattern.permute.xlu1 (%p2914_p4), %v8849_v38 }
 0x505   : > { %3122 = vperm.xlu1 %5593, %v9016_v12  }
 0x506   : > { %3102 = vperm.xlu0 %5591, %v9026_v6  }
 0x509   : > { %3126 = vperm.xlu1 %5593, %v9013_v35  }
 0x50a   : > { %3110 = vperm.xlu0 %5591, %v9028_v42  }
 0x50d   : > { %3134 = vperm.xlu1 %5593, %v9018_v45  }
 0x50e   : > { %5595 = vset.pattern.permute.xlu0 %v8858_v44 }
 0x50f   : > { %3294 = vperm.xlu0 %5595, %v9014_v20  }
 0x511   : > { %5594 = vset.pattern.permute.xlu1 %v8860_v1 }
 0x512   : > { %3230 = vperm.xlu1 %5594, %v9014_v20  }
 0x513   : > { %3306 = vperm.xlu0 %5595, %v9015_v10  }
 0x516   : > { %3234 = vperm.xlu1 %5594, %v9016_v12  }
 0x517   : > { %3314 = vperm.xlu0 %5595, %v9017_v0  }
 0x51a   : > { %5596 = vset.pattern.permute.xlu1 %v8858_v44 }
 0x51b   : > { %3322 = vperm.xlu0 %5595, %v9019_v31   ;;  %3298 = vperm.xlu1 %5596, %v9016_v12  }
 0x51f   : > { %3330 = vperm.xlu0 %5595, %v9021_v26   ;;  %5597 = vset.pattern.permute.xlu1 %v8850_v36 }
 0x520   : > { %3598 = vperm.xlu1 %5597, %v9014_v20  }
 0x523   : > { %3338 = vperm.xlu0 %5595, %v9023_v49  }
 0x524   : > { %5598 = vset.pattern.permute.xlu1 %v8856_v16 }
 0x525   : > { %3538 = vperm.xlu1 %5598, %v9016_v12  }
 0x527   : > { %3346 = vperm.xlu0 %5595, %v9025_v63  }
 0x529   : > { %5599 = vset.pattern.permute.xlu1 %v8860_v1 }
 0x52a   : > { %3238 = vperm.xlu1 %5599, %v9013_v35  }
 0x52b   : > { %3354 = vperm.xlu0 %5595, %v9027_v7  }
 0x52e   : > { %5600 = vset.pattern.permute.xlu1 %v8858_v44 }
 0x52f   : > { %5651 = vset.pattern.permute.xlu0 %v8856_v16  ;;  %3302 = vperm.xlu1 %5600, %v9013_v35  }
 0x530   : > { %3534 = vperm.xlu0 %5651, %v9014_v20  }
 0x533   : > { %5601 = vset.pattern.permute.xlu1 %v8854_v3 }
 0x534   : > { %3542 = vperm.xlu0 %5651, %v9013_v35   ;;  %3902 = vperm.xlu1 %5601, %v9014_v20  }
 0x538   : > { %3550 = vperm.xlu0 %5651, %v9018_v45   ;;  %5602 = vset.pattern.permute.xlu1 %v8860_v1 }
 0x539   : > { %3242 = vperm.xlu1 %5602, %v9015_v10  }
 0x53c   : > { %3558 = vperm.xlu0 %5651, %v9020_v47  }
 0x53d   : > { %5603 = vset.pattern.permute.xlu1 %v8852_v5 }
 0x53e   : > { %3842 = vperm.xlu1 %5603, %v9016_v12  }
 0x540   : > { %3566 = vperm.xlu0 %5651, %v9022_v50  }
 0x542   : > { %5604 = vset.pattern.permute.xlu1 %v8854_v3 }
 0x543   : > { %3906 = vperm.xlu1 %5604, %v9016_v12  }
 0x544   : > { %3574 = vperm.xlu0 %5651, %v9024_v14  }
 0x547   : > { %5605 = vset.pattern.permute.xlu1 %v8850_v36 }
 0x548   : > { %3582 = vperm.xlu0 %5651, %v9026_v6   ;;  %3606 = vperm.xlu1 %5605, %v9013_v35  }
 0x54c   : > { %3590 = vperm.xlu0 %5651, %v9028_v42   ;;  %5606 = vset.pattern.permute.xlu1 %v8856_v16 }
 0x54d   : > { %3546 = vperm.xlu1 %5606, %v9015_v10  }
 0x550   : > { %5654 = vset.pattern.permute.xlu0 %v8850_v36 }
 0x551   : > { %3602 = vperm.xlu0 %5654, %v9016_v12   ;;  %5607 = vset.pattern.permute.xlu1 %v8860_v1 }
 0x552   : > { %3246 = vperm.xlu1 %5607, %v9018_v45  }
 0x554   : > { %v7897_v43 = vpop.permute.xlu1 %3062  ;;  %v7900_v61 = vpop.permute.xlu0 %3054 }
 0x555   : > { %3610 = vperm.xlu0 %5654, %v9015_v10   ;;  %9029 = vst [vmem:[#allocation55_spill] sm:$0xff] %v7897_v43 }
 0x556   : > { %5608 = vset.pattern.permute.xlu1 %v8858_v44 }
 0x557   : > { %3310 = vperm.xlu1 %5608, %v9018_v45  }
 0x558   : > { %v7904_v17 = vpop.permute.xlu1 %3066  ;;  %v7907_v53 = vpop.permute.xlu0 %3058 }
 0x559   : > { %3618 = vperm.xlu0 %5654, %v9017_v0   ;;  %9030 = vst [vmem:[#allocation51_spill] sm:$0xff] %v7904_v17 }
 0x55b   : > { %5609 = vset.pattern.permute.xlu1 %v8854_v3 }
 0x55c   : > { %3910 = vperm.xlu1 %5609, %v9013_v35   ;;  %v7912_v19 = vpop.permute.xlu1 %3074  ;;  %v7914_v9 = vpop.permute.xlu0 %3070 }
 0x55d   : > { %3626 = vperm.xlu0 %5654, %v9019_v31   ;;  %9031 = vst [vmem:[#allocation59_spill] sm:$0xff] %v7912_v19  ;;  %9032 = vst [vmem:[#allocation56_spill] sm:$0xff] %v7914_v9  ;;  %v9048_v19 = vmov 7  }
 0x560   : > { %5610 = vset.pattern.permute.xlu1 %v8860_v1  ;;  %v7918_v54 = vpop.permute.xlu1 %3082  ;;  %v7920_v23 = vpop.permute.xlu0 %3078 }
 0x561   : > { %3634 = vperm.xlu0 %5654, %v9021_v26   ;;  %3250 = vperm.xlu1 %5610, %v9017_v0   ;;  %9033 = vst [vmem:[#allocation53_spill] sm:$0xff] %v7918_v54  ;;  %9034 = vst [vmem:[#allocation63_spill] sm:$0xff] %v7920_v23 }
 0x564   : > { %v7924_v51 = vpop.permute.xlu1 %3090  ;;  %v7926_v62 = vpop.permute.xlu0 %3086 }
 0x565   : > { %3642 = vperm.xlu0 %5654, %v9023_v49   ;;  %5611 = vset.pattern.permute.xlu1 %v8852_v5  ;;  %9035 = vst [vmem:[#allocation57_spill] sm:$0xff] %v7924_v51  ;;  %9036 = vst [vmem:[#allocation54_spill] sm:$0xff] %v7926_v62  ;;  %v9047_v51 = vmov 16  }
 0x566   : > { %3850 = vperm.xlu1 %5611, %v9015_v10  }
 0x568   : > { %v7931_v15 = vpop.permute.xlu1 %3098 }
 0x569   : > { %3650 = vperm.xlu0 %5654, %v9025_v63   ;;  %9037 = vst [vmem:[#allocation74_spill] sm:$0xff] %v7931_v15 }
 0x56a   : > { %5612 = vset.pattern.permute.xlu1 %v8854_v3 }
 0x56b   : > { %3914 = vperm.xlu1 %5612, %v9015_v10  }
 0x56c   : > { %v7938_v8 = vpop.permute.xlu1 %3106 }
 0x56d   : > { %3658 = vperm.xlu0 %5654, %v9027_v7   ;;  %9039 = vst [vmem:[#allocation62_spill] sm:$0xff] %v7938_v8  ;;  %v9046_v8 = vmov 8  }
 0x56f   : > { %5613 = vset.pattern.permute.xlu1 %v8850_v36 }
 0x570   : > { %3614 = vperm.xlu1 %5613, %v9018_v45  }
 0x571   : > { %5657 = vset.pattern.permute.xlu0 %v8852_v5 }
 0x572   : > { %3838 = vperm.xlu0 %5657, %v9014_v20  }
 0x574   : > { %5614 = vset.pattern.permute.xlu1 %v8856_v16 }
 0x575   : > { %3554 = vperm.xlu1 %5614, %v9017_v0  }
 0x576   : > { %3846 = vperm.xlu0 %5657, %v9013_v35  }
 0x579   : > { %5615 = vset.pattern.permute.xlu1 %v8860_v1 }
 0x57a   : > { %3854 = vperm.xlu0 %5657, %v9018_v45   ;;  %3254 = vperm.xlu1 %5615, %v9020_v47  }
 0x57e   : > { %3862 = vperm.xlu0 %5657, %v9020_v47   ;;  %5616 = vset.pattern.permute.xlu1 %v8858_v44 }
 0x57f   : > { %3318 = vperm.xlu1 %5616, %v9020_v47   ;;  %v7945_v52 = vpop.permute.xlu1 %3114 }
 0x580   : > { %9041 = vst [vmem:[#allocation75_spill] sm:$0xff] %v7945_v52 }
 0x581   : > { %v7933_v37 = vpop.permute.xlu0 %3094 }
 0x582   : > { %9038 = vst [vmem:[#allocation64_spill] sm:$0xff] %v7933_v37  ;;  %3870 = vperm.xlu0 %5657, %v9022_v50  }
 0x583   : > { %5617 = vset.pattern.permute.xlu1 %v8854_v3 }
 0x584   : > { %3918 = vperm.xlu1 %5617, %v9018_v45   ;;  %v7952_v18 = vpop.permute.xlu1 %3122 }
 0x585   : > { %v7940_v46 = vpop.permute.xlu0 %3102 }
 0x586   : > { %9040 = vst [vmem:[#allocation71_spill] sm:$0xff] %v7940_v46  ;;  %3878 = vperm.xlu0 %5657, %v9024_v14  }
 0x588   : > { %5618 = vset.pattern.permute.xlu1 %v8860_v1  ;;  %v7958_v39 = vpop.permute.xlu1 %3126 }
 0x589   : > { %v7947_v40 = vpop.permute.xlu0 %3110  ;;  %9043 = vst [vmem:[#allocation65_spill] sm:$0xff] %v7958_v39  ;;  %3258 = vperm.xlu1 %5618, %v9019_v31   ;;  %v9049_v39 = vmov 6  }
 0x58a   : > { %9042 = vst [vmem:[#allocation66_spill] sm:$0xff] %v7947_v40  ;;  %3886 = vperm.xlu0 %5657, %v9026_v6   ;;  %v9045_v40 = vmov 17  }
 0x58c   : > { %v7965_v28 = vpop.permute.xlu1 %3134 }
 0x58d   : > { %9044 = vst [vmem:[#allocation76_spill] sm:$0xff] %v7965_v28  ;;  %5619 = vset.pattern.permute.xlu1 %v8852_v5 }
 0x58e   : > { %3898 = vperm.xlu0 %5657, %v9027_v7   ;;  %v7955_v22 = vpop.permute.xlu0 %3294  ;;  %3858 = vperm.xlu1 %5619, %v9017_v0  }
 0x591   : > { %v7974_v34 = vpop.permute.xlu1 %3230 }
 0x592   : > { %5660 = vset.pattern.permute.xlu0 %v8849_v38  ;;  %v7961_v60 = vpop.permute.xlu0 %3306  ;;  %5620 = vset.pattern.permute.xlu1 %v8854_v3 }
 0x593   : > { %3118 = vperm.xlu0 %5660, %v9014_v20   ;;  %3922 = vperm.xlu1 %5620, %v9017_v0  }
 0x595   : > { %v3235_v41 = vpop.permute.xlu1 %3234 }
 0x596   : > { %v7967_v27 = vpop.permute.xlu0 %3314 }
 0x597   : > { %3130 = vperm.xlu0 %5660, %v9015_v10   ;;  %5621 = vset.pattern.permute.xlu1 %v8850_v36 }
 0x598   : > { %3622 = vperm.xlu1 %5621, %v9020_v47  }
 0x59a   : > { %v7972_v30 = vpop.permute.xlu0 %3322  ;;  %v3299_v25 = vpop.permute.xlu1 %3298 }
 0x59b   : > { %3138 = vperm.xlu0 %5660, %v9017_v0   ;;  %v3358_v13 = vsel %vm1175_vm2, %v3235_v41, %v3299_v25 }
 0x59c   : > { %5622 = vset.pattern.permute.xlu1 %v8856_v16 }
 0x59d   : > { %3562 = vperm.xlu1 %5622, %v9019_v31  }
 0x59e   : > { %v7979_v59 = vpop.permute.xlu0 %3330 }
 0x59f   : > { %3391 = vrot.lane.b32.xlu0 %v3358_v13, %s5762_s25  ;;  %v7992_v29 = vpop.permute.xlu1 %3598 }
 0x5a1   : > { %5623 = vset.pattern.permute.xlu1 %v8860_v1 }
 0x5a2   : > { %v7983_v32 = vpop.permute.xlu0 %3338  ;;  %3262 = vperm.xlu1 %5623, %v9022_v50  }
 0x5a4   : > { %v3539_v33 = vpop.permute.xlu1 %3538 }
 0x5a6   : > { %v7989_v58 = vpop.permute.xlu0 %3346  ;;  %5624 = vset.pattern.permute.xlu1 %v8858_v44 }
 0x5a7   : > { %3326 = vperm.xlu1 %5624, %v9022_v50  }
 0x5a9   : > { %v8002_v21 = vpop.permute.xlu1 %3238 }
 0x5aa   : > { %v7994_v48 = vpop.permute.xlu0 %3354 }
 0x5ab   : > { %5625 = vset.pattern.permute.xlu1 %v8854_v3 }
 0x5ac   : > { %3926 = vperm.xlu1 %5625, %v9020_v47  }
 0x5ae   : > { %v8010_v57 = vpop.permute.xlu1 %3302 }
 0x5af   : > { %v7998_v11 = vpop.permute.xlu0 %3534 }
 0x5b0   : > { %5626 = vset.pattern.permute.xlu1 %v8860_v1 }
 0x5b1   : > { %3266 = vperm.xlu1 %5626, %v9021_v26  }
 0x5b3   : > { %v8004_v2 = vpop.permute.xlu0 %3542  ;;  %v3903_v4 = vpop.permute.xlu1 %3902 }
 0x5b5   : > { %5627 = vset.pattern.permute.xlu1 %v8852_v5 }
 0x5b6   : > { %3866 = vperm.xlu1 %5627, %v9019_v31  }
 0x5b7   : > { %v8008_v24 = vpop.permute.xlu0 %3550 }
 0x5b8   : > { %v8020_v20 = vpop.permute.xlu1 %3242 }
 0x5ba   : > { %5628 = vset.pattern.permute.xlu1 %v8854_v3 }
 0x5bb   : > { %v8014_v55 = vpop.permute.xlu0 %3558  ;;  %3930 = vperm.xlu1 %5628, %v9019_v31  }
 0x5bd   : > { %v3843_v12 = vpop.permute.xlu1 %3842 }
 0x5bf   : > { %v8017_v35 = vpop.permute.xlu0 %3566  ;;  %5629 = vset.pattern.permute.xlu1 %v8850_v36 }
 0x5c0   : > { %3630 = vperm.xlu1 %5629, %v9022_v50  }
 0x5c2   : > { %v3907_v41 = vpop.permute.xlu1 %3906 }
 0x5c3   : > { %v8022_v10 = vpop.permute.xlu0 %3574  ;;  %v3966_v9 = vsel %vm1175_vm2, %v3843_v12, %v3907_v41 }
 0x5c4   : > { %5630 = vset.pattern.permute.xlu1 %v8856_v16 }
 0x5c5   : > { %3570 = vperm.xlu1 %5630, %v9021_v26  }
 0x5c7   : > { %v8026_v0 = vpop.permute.xlu0 %3582  ;;  %v8034_v13 = vpop.permute.xlu1 %3606 }
 0x5c9   : > { %5631 = vset.pattern.permute.xlu1 %v8860_v1 }
 0x5ca   : > { %3270 = vperm.xlu1 %5631, %v9024_v14  }
 0x5cb   : > { %v8030_v45 = vpop.permute.xlu0 %3590 }
 0x5cc   : > { %v3547_v5 = vpop.permute.xlu1 %3546 }
 0x5ce   : > { %5632 = vset.pattern.permute.xlu1 %v8858_v44 }
 0x5cf   : > { %3334 = vperm.xlu1 %5632, %v9024_v14  }
 0x5d0   : > { %v3603_v25 = vpop.permute.xlu0 %3602 }
 0x5d1   : > { %v3662_v38 = vsel %vm1175_vm2, %v3539_v33, %v3603_v25  ;;  %v8043_v16 = vpop.permute.xlu1 %3246 }
 0x5d2   : > { %3695 = vrot.lane.b32.xlu0 %v3662_v38, %s5763_s26 }
 0x5d3   : > { %5633 = vset.pattern.permute.xlu1 %v9045_v40 }
 0x5d4   : > { %v3611_v36 = vpop.permute.xlu0 %3610  ;;  %3934 = vperm.xlu1 %5633, %v9022_v50  }
 0x5d5   : > { %v3664_v17 = vsel %vm1175_vm2, %v3547_v5, %v3611_v36 }
 0x5d6   : > { %v8049_v38 = vpop.permute.xlu1 %3310 }
 0x5d8   : > { %v3619_v3 = vpop.permute.xlu0 %3618  ;;  %5634 = vset.pattern.permute.xlu1 %v8860_v1 }
 0x5d9   : > { %3274 = vperm.xlu1 %5634, %v9023_v49  }
 0x5db   : > { %v3911_v44 = vpop.permute.xlu1 %3910 }
 0x5dc   : > { %v8045_v52 = vpop.permute.xlu0 %3626 }
 0x5dd   : > { %5635 = vset.pattern.permute.xlu1 %v9046_v8 }
 0x5de   : > { %3874 = vperm.xlu1 %5635, %v9021_v26  }
 0x5e0   : > { %v8051_v33 = vpop.permute.xlu0 %3634  ;;  %v8061_v15 = vpop.permute.xlu1 %3250 }
 0x5e2   : > { %5636 = vset.pattern.permute.xlu1 %v9045_v40 }
 0x5e3   : > { %3938 = vperm.xlu1 %5636, %v9021_v26  }
 0x5e4   : > { %v8055_v25 = vpop.permute.xlu0 %3642 }
 0x5e5   : > { %v3851_v1 = vpop.permute.xlu1 %3850 }
 0x5e7   : > { %5637 = vset.pattern.permute.xlu1 %v9047_v51 }
 0x5e8   : > { %v8059_v46 = vpop.permute.xlu0 %3650  ;;  %3638 = vperm.xlu1 %5637, %v9024_v14  }
 0x5ea   : > { %v3915_v23 = vpop.permute.xlu1 %3914 }
 0x5eb   : > { %v3968_v36 = vsel %vm1175_vm2, %v3851_v1, %v3915_v23 }
 0x5ec   : > { %v8064_v37 = vpop.permute.xlu0 %3658  ;;  %5638 = vset.pattern.permute.xlu1 %v9048_v19 }
 0x5ed   : > { %3578 = vperm.xlu1 %5638, %v9023_v49  }
 0x5ef   : > { %v8077_v28 = vpop.permute.xlu1 %3614 }
 0x5f1   : > { %v3839_v62 = vpop.permute.xlu0 %3838  ;;  %5639 = vset.pattern.permute.xlu1 %v9049_v39 }
 0x5f2   : > { %v3965_v54 = vsel %vm1175_vm2, %v3839_v62, %v3903_v4  ;;  %3278 = vperm.xlu1 %5639, %v9026_v6   ;;  %v9050_v4 = vmov 15  }
 0x5f3   : > { %3997 = vrot.lane.b32.xlu0 %v3965_v54, %s5764_s27 }
 0x5f4   : > { %v3555_v54 = vpop.permute.xlu1 %3554 }
 0x5f5   : > { %v3847_v43 = vpop.permute.xlu0 %3846 }
 0x5f6   : > { %v3967_v62 = vsel %vm1175_vm2, %v3847_v43, %v3911_v44  ;;  %5640 = vset.pattern.permute.xlu1 %v9050_v4  ;;  %v3666_v44 = vsel %vm1175_vm2, %v3555_v54, %v3619_v3 }
 0x5f7   : > { %3999 = vrot.lane.b32.xlu0 %v3966_v9, %s5764_s27  ;;  %3342 = vperm.xlu1 %5640, %v9026_v6  }
 0x5f9   : > { %v8091_v5 = vpop.permute.xlu1 %3254  ;;  %v3855_v1 = vpop.permute.xlu0 %3854 }
 0x5fb   : > { %3699 = vrot.lane.b32.xlu0 %v3664_v17, %s5763_s26  ;;  %5641 = vset.pattern.permute.xlu1 %v9045_v40 }
 0x5fc   : > { %3942 = vperm.xlu1 %5641, %v9024_v14  }
 0x5fe   : > { %v8099_v43 = vpop.permute.xlu1 %3318 }
 0x5ff   : > { %4001 = vrot.lane.b32.xlu0 %v3967_v62, %s5764_s27 }
 0x600   : > { %5642 = vset.pattern.permute.xlu1 %v9049_v39 }
 0x601   : > { %3282 = vperm.xlu1 %5642, %v9025_v63  }
 0x603   : > { %4003 = vrot.lane.b32.xlu0 %v3968_v36, %s5764_s27  ;;  %v3919_v17 = vpop.permute.xlu1 %3918 }
 0x604   : > { %v3969_v9 = vsel %vm1175_vm2, %v3855_v1, %v3919_v17  ;;  %v3863_v17 = vpop.permute.xlu0 %3862 }
 0x605   : > { %5643 = vset.pattern.permute.xlu1 %v9046_v8 }
 0x606   : > { %3882 = vperm.xlu1 %5643, %v9023_v49  }
 0x607   : > { %3703 = vrot.lane.b32.xlu0 %v3666_v44, %s5763_s26 }
 0x608   : > { %v8108_v3 = vpop.permute.xlu1 %3258 }
 0x60a   : > { %5644 = vset.pattern.permute.xlu1 %v9045_v40 }
 0x60b   : > { %4005 = vrot.lane.b32.xlu0 %v3969_v9, %s5764_s27  ;;  %3946 = vperm.xlu1 %5644, %v9023_v49  }
 0x60d   : > { %v3859_v23 = vpop.permute.xlu1 %3858 }
 0x60f   : > { %5645 = vset.pattern.permute.xlu1 %v9047_v51 }
 0x610   : > { %3646 = vperm.xlu1 %5645, %v9026_v6  }
 0x612   : > { %v3923_v12 = vpop.permute.xlu1 %3922 }
 0x613   : > { %v3970_v41 = vsel %vm1175_vm2, %v3859_v23, %v3923_v12 }
 0x614   : > { %5646 = vset.pattern.permute.xlu1 %v9048_v19  ;;  %4007 = vrot.lane.b32.xlu0 %v3970_v41, %s5764_s27 }
 0x615   : > { %3586 = vperm.xlu1 %5646, %v9025_v63  }
 0x617   : > { %v8119_v54 = vpop.permute.xlu1 %3622 }
 0x619   : > { %5647 = vset.pattern.permute.xlu1 %v9049_v39 }
 0x61a   : > { %3286 = vperm.xlu1 %5647, %v9028_v42  }
 0x61c   : > { %v3563_v62 = vpop.permute.xlu1 %3562 }
 0x61d   : > { %v3668_v36 = vsel %vm1175_vm2, %v3563_v62, %v8045_v52 }
 0x61e   : > { %5648 = vset.pattern.permute.xlu1 %v9050_v4  ;;  %3707 = vrot.lane.b32.xlu0 %v3668_v36, %s5763_s26 }
 0x61f   : > { %3350 = vperm.xlu1 %5648, %v9028_v42  }
 0x621   : > { %v8129_v44 = vpop.permute.xlu1 %3262 }
 0x623   : > { %5649 = vset.pattern.permute.xlu1 %v9045_v40 }
 0x624   : > { %3950 = vperm.xlu1 %5649, %v9026_v6  }
 0x626   : > { %v8133_v1 = vpop.permute.xlu1 %3326 }
 0x628   : > { %5650 = vset.pattern.permute.xlu1 %v9049_v39 }
 0x629   : > { %3290 = vperm.xlu1 %5650, %v9027_v7  }
 0x62b   : > { %v3927_v52 = vpop.permute.xlu1 %3926 }
 0x62c   : > { %v3971_v4 = vsel %vm1175_vm2, %v3863_v17, %v3927_v52  ;;  %v9051_v17 = vmov 14   ;;  %v3871_v52 = vpop.permute.xlu0 %3870 }
 0x62d   : > { %5652 = vset.pattern.permute.xlu1 %v9046_v8  ;;  %4009 = vrot.lane.b32.xlu0 %v3971_v4, %s5764_s27 }
 0x62e   : > { %3890 = vperm.xlu1 %5652, %v9025_v63  }
 0x630   : > { %v8142_v9 = vpop.permute.xlu1 %3266 }
 0x632   : > { %5653 = vset.pattern.permute.xlu1 %v9045_v40 }
 0x633   : > { %3954 = vperm.xlu1 %5653, %v9025_v63  }
 0x635   : > { %v3867_v39 = vpop.permute.xlu1 %3866 }
 0x637   : > { %5655 = vset.pattern.permute.xlu1 %v9047_v51 }
 0x638   : > { %3654 = vperm.xlu1 %5655, %v9028_v42  }
 0x63a   : > { %v3931_v23 = vpop.permute.xlu1 %3930 }
 0x63b   : > { %v3972_v12 = vsel %vm1175_vm2, %v3867_v39, %v3931_v23  ;;  %v3663_v23 = vsel %vm1175_vm2, %v8004_v2, %v8034_v13  ;;  %v3362_v2 = vsel %vm1175_vm2, %v8061_v15, %v7967_v27  ;;  %v3363_v15 = vsel %vm1175_vm2, %v8091_v5, %v8099_v43  ;;  %v3879_v5 = vpop.permute.xlu0 %3878 }
 0x63c   : > { %5656 = vset.pattern.permute.xlu1 %v9048_v19  ;;  %4011 = vrot.lane.b32.xlu0 %v3972_v12, %s5764_s27 }
 0x63d   : > { %3594 = vperm.xlu1 %5656, %v9027_v7  }
 0x63f   : > { %v3631_v41 = vpop.permute.xlu1 %3630 }
 0x641   : > { %5658 = vset.pattern.permute.xlu1 %v9046_v8  ;;  %v3357_v8 = vsel %vm1175_vm2, %v7974_v34, %v7955_v22  ;;  %v3359_v22 = vsel %vm1175_vm2, %v8002_v21, %v8010_v57  ;;  %v3361_v21 = vsel %vm1175_vm2, %v8043_v16, %v8049_v38  ;;  %v3665_v16 = vsel %vm1175_vm2, %v8008_v24, %v8077_v28 }
 0x642   : > { %3894 = vperm.xlu1 %5658, %v9028_v42   ;;  %v3364_v28 = vsel %vm1175_vm2, %v8108_v3, %v7972_v30  ;;  %v3667_v38 = vsel %vm1175_vm2, %v8014_v55, %v8119_v54  ;;  %v3366_v55 = vsel %vm1175_vm2, %v8142_v9, %v7979_v59  ;;  %v3669_v54 = vsel %vm1175_vm2, %v8017_v35, %v3631_v41 }
 0x644   : > { %v3571_v62 = vpop.permute.xlu1 %3570 }
 0x645   : > { %v3670_v51 = vsel %vm1175_vm2, %v3571_v62, %v8051_v33  ;;  %v3661_v33 = vsel %vm1175_vm2, %v7998_v11, %v7992_v29  ;;  %v3360_v29 = vsel %vm1175_vm2, %v8020_v20, %v7961_v60 }
 0x646   : > { %5659 = vset.pattern.permute.xlu1 %v9045_v40  ;;  %3711 = vrot.lane.b32.xlu0 %v3670_v51, %s5763_s26 }
 0x647   : > { %3958 = vperm.xlu1 %5659, %v9028_v42  }
 0x649   : > { %v3271_v19 = vpop.permute.xlu1 %3270 }
 0x64b   : > { %3962 = vperm.xlu1 %5659, %v9027_v7  }
 0x64e   : > { %v3335_v36 = vpop.permute.xlu1 %3334 }
 0x64f   : > { %3389 = vrot.lane.b32.xlu1 %v3357_v8, %s5762_s25 }
 0x650   : > { %5661 = vset.pattern.permute.xlu1 %v9051_v17 }
 0x653   : > { %v3935_v4 = vpop.permute.xlu1 %3934  ;;  %3693 = vrot.lane.b32.xlu1 %v3661_v33, %s5763_s26 }
 0x654   : > { %v3973_v39 = vsel %vm1175_vm2, %v3871_v52, %v3935_v4 }
 0x655   : > { %4013 = vrot.lane.b32.xlu0 %v3973_v39, %s5764_s27 }
 0x657   : > { %3393 = vrot.lane.b32.xlu1 %v3359_v22, %s5762_s25 }
 0x658   : > { %v3275_v34 = vpop.permute.xlu1 %3274 }
 0x659   : > { %v3368_v59 = vsel %vm1175_vm2, %v3275_v34, %v7983_v32 }
 0x65b   : > { %3395 = vrot.lane.b32.xlu1 %v3360_v29, %s5762_s25 }
 0x65d   : > { %v3875_v11 = vpop.permute.xlu1 %3874 }
 0x65f   : > { %3697 = vrot.lane.b32.xlu1 %v3663_v23, %s5763_s26 }
 0x662   : > { %v3939_v12 = vpop.permute.xlu1 %3938 }
 0x663   : > { %3397 = vrot.lane.b32.xlu1 %v3361_v21, %s5762_s25  ;;  %v3974_v60 = vsel %vm1175_vm2, %v3875_v11, %v3939_v12 }
 0x664   : > { %4015 = vrot.lane.b32.xlu0 %v3974_v60, %s5764_s27  ;;  %v9052_v60 = vld [vmem:[#allocation7_spill] sm:$0xff] }
 0x667   : > { %v3639_v57 = vpop.permute.xlu1 %3638  ;;  %3399 = vrot.lane.b32.xlu1 %v3362_v2, %s5762_s25  ;;  %v4141_v2 = vsub.f32 0.0, %v9052_v60 }
 0x668   : > { %v3671_v35 = vsel %vm1175_vm2, %v8022_v10, %v3639_v57 }
 0x66b   : > { %3701 = vrot.lane.b32.xlu1 %v3665_v16, %s5763_s26  ;;  %v4157_v16 = vmul.f32 1.442695, %v4141_v2 }
 0x66c   : > { %v3579_v20 = vpop.permute.xlu1 %3578 }
 0x66d   : > { %v3672_v13 = vsel %vm1175_vm2, %v3579_v20, %v8055_v25  ;;  %v3365_v25 = vsel %vm1175_vm2, %v8129_v44, %v8133_v1  ;;  %v3367_v1 = vsel %vm1175_vm2, %v3271_v19, %v3335_v36  ;;  %v9053_v20 = vld [vmem:[#allocation6_spill] sm:$0xff]  ;;  %5663 = vpow2.f32 %v4157_v16 }
 0x66e   : > { %3715 = vrot.lane.b32.xlu0 %v3672_v13, %s5763_s26  ;;  %v4142_v13 = vsub.f32 0.0, %v9053_v20 }
 0x66f   : > { %3401 = vrot.lane.b32.xlu1 %v3363_v15, %s5762_s25 }
 0x671   : > { %v3279_v27 = vpop.permute.xlu1 %3278 }
 0x673   : > { %3403 = vrot.lane.b32.xlu1 %v3364_v28, %s5762_s25  ;;  %v4159_v28 = vmul.f32 1.442695, %v4142_v13 }
 0x675   : > { %5665 = vpow2.f32 %v4159_v28 }
 0x676   : > { %v3343_v24 = vpop.permute.xlu1 %3342 }
 0x677   : > { %3705 = vrot.lane.b32.xlu1 %v3667_v38, %s5763_s26  ;;  %v3369_v51 = vsel %vm1175_vm2, %v3279_v27, %v3343_v24 }
 0x67b   : > { %v3943_v43 = vpop.permute.xlu1 %3942  ;;  %3405 = vrot.lane.b32.xlu1 %v3365_v25, %s5762_s25  ;;  %v8310_v25 = vld [vmem:[#allocation5] sm:$0xff] }
 0x67c   : > { %v3975_v30 = vsel %vm1175_vm2, %v3879_v5, %v3943_v43 }
 0x67d   : > { %4017 = vrot.lane.b32.xlu0 %v3975_v30, %s5764_s27 }
 0x67f   : > { %3407 = vrot.lane.b32.xlu1 %v3366_v55, %s5762_s25  ;;  %v5664_v55 = vpop.eup %5663 }
 0x680   : > { %v3283_v3 = vpop.permute.xlu1 %3282 }
 0x681   : > { %v3370_v36 = vsel %vm1175_vm2, %v3283_v3, %v7989_v58  ;;  %v8315_v3 = vld [vmem:[#allocation5 + $0x8] sm:$0xff] }
 0x683   : > { %3709 = vrot.lane.b32.xlu1 %v3669_v54, %s5763_s26 }
 0x685   : > { %v3883_v44 = vpop.permute.xlu1 %3882 }
 0x687   : > { %3409 = vrot.lane.b32.xlu1 %v3367_v1, %s5762_s25  ;;  %v9054_v1 = vld [vmem:[#allocation9_spill] sm:$0xff] }
 0x68a   : > { %v3947_v62 = vpop.permute.xlu1 %3946 }
 0x68b   : > { %3411 = vrot.lane.b32.xlu1 %v3368_v59, %s5762_s25  ;;  %v3976_v9 = vsel %vm1175_vm2, %v3883_v44, %v3947_v62  ;;  %v4143_v62 = vsub.f32 0.0, %v9054_v1 }
 0x68c   : > { %4019 = vrot.lane.b32.xlu0 %v3976_v9, %s5764_s27  ;;  %v4189_v9 = vadd.f32 1.0, %v5664_v55 }
 0x68e   : > { %5667 = vrcp.f32 %v4189_v9 }
 0x68f   : > { %v3647_v41 = vpop.permute.xlu1 %3646  ;;  %3713 = vrot.lane.b32.xlu1 %v3671_v35, %s5763_s26  ;;  %v5666_v35 = vpop.eup %5665 }
 0x690   : > { %v3673_v8 = vsel %vm1175_vm2, %v8026_v0, %v3647_v41 }
 0x693   : > { %3413 = vrot.lane.b32.xlu1 %v3369_v51, %s5762_s25  ;;  %v4161_v51 = vmul.f32 1.442695, %v4143_v62 }
 0x694   : > { %v3587_v32 = vpop.permute.xlu1 %3586 }
 0x695   : > { %v3674_v19 = vsel %vm1175_vm2, %v3587_v32, %v8059_v46  ;;  %v3887_v46 = vpop.permute.xlu0 %3886  ;;  %v9055_v32 = vld [vmem:[#allocation8_spill] sm:$0xff]  ;;  %5669 = vpow2.f32 %v4161_v51 }
 0x696   : > { %3719 = vrot.lane.b32.xlu0 %v3674_v19, %s5763_s26  ;;  %v4144_v19 = vsub.f32 0.0, %v9055_v32 }
 0x697   : > { %3415 = vrot.lane.b32.xlu1 %v3370_v36, %s5762_s25 }
 0x699   : > { %v3287_v10 = vpop.permute.xlu1 %3286  ;;  %v3899_v11 = vpop.permute.xlu0 %3898 }
 0x69b   : > { %3717 = vrot.lane.b32.xlu1 %v3673_v8, %s5763_s26  ;;  %v8326_v8 = vld [vmem:[#allocation5 + $0x10] sm:$0xff] }
 0x69d   : > { %v8294_v21 = vpop.permute.xlu0 %3118 }
 0x69e   : > { %v3351_v17 = vpop.permute.xlu1 %3350 }
 0x69f   : > { %v3371_v33 = vsel %vm1175_vm2, %v3287_v10, %v3351_v17  ;;  %v4190_v10 = vadd.f32 1.0, %v5666_v35 }
 0x6a0   : > { %3417 = vrot.lane.b32.xlu1 %v3371_v33, %s5762_s25 }
 0x6a1   : > { %v8299_v15 = vpop.permute.xlu0 %3130  ;;  %5671 = vrcp.f32 %v4190_v10 }
 0x6a3   : > { %v3951_v52 = vpop.permute.xlu1 %3950 }
 0x6a4   : > { %v3977_v58 = vsel %vm1175_vm2, %v3887_v46, %v3951_v52  ;;  %v4163_v52 = vmul.f32 1.442695, %v4144_v19 }
 0x6a5   : > { %4021 = vrot.lane.b32.xlu0 %v3977_v58, %s5764_s27  ;;  %v8332_v58 = vld [vmem:[#allocation5 + $0x18] sm:$0xff] }
 0x6a6   : > { %5673 = vpow2.f32 %v4163_v52 }
 0x6a8   : > { %v3291_v4 = vpop.permute.xlu1 %3290 }
 0x6a9   : > { %v3372_v0 = vsel %vm1175_vm2, %v3291_v4, %v7994_v48 }
 0x6aa   : > { %3419 = vrot.lane.b32.xlu1 %v3372_v0, %s5762_s25 }
 0x6ad   : > { %v3891_v39 = vpop.permute.xlu1 %3890 }
 0x6b2   : > { %v3955_v22 = vpop.permute.xlu1 %3954 }
 0x6b3   : > { %v3978_v34 = vsel %vm1175_vm2, %v3891_v39, %v3955_v22  ;;  %v5668_v39 = vpop.eup %5667 }
 0x6b4   : > { %4023 = vrot.lane.b32.xlu0 %v3978_v34, %s5764_s27 }
 0x6b7   : > { %v3655_v29 = vpop.permute.xlu1 %3654 }
 0x6b8   : > { %v3675_v23 = vsel %vm1175_vm2, %v8030_v45, %v3655_v29 }
 0x6b9   : > { %3721 = vrot.lane.b32.xlu1 %v3675_v23, %s5763_s26  ;;  %v4333_v23 = vld [vmem:[%s8725_s9] sm:$0xff] }
 0x6bc   : > { %v3595_v12 = vpop.permute.xlu1 %3594 }
 0x6bd   : > { %v3676_v48 = vsel %vm1175_vm2, %v3595_v12, %v8064_v37  ;;  %v8304_v37 = vpop.permute.xlu0 %3138  ;;  %v4334_v12 = vld [vmem:[%s8725_s9 + $0x8] sm:$0xff] }
 0x6be   : > { %3723 = vrot.lane.b32.xlu0 %v3676_v48, %s5763_s26  ;;  %v5670_v48 = vpop.eup %5669  ;;  %v5114_v2 = vpack.c.bf16 %v4334_v12, %v4333_v23  ;;  %v9059_v23 = vld [vmem:[#allocation12_spill] sm:$0xff] }
 0x6bf   : > { %v4191_v28 = vadd.f32 1.0, %v5670_v48  ;;  %v4148_v12 = vsub.f32 0.0, %v9059_v23 }
 0x6c0   : > { %5115 = vmatprep.subr.bf16.mxu0 %v5114_v2 }
 0x6c1   : > { %v3895_v57 = vpop.permute.xlu1 %3894  ;;  %v3392_v30 = vpop.permute.xlu0 %3391  ;;  %5117 = vmatpush3.bf16.msra.mxu0 %v5114_v2  ;;  %5675 = vrcp.f32 %v4191_v28 }
 0x6c2   : > { %v3438_v44 = vmul.f32 %v3392_v30, %v8315_v3 }
 0x6c5   : > { %v3696_v59 = vpop.permute.xlu0 %3695 }
 0x6c6   : > { %v3959_v45 = vpop.permute.xlu1 %3958  ;;  %v3742_v41 = vmul.f32 %v3696_v59, %v8315_v3  ;;  %v8362_v59 = vld [vmem:[#allocation5 + $0x20] sm:$0xff] }
 0x6c7   : > { %v3979_v27 = vsel %vm1175_vm2, %v3895_v57, %v3959_v45  ;;  %v5672_v57 = vpop.eup %5671  ;;  %v9056_v45 = vld [vmem:[#allocation11_spill] sm:$0xff] }
 0x6c8   : > { %4025 = vrot.lane.b32.xlu1 %v3979_v27, %s5764_s27  ;;  %v4145_v27 = vsub.f32 0.0, %v9056_v45 }
 0x6c9   : > { %v3998_v36 = vpop.permute.xlu0 %3997 }
 0x6ca   : > { %v3963_v24 = vpop.permute.xlu1 %3962  ;;  %v4045_v33 = vmul.f32 %v3998_v36, %v8310_v25  ;;  %v4165_v55 = vmul.f32 1.442695, %v4145_v27 }
 0x6cb   : > { %v3980_v38 = vsel %vm1175_vm2, %v3899_v11, %v3963_v24  ;;  %v4335_v24 = vld [vmem:[%s8725_s9 + $0x10] sm:$0xff] }
 0x6cc   : > { %3142 = vperm.xlu1 %5661, %v9020_v47   ;;  %4027 = vrot.lane.b32.xlu0 %v3980_v38, %s5764_s27  ;;  %v4336_v38 = vld [vmem:[%s8725_s9 + $0x18] sm:$0xff]  ;;  %5677 = vpow2.f32 %v4165_v55 }
 0x6cd   : > { %v4000_v4 = vpop.permute.xlu0 %3999 }
 0x6ce   : > { %v3390_v5 = vpop.permute.xlu1 %3389  ;;  %v4046_v34 = vmul.f32 %v4000_v4, %v8315_v3 }
 0x6cf   : > { %v3437_v43 = vmul.f32 %v3390_v5, %v8310_v25  ;;  %v5674_v5 = vpop.eup %5673 }
 0x6d0   : > { %3146 = vperm.xlu1 %5661, %v9019_v31   ;;  %v4192_v62 = vadd.f32 1.0, %v5674_v5 }
 0x6d1   : > { %3469 = vrot.lane.b32.xlu0 %v3437_v43, %s5764_s27  ;;  %v3700_v11 = vpop.permute.xlu0 %3699  ;;  %v5118_v43 = vpack.c.bf16 %v4336_v38, %v4335_v24 }
 0x6d2   : > { %v3694_v54 = vpop.permute.xlu1 %3693  ;;  %v3744_v13 = vmul.f32 %v3700_v11, %v8332_v58  ;;  %5679 = vrcp.f32 %v4192_v62 }
 0x6d3   : > { %v3741_v47 = vmul.f32 %v3694_v54, %v8310_v25  ;;  %v9057_v54 = vld [vmem:[#allocation10_spill] sm:$0xff]  ;;  %5119 = vmatprep.subr.bf16.mxu0 %v5118_v43 }
 0x6d4   : > { %5121 = vmatpush3.bf16.msra.mxu0 %v5118_v43 }
 0x6d5   : > { %3773 = vrot.lane.b32.xlu1 %v3741_v47, %s5763_s26  ;;  %3471 = vrot.lane.b32.xlu0 %v3438_v44, %s5764_s27  ;;  %v4146_v44 = vsub.f32 0.0, %v9057_v54  ;;  %v4002_v47 = vpop.permute.xlu0 %4001 }
 0x6d6   : > { %v3394_v31 = vpop.permute.xlu1 %3393  ;;  %v4047_v9 = vmul.f32 %v4002_v47, %v8326_v8 }
 0x6d7   : > { %v3439_v46 = vmul.f32 %v3394_v31, %v8326_v8  ;;  %v4167_v35 = vmul.f32 1.442695, %v4146_v44 }
 0x6d9   : > { %3150 = vperm.xlu1 %5661, %v9022_v50   ;;  %3775 = vrot.lane.b32.xlu0 %v3742_v41, %s5763_s26  ;;  %v8368_v41 = vld [vmem:[#allocation5 + $0x28] sm:$0xff]  ;;  %v4004_v51 = vpop.permute.xlu0 %4003  ;;  %5681 = vpow2.f32 %v4167_v35 }
 0x6da   : > { %v3396_v17 = vpop.permute.xlu1 %3395  ;;  %v4048_v36 = vmul.f32 %v4004_v51, %v8332_v58 }
 0x6db   : > { %v3440_v0 = vmul.f32 %v3396_v17, %v8332_v58 }
 0x6dd   : > { %4077 = vrot.lane.b32.xlu1 %v4045_v33, %s5762_s25  ;;  %3473 = vrot.lane.b32.xlu0 %v3439_v46, %s5764_s27  ;;  %v3704_v33 = vpop.permute.xlu0 %3703 }
 0x6de   : > { %v3698_v50 = vpop.permute.xlu1 %3697 }
 0x6df   : > { %v3743_v29 = vmul.f32 %v3698_v50, %v8326_v8  ;;  %v3746_v50 = vmul.f32 %v3704_v33, %v8368_v41 }
 0x6e1   : > { %3475 = vrot.lane.b32.xlu1 %v3440_v0, %s5764_s27  ;;  %3154 = vperm.xlu0 %5660, %v9021_v26   ;;  %v4237_v26 = vmul.f32 %v5668_v39, %v9052_v60  ;;  %v4238_v60 = vmul.f32 %v5672_v57, %v9053_v20  ;;  %v4006_v48 = vpop.permute.xlu0 %4005 }
 0x6e2   : > { %v3398_v22 = vpop.permute.xlu1 %3397  ;;  %v4049_v2 = vmul.f32 %v4006_v48, %v8362_v59  ;;  %v9063_v48 = vld [vmem:[#allocation16_spill] sm:$0xff] }
 0x6e3   : > { %v3441_v20 = vmul.f32 %v3398_v22, %v8362_v59 }
 0x6e5   : > { %4079 = vrot.lane.b32.xlu1 %v4046_v34, %s5762_s25  ;;  %3777 = vrot.lane.b32.xlu0 %v3743_v29, %s5763_s26 }
 0x6e6   : > { %v3400_v16 = vpop.permute.xlu1 %3399 }
 0x6e7   : > { %v3442_v19 = vmul.f32 %v3400_v16, %v8368_v41 }
 0x6e9   : > { %4269 = vrot.lane.b32.xlu1 %v4237_v26, %s5764_s27  ;;  %3779 = vrot.lane.b32.xlu0 %v3744_v13, %s5763_s26  ;;  %v8386_v26 = vld [vmem:[#allocation5 + $0x30] sm:$0xff]  ;;  %v4171_v13 = vmul.f32 1.442695, %v4148_v12 }
 0x6ea   : > { %v3702_v30 = vpop.permute.xlu1 %3701 }
 0x6eb   : > { %v3745_v10 = vmul.f32 %v3702_v30, %v8362_v59 }
 0x6ed   : > { %4271 = vrot.lane.b32.xlu1 %v4238_v60, %s5764_s27  ;;  %3158 = vperm.xlu0 %5660, %v9024_v14   ;;  %v5676_v14 = vpop.eup %5675  ;;  %v9060_v60 = vld [vmem:[#allocation15_spill] sm:$0xff] }
 0x6ee   : > { %v3402_v31 = vpop.permute.xlu1 %3401  ;;  %v5678_v46 = vpop.eup %5677  ;;  %v4239_v52 = vmul.f32 %v5676_v14, %v9054_v1  ;;  %v4149_v43 = vsub.f32 0.0, %v9060_v60 }
 0x6ef   : > { %v5680_v4 = vpop.eup %5679  ;;  %v4193_v39 = vadd.f32 1.0, %v5678_v46  ;;  %v3443_v57 = vmul.f32 %v3402_v31, %v8386_v26 }
 0x6f0   : > { %v5682_v22 = vpop.eup %5681  ;;  %v4240_v29 = vmul.f32 %v5680_v4, %v9055_v32  ;;  %v8392_v32 = vld [vmem:[#allocation5 + $0x38] sm:$0xff] }
 0x6f1   : > { %3477 = vrot.lane.b32.xlu1 %v3441_v20, %s5764_s27  ;;  %4081 = vrot.lane.b32.xlu0 %v4047_v9, %s5762_s25  ;;  %5683 = vrcp.f32 %v4193_v39  ;;  %v4194_v1 = vadd.f32 1.0, %v5682_v22  ;;  %v4173_v9 = vmul.f32 1.442695, %v4149_v43  ;;  %v9061_v20 = vld [vmem:[#allocation14_spill] sm:$0xff] }
 0x6f2   : > { %v3404_v17 = vpop.permute.xlu1 %3403  ;;  %v4150_v35 = vsub.f32 0.0, %v9061_v20 }
 0x6f3   : > { %v3444_v27 = vmul.f32 %v3404_v17, %v8392_v32  ;;  %v8410_v17 = vld [vmem:[#allocation5 + $0x40] sm:$0xff] }
 0x6f4   : > { %v4175_v14 = vmul.f32 1.442695, %v4150_v35 }
 0x6f5   : > { %3162 = vperm.xlu1 %5661, %v9023_v49   ;;  %3479 = vrot.lane.b32.xlu0 %v3442_v19, %s5764_s27  ;;  %v9058_v49 = vld [vmem:[#allocation13_spill] sm:$0xff] }
 0x6f6   : > { %v4147_v0 = vsub.f32 0.0, %v9058_v49  ;;  %v3706_v34 = vpop.permute.xlu1 %3705 }
 0x6f7   : > { %v3747_v5 = vmul.f32 %v3706_v34, %v8386_v26 }
 0x6f8   : > { %v4169_v11 = vmul.f32 1.442695, %v4147_v0 }
 0x6f9   : > { %4083 = vrot.lane.b32.xlu1 %v4048_v36, %s5762_s25  ;;  %3781 = vrot.lane.b32.xlu0 %v3745_v10, %s5763_s26 }
 0x6fa   : > { %v3406_v16 = vpop.permute.xlu1 %3405  ;;  %5685 = vpow2.f32 %v4169_v11 }
 0x6fb   : > { %5687 = vrcp.f32 %v4194_v1  ;;  %v5684_v24 = vpop.eup %5683  ;;  %v3445_v46 = vmul.f32 %v3406_v16, %v8410_v17  ;;  %v4152_v1 = vsub.f32 0.0, %v9063_v48 }
 0x6fc   : > { %5689 = vpow2.f32 %v4171_v13  ;;  %v4241_v44 = vmul.f32 %v5684_v24, %v9056_v45 }
 0x6fd   : > { %4273 = vrot.lane.b32.xlu1 %v4239_v52, %s5764_s27  ;;  %3783 = vrot.lane.b32.xlu0 %v3746_v50, %s5763_s26  ;;  %5691 = vpow2.f32 %v4173_v9  ;;  %v9062_v50 = vld [vmem:[#allocation17_spill] sm:$0xff] }
 0x6fe   : > { %v3408_v28 = vpop.permute.xlu1 %3407  ;;  %v4151_v0 = vsub.f32 0.0, %v9062_v50 }
 0x700   : > { %v4177_v12 = vmul.f32 1.442695, %v4151_v0 }
 0x701   : > { %4275 = vrot.lane.b32.xlu1 %v4240_v29, %s5764_s27  ;;  %3166 = vperm.xlu0 %5660, %v9026_v6   ;;  %v4008_v6 = vpop.permute.xlu0 %4007 }
 0x702   : > { %v4050_v38 = vmul.f32 %v4008_v6, %v8368_v41  ;;  %v3710_v62 = vpop.permute.xlu1 %3709  ;;  %v4179_v6 = vmul.f32 1.442695, %v4152_v1 }
 0x703   : > { %v3749_v11 = vmul.f32 %v3710_v62, %v8410_v17 }
 0x704   : > { %v5686_v55 = vpop.eup %5685 }
 0x705   : > { %3481 = vrot.lane.b32.xlu1 %v3443_v57, %s5764_s27  ;;  %4085 = vrot.lane.b32.xlu0 %v4049_v2, %s5762_s25  ;;  %v3708_v30 = vpop.permute.xlu0 %3707  ;;  %v5688_v47 = vpop.eup %5687  ;;  %v4195_v31 = vadd.f32 1.0, %v5686_v55  ;;  %v8438_v55 = vld [vmem:[#allocation5 + $0x58] sm:$0xff] }
 0x706   : > { %v5690_v51 = vpop.eup %5689  ;;  %v4242_v19 = vmul.f32 %v5688_v47, %v9057_v54  ;;  %v3410_v10 = vpop.permute.xlu1 %3409  ;;  %v8416_v54 = vld [vmem:[#allocation5 + $0x48] sm:$0xff] }
 0x707   : > { %5693 = vrcp.f32 %v4195_v31  ;;  %v4196_v45 = vadd.f32 1.0, %v5690_v51  ;;  %v3446_v4 = vmul.f32 %v3408_v28, %v8416_v54  ;;  %v5692_v22 = vpop.eup %5691 }
 0x708   : > { %5695 = vpow2.f32 %v4175_v14  ;;  %v4197_v2 = vadd.f32 1.0, %v5692_v22  ;;  %v9066_v22 = vld [vmem:[#allocation34_spill] sm:$0xff] }
 0x709   : > { %3170 = vperm.xlu1 %5661, %v9025_v63   ;;  %3483 = vrot.lane.b32.xlu0 %v3444_v27, %s5764_s27  ;;  %v3748_v63 = vmul.f32 %v3708_v30, %v8392_v32  ;;  %v4010_v36 = vpop.permute.xlu0 %4009  ;;  %5697 = vrcp.f32 %v4196_v45 }
 0x70a   : > { %v4051_v33 = vmul.f32 %v4010_v36, %v8386_v26  ;;  %5699 = vpow2.f32 %v4177_v12  ;;  %v9065_v36 = vld [vmem:[#allocation29_spill] sm:$0xff] }
 0x70b   : > { %5701 = vrcp.f32 %v4197_v2  ;;  %v4154_v45 = vsub.f32 0.0, %v9065_v36  ;;  %v9067_v2 = vld [vmem:[#allocation32_spill] sm:$0xff] }
 0x70c   : > { %5703 = vpow2.f32 %v4179_v6 }
 0x70d   : > { %4087 = vrot.lane.b32.xlu1 %v4050_v38, %s5762_s25  ;;  %3785 = vrot.lane.b32.xlu0 %v3747_v5, %s5763_s26  ;;  %v4012_v52 = vpop.permute.xlu0 %4011  ;;  %v8433_v5 = vld [vmem:[#allocation5 + $0x50] sm:$0xff] }
 0x70e   : > { %v4052_v29 = vmul.f32 %v4012_v52, %v8392_v32  ;;  %v3447_v43 = vmul.f32 %v3410_v10, %v8433_v5 }
 0x711   : > { %4277 = vrot.lane.b32.xlu1 %v4241_v44, %s5764_s27  ;;  %3787 = vrot.lane.b32.xlu0 %v3748_v63, %s5763_s26  ;;  %v3712_v39 = vpop.permute.xlu0 %3711  ;;  %v5694_v34 = vpop.eup %5693  ;;  %v9064_v63 = vld [vmem:[#allocation30_spill] sm:$0xff] }
 0x712   : > { %v5696_v57 = vpop.eup %5695  ;;  %v3750_v27 = vmul.f32 %v3712_v39, %v8416_v54  ;;  %v4183_v39 = vmul.f32 1.442695, %v4154_v45 }
 0x713   : > { %v5698_v13 = vpop.eup %5697  ;;  %v4198_v24 = vadd.f32 1.0, %v5696_v57  ;;  %v4156_v57 = vsub.f32 0.0, %v9067_v2 }
 0x714   : > { %v4244_v38 = vmul.f32 %v5698_v13, %v9059_v23  ;;  %v4153_v23 = vsub.f32 0.0, %v9064_v63  ;;  %v5700_v9 = vpop.eup %5699  ;;  %v8462_v13 = vld [vmem:[#allocation5 + $0x68] sm:$0xff] }
 0x715   : > { %4279 = vrot.lane.b32.xlu1 %v4242_v19, %s5764_s27  ;;  %3174 = vperm.xlu0 %5660, %v9028_v42   ;;  %v3412_v42 = vpop.permute.xlu1 %3411  ;;  %5705 = vrcp.f32 %v4198_v24  ;;  %v5702_v31 = vpop.eup %5701 }
 0x716   : > { %v3448_v47 = vmul.f32 %v3412_v42, %v8438_v55  ;;  %v4181_v14 = vmul.f32 1.442695, %v4153_v23  ;;  %v4245_v52 = vmul.f32 %v5702_v31, %v9060_v60 }
 0x718   : > { %5707 = vpow2.f32 %v4181_v14 }
 0x719   : > { %3485 = vrot.lane.b32.xlu1 %v3445_v46, %s5764_s27  ;;  %4089 = vrot.lane.b32.xlu0 %v4051_v33, %s5762_s25  ;;  %v3714_v16 = vpop.permute.xlu1 %3713  ;;  %v4199_v33 = vadd.f32 1.0, %v5700_v9  ;;  %v5704_v46 = vpop.eup %5703 }
 0x71a   : > { %5662 = vset.pattern.permute.xlu0 %v9045_v40  ;;  %v4014_v40 = vpop.permute.xlu0 %4013  ;;  %v3751_v19 = vmul.f32 %v3714_v16, %v8433_v5  ;;  %v4200_v12 = vadd.f32 1.0, %v5704_v46 }
 0x71b   : > { %v4053_v44 = vmul.f32 %v4014_v40, %v8410_v17  ;;  %5709 = vrcp.f32 %v4199_v33 }
 0x71c   : > { %5711 = vpow2.f32 %v4183_v39 }
 0x71d   : > { %3178 = vperm.xlu1 %5661, %v9027_v7   ;;  %3487 = vrot.lane.b32.xlu0 %v3446_v4, %s5764_s27  ;;  %v4243_v7 = vmul.f32 %v5694_v34, %v9058_v49  ;;  %v3414_v30 = vpop.permute.xlu1 %3413  ;;  %v4155_v34 = vsub.f32 0.0, %v9066_v22  ;;  %5713 = vrcp.f32 %v4200_v12 }
 0x71e   : > { %v4016_v28 = vpop.permute.xlu0 %4015 }
 0x71f   : > { %v4054_v51 = vmul.f32 %v4016_v28, %v8416_v54  ;;  %v5706_v4 = vpop.eup %5705  ;;  %v4185_v40 = vmul.f32 1.442695, %v4155_v34 }
 0x720   : > { %v4246_v1 = vmul.f32 %v5706_v4, %v9061_v20  ;;  %v4187_v20 = vmul.f32 1.442695, %v4156_v57 }
 0x721   : > { %4091 = vrot.lane.b32.xlu1 %v4052_v29, %s5762_s25  ;;  %3789 = vrot.lane.b32.xlu0 %v3749_v11, %s5763_s26  ;;  %v3416_v35 = vpop.permute.xlu1 %3415  ;;  %v8453_v11 = vld [vmem:[#allocation5 + $0x60] sm:$0xff]  ;;  %5715 = vpow2.f32 %v4185_v40 }
 0x722   : > { %v3716_v49 = vpop.permute.xlu0 %3715  ;;  %v3449_v60 = vmul.f32 %v3414_v30, %v8453_v11  ;;  %v3450_v6 = vmul.f32 %v3416_v35, %v8462_v13  ;;  %v5708_v24 = vpop.eup %5707  ;;  %5717 = vpow2.f32 %v4187_v20 }
 0x723   : > { %v3752_v42 = vmul.f32 %v3716_v49, %v8438_v55 }
 0x725   : > { %4281 = vrot.lane.b32.xlu1 %v4243_v7, %s5764_s27  ;;  %3791 = vrot.lane.b32.xlu0 %v3750_v27, %s5763_s26  ;;  %v3718_v0 = vpop.permute.xlu1 %3717 }
 0x726   : > { %v4018_v62 = vpop.permute.xlu0 %4017  ;;  %v3753_v30 = vmul.f32 %v3718_v0, %v8453_v11 }
 0x727   : > { %v4055_v27 = vmul.f32 %v4018_v62, %v8433_v5 }
 0x729   : > { %4283 = vrot.lane.b32.xlu1 %v4244_v38, %s5764_s27  ;;  %3489 = vrot.lane.b32.xlu0 %v3447_v43, %s5764_s27  ;;  %v3418_v7 = vpop.permute.xlu1 %3417  ;;  %v5710_v38 = vpop.eup %5709 }
 0x72a   : > { %v4020_v10 = vpop.permute.xlu0 %4019  ;;  %v5712_v23 = vpop.eup %5711  ;;  %v4247_v62 = vmul.f32 %v5710_v38, %v9062_v50  ;;  %v8480_v50 = vld [vmem:[#allocation5 + $0x78] sm:$0xff] }
 0x72b   : > { %v4056_v43 = vmul.f32 %v4020_v10, %v8438_v55  ;;  %v5714_v9 = vpop.eup %5713  ;;  %v4202_v14 = vadd.f32 1.0, %v5712_v23 }
 0x72c   : > { %v5716_v45 = vpop.eup %5715  ;;  %v4248_v10 = vmul.f32 %v5714_v9, %v9063_v48 }
 0x72d   : > { %4093 = vrot.lane.b32.xlu1 %v4053_v44, %s5762_s25  ;;  %3491 = vrot.lane.b32.xlu0 %v3448_v47, %s5764_s27  ;;  %v3420_v49 = vpop.permute.xlu1 %3419  ;;  %v4201_v47 = vadd.f32 1.0, %v5708_v24  ;;  %v5718_v4 = vpop.eup %5717 }
 0x72e   : > { %v3720_v29 = vpop.permute.xlu0 %3719  ;;  %v3452_v39 = vmul.f32 %v3420_v49, %v8480_v50  ;;  %v4204_v48 = vadd.f32 1.0, %v5718_v4  ;;  %v8515_v49 = vld [vmem:[%s8724_s8] ss:$0 sm:$0xff] }
 0x72f   : > { %v3754_v35 = vmul.f32 %v3720_v29, %v8462_v13  ;;  %5719 = vrcp.f32 %v4201_v47 }
 0x730   : > { %5721 = vrcp.f32 %v4202_v14 }
 0x731   : > { %4095 = vrot.lane.b32.xlu1 %v4054_v51, %s5762_s25  ;;  %3793 = vrot.lane.b32.xlu0 %v3751_v19, %s5763_s26  ;;  %v3722_v31 = vpop.permute.xlu1 %3721  ;;  %v8474_v51 = vld [vmem:[#allocation5 + $0x70] sm:$0xff] }
 0x732   : > { %v4022_v16 = vpop.permute.xlu0 %4021  ;;  %v3451_v33 = vmul.f32 %v3418_v7, %v8474_v51 }
 0x733   : > { %v4057_v0 = vmul.f32 %v4022_v16, %v8453_v11 }
 0x735   : > { %4285 = vrot.lane.b32.xlu1 %v4245_v52, %s5764_s27  ;;  %3795 = vrot.lane.b32.xlu0 %v3752_v42, %s5763_s26  ;;  %v4203_v52 = vadd.f32 1.0, %v5716_v45 }
 0x736   : > { %v4024_v28 = vpop.permute.xlu0 %4023 }
 0x737   : > { %5723 = vrcp.f32 %v4203_v52  ;;  %v4058_v12 = vmul.f32 %v4024_v28, %v8462_v13 }
 0x738   : > { %5725 = vrcp.f32 %v4204_v48 }
 0x739   : > { %4287 = vrot.lane.b32.xlu1 %v4246_v1, %s5764_s27  ;;  %3493 = vrot.lane.b32.xlu0 %v3449_v60, %s5764_s27  ;;  %v5720_v29 = vpop.eup %5719  ;;  %v3755_v1 = vmul.f32 %v3722_v31, %v8474_v51 }
 0x73a   : > { %v3724_v44 = vpop.permute.xlu0 %3723  ;;  %v4026_v46 = vpop.permute.xlu1 %4025  ;;  %v4249_v57 = vmul.f32 %v5720_v29, %v9064_v63 }
 0x73b   : > { %v5722_v16 = vpop.eup %5721  ;;  %v3756_v7 = vmul.f32 %v3724_v44, %v8480_v50  ;;  %v4059_v24 = vmul.f32 %v4026_v46, %v8474_v51 }
 0x73d   : > { %4097 = vrot.lane.b32.xlu1 %v4055_v27, %s5762_s25  ;;  %3495 = vrot.lane.b32.xlu0 %v3450_v6, %s5764_s27  ;;  %v4250_v6 = vmul.f32 %v5722_v16, %v9065_v36 }
 0x73e   : > { %v4028_v19 = vpop.permute.xlu0 %4027 }
 0x73f   : > { %v4060_v36 = vmul.f32 %v4028_v19, %v8480_v50  ;;  %v9069_v19 = vld [vmem:[#allocation19_spill] sm:$0xff] }
 0x740   : > { %v3038_v14 = vmul.f32 %v8515_v49, %v9069_v19 }
 0x741   : > { %4099 = vrot.lane.b32.xlu1 %v4056_v43, %s5762_s25  ;;  %3797 = vrot.lane.b32.xlu0 %v3753_v30, %s5763_s26  ;;  %v5724_v20 = vpop.eup %5723  ;;  %v3181_v30 = vsel %vm1175_vm2, %v7900_v61, %v8294_v21  ;;  %v3182_v21 = vsel %vm1175_vm2, %v7907_v53, %v7952_v18 }
 0x742   : > { %v4251_v63 = vmul.f32 %v5724_v20, %v9066_v22  ;;  %v5726_v43 = vpop.eup %5725  ;;  %v3197_v23 = vmul.f32 %v3181_v30, %v8310_v25  ;;  %v3198_v31 = vmul.f32 %v3182_v21, %v8315_v3  ;;  %v9073_v20 = vld [vmem:[#allocation51_spill] sm:$0xff] }
 0x743   : > { %v3470_v42 = vpop.permute.xlu0 %3469  ;;  %v4252_v61 = vmul.f32 %v5726_v43, %v9067_v2 }
 0x744   : > { %v3214_v2 = vadd.f32 %v3198_v31, %v3038_v14 }
 0x745   : > { %4289 = vrot.lane.b32.xlu1 %v4247_v62, %s5764_s27  ;;  %3799 = vrot.lane.b32.xlu0 %v3754_v35, %s5763_s26  ;;  %v9068_v62 = vld [vmem:[#allocation18_spill] sm:$0xff] }
 0x746   : > { %v3037_v22 = vmul.f32 %v8515_v49, %v9068_v62 }
 0x747   : > { %v3472_v40 = vpop.permute.xlu0 %3471 }
 0x748   : > { %v3213_v25 = vadd.f32 %v3197_v23, %v3037_v22  ;;  %v3518_v52 = vadd.f32 %v3472_v40, %v3214_v2 }
 0x749   : > { %4291 = vrot.lane.b32.xlu1 %v4248_v10, %s5764_s27  ;;  %3497 = vrot.lane.b32.xlu0 %v3451_v33, %s5764_s27 }
 0x74a   : > { %v3517_v45 = vadd.f32 %v3470_v42, %v3213_v25 }
 0x74b   : > { %v8486_v34 = vpop.permute.xlu1 %3142  ;;  %v3776_v28 = vpop.permute.xlu0 %3775 }
 0x74c   : > { %v3822_v18 = vadd.f32 %v3776_v28, %v3518_v52  ;;  %v3184_v28 = vsel %vm1175_vm2, %v9073_v20, %v8299_v15  ;;  %v9076_v52 = vld [vmem:[#allocation56_spill] sm:$0xff] }
 0x74d   : > { %4101 = vrot.lane.b32.xlu1 %v4057_v0, %s5762_s25  ;;  %3499 = vrot.lane.b32.xlu0 %v3452_v39, %s5764_s27  ;;  %v3200_v43 = vmul.f32 %v3184_v28, %v8332_v58 }
 0x74f   : > { %v8492_v60 = vpop.permute.xlu1 %3146  ;;  %v3474_v44 = vpop.permute.xlu0 %3473 }
 0x751   : > { %4103 = vrot.lane.b32.xlu1 %v4058_v12, %s5762_s25  ;;  %3801 = vrot.lane.b32.xlu0 %v3755_v1, %s5763_s26  ;;  %v9070_v1 = vld [vmem:[#allocation65_spill] sm:$0xff] }
 0x753   : > { %v3774_v27 = vpop.permute.xlu1 %3773 }
 0x754   : > { %v3821_v46 = vadd.f32 %v3774_v27, %v3517_v45  ;;  %v9072_v27 = vld [vmem:[#allocation20_spill] sm:$0xff] }
 0x755   : > { %4293 = vrot.lane.b32.xlu1 %v4249_v57, %s5764_s27  ;;  %3803 = vrot.lane.b32.xlu0 %v3756_v7, %s5763_s26  ;;  %v9071_v57 = vld [vmem:[#allocation55_spill] sm:$0xff] }
 0x756   : > { %v3183_v42 = vsel %vm1175_vm2, %v9071_v57, %v9070_v1  ;;  %v9079_v57 = vld [vmem:[#allocation23_spill] sm:$0xff] }
 0x757   : > { %v3199_v7 = vmul.f32 %v3183_v42, %v8326_v8  ;;  %v3042_v42 = vmul.f32 %v8515_v49, %v9079_v57 }
 0x758   : > { %v8502_v38 = vpop.permute.xlu1 %3150 }
 0x759   : > { %4295 = vrot.lane.b32.xlu1 %v4250_v6, %s5764_s27  ;;  %4105 = vrot.lane.b32.xlu0 %v4059_v24, %s5762_s25  ;;  %v3039_v6 = vmul.f32 %v8515_v49, %v9072_v27 }
 0x75b   : > { %v3215_v30 = vadd.f32 %v3199_v7, %v3039_v6 }
 0x75c   : > { %v4078_v47 = vpop.permute.xlu1 %4077 }
 0x75d   : > { %4107 = vrot.lane.b32.xlu1 %v4060_v36, %s5762_s25  ;;  %4297 = vrot.lane.b32.xlu0 %v4251_v63, %s5764_s27  ;;  %v4125_v4 = vadd.f32 %v4078_v47, %v3821_v46  ;;  %v9074_v36 = vld [vmem:[#allocation21_spill] sm:$0xff]  ;;  %v3519_v23 = vadd.f32 %v3474_v44, %v3215_v30  ;;  %v9075_v46 = vld [vmem:[#allocation76_spill] sm:$0xff] }
 0x75e   : > { %v3040_v47 = vmul.f32 %v8515_v49, %v9074_v36  ;;  %v3185_v44 = vsel %vm1175_vm2, %v9076_v52, %v9075_v46 }
 0x760   : > { %v3476_v9 = vpop.permute.xlu1 %3475  ;;  %v8527_v35 = vpop.permute.xlu0 %3154  ;;  %v3216_v22 = vadd.f32 %v3200_v43, %v3040_v47 }
 0x761   : > { %4299 = vrot.lane.b32.xlu1 %v4252_v61, %s5764_s27 }
 0x762   : > { %v3520_v21 = vadd.f32 %v3476_v9, %v3216_v22  ;;  %v9080_v22 = vld [vmem:[#allocation63_spill] sm:$0xff] }
 0x764   : > { %v4080_v10 = vpop.permute.xlu1 %4079  ;;  %v3778_v33 = vpop.permute.xlu0 %3777 }
 0x765   : > { %v4126_v48 = vadd.f32 %v4080_v10, %v3822_v18  ;;  %v3823_v61 = vadd.f32 %v3778_v33, %v3519_v23  ;;  %v9078_v18 = vld [vmem:[#allocation59_spill] sm:$0xff] }
 0x768   : > { %v4270_v0 = vpop.permute.xlu1 %4269  ;;  %v3780_v53 = vpop.permute.xlu0 %3779 }
 0x769   : > { %v4317_v39 = vmul.f32 %v4270_v0, %v4125_v4  ;;  %v3824_v14 = vadd.f32 %v3780_v53, %v3520_v21  ;;  %v3201_v4 = vmul.f32 %v3185_v44, %v8362_v59  ;;  %v9077_v0 = vld [vmem:[#allocation22_spill] sm:$0xff]  ;;  %v9081_v21 = vld [vmem:[#allocation24_spill] sm:$0xff] }
 0x76a   : > { %v3041_v53 = vmul.f32 %v8515_v49, %v9077_v0 }
 0x76b   : > { %5052 = vmatprep.mubr.msk.f32.mxu0 %vm626_vm1, %v4317_v39  ;;  %v3186_v39 = vsel %vm1175_vm2, %v9078_v18, %v8304_v37 }
 0x76c   : > { %v4272_v3 = vpop.permute.xlu1 %4271  ;;  %v8534_v29 = vpop.permute.xlu0 %3158  ;;  %v3217_v1 = vadd.f32 %v3201_v4, %v3041_v53 }
 0x76d   : > { %v4318_v12 = vmul.f32 %v4272_v3, %v4126_v48 }
 0x76f   : > { %5053 = vmatmul.mubr.msk.f32.vlgmr.msra.gmra.mrb[16].mxu0 %vm626_vm1, %v4318_v12  ;;  %v3202_v12 = vmul.f32 %v3186_v39, %v8368_v41 }
 0x770   : > { %v3478_v40 = vpop.permute.xlu1 %3477  ;;  %v4082_v16 = vpop.permute.xlu0 %4081 }
 0x771   : > { %v4127_v31 = vadd.f32 %v4082_v16, %v3823_v61  ;;  %v3521_v16 = vadd.f32 %v3478_v40, %v3217_v1  ;;  %v3218_v27 = vadd.f32 %v3202_v12, %v3042_v42  ;;  %v3187_v40 = vsel %vm1175_vm2, %v9080_v22, %v8486_v34  ;;  %v9084_v12 = vld [vmem:[#allocation54_spill] sm:$0xff] }
 0x772   : > { %v3203_v61 = vmul.f32 %v3187_v40, %v8386_v26 }
 0x774   : > { %v8548_v24 = vpop.permute.xlu1 %3162  ;;  %v3480_v63 = vpop.permute.xlu0 %3479 }
 0x775   : > { %v3522_v20 = vadd.f32 %v3480_v63, %v3218_v27 }
 0x778   : > { %v4084_v62 = vpop.permute.xlu1 %4083  ;;  %v3782_v8 = vpop.permute.xlu0 %3781 }
 0x779   : > { %v4128_v45 = vadd.f32 %v4084_v62, %v3824_v14  ;;  %v3825_v6 = vadd.f32 %v3782_v8, %v3521_v16  ;;  %v9085_v16 = vld [vmem:[#allocation26_spill] sm:$0xff] }
 0x77c   : > { %v4274_v25 = vpop.permute.xlu1 %4273  ;;  %v3784_v19 = vpop.permute.xlu0 %3783 }
 0x77d   : > { %v4319_v15 = vmul.f32 %v4274_v25, %v4127_v31  ;;  %v3826_v36 = vadd.f32 %v3784_v19, %v3522_v20  ;;  %v3043_v31 = vmul.f32 %v8515_v49, %v9081_v21  ;;  %v9082_v25 = vld [vmem:[#allocation53_spill] sm:$0xff]  ;;  %v9088_v21 = vld [vmem:[#allocation64_spill] sm:$0xff] }
 0x77e   : > { %v3188_v19 = vsel %vm1175_vm2, %v9082_v25, %v8492_v60 }
 0x77f   : > { %5055 = vmatprep.mubr.msk.f32.mxu0 %vm626_vm1, %v4319_v15  ;;  %v3219_v34 = vadd.f32 %v3203_v61, %v3043_v31 }
 0x780   : > { %v4276_v10 = vpop.permute.xlu1 %4275  ;;  %v8554_v58 = vpop.permute.xlu0 %3166 }
 0x781   : > { %v4320_v2 = vmul.f32 %v4276_v10, %v4128_v45  ;;  %v3204_v45 = vmul.f32 %v3188_v19, %v8392_v32  ;;  %v9083_v10 = vld [vmem:[#allocation25_spill] sm:$0xff]  ;;  %v3189_v32 = vsel %vm1175_vm2, %v9084_v12, %v8502_v38 }
 0x782   : > { %v3205_v42 = vmul.f32 %v3189_v32, %v8410_v17 }
 0x783   : > { %5056 = vmatmul.mubr.msk.f32.gmra.mrb[18].mxu0 %vm626_vm1, %v4320_v2  ;;  %v3044_v2 = vmul.f32 %v8515_v49, %v9083_v10  ;;  %v9090_v10 = vld [vmem:[#allocation74_spill] sm:$0xff] }
 0x784   : > { %v3482_v9 = vpop.permute.xlu1 %3481  ;;  %v4086_v33 = vpop.permute.xlu0 %4085 }
 0x785   : > { %v4129_v28 = vadd.f32 %v4086_v33, %v3825_v6  ;;  %v3523_v46 = vadd.f32 %v3482_v9, %v3219_v34  ;;  %v3220_v44 = vadd.f32 %v3204_v45, %v3044_v2  ;;  %v9089_v45 = vld [vmem:[#allocation28_spill] sm:$0xff]  ;;  %v3192_v2 = vsel %vm1175_vm2, %v9090_v10, %v8548_v24 }
 0x788   : > { %v8568_v48 = vpop.permute.xlu1 %3170  ;;  %v3484_v3 = vpop.permute.xlu0 %3483 }
 0x789   : > { %v3524_v4 = vadd.f32 %v3484_v3, %v3220_v44  ;;  %v3045_v3 = vmul.f32 %v8515_v49, %v9085_v16  ;;  %v9091_v44 = vld [vmem:[#allocation31_spill] sm:$0xff] }
 0x78c   : > { %v4088_v7 = vpop.permute.xlu1 %4087  ;;  %v3786_v59 = vpop.permute.xlu0 %3785 }
 0x78d   : > { %v4130_v47 = vadd.f32 %v4088_v7, %v3826_v36  ;;  %v3827_v33 = vadd.f32 %v3786_v59, %v3523_v46  ;;  %v9086_v59 = vld [vmem:[#allocation57_spill] sm:$0xff] }
 0x78e   : > { %v3190_v27 = vsel %vm1175_vm2, %v9086_v59, %v8527_v35  ;;  %v9093_v59 = vld [vmem:[#allocation33_spill] sm:$0xff] }
 0x78f   : > { %v3206_v20 = vmul.f32 %v3190_v27, %v8416_v54  ;;  %v3191_v54 = vsel %vm1175_vm2, %v9088_v21, %v8534_v29  ;;  %v3049_v27 = vmul.f32 %v8515_v49, %v9093_v59 }
 0x790   : > { %v4278_v43 = vpop.permute.xlu1 %4277  ;;  %v3788_v30 = vpop.permute.xlu0 %3787  ;;  %v3207_v19 = vmul.f32 %v3191_v54, %v8433_v5 }
 0x791   : > { %v4321_v37 = vmul.f32 %v4278_v43, %v4129_v28  ;;  %v3828_v39 = vadd.f32 %v3788_v30, %v3524_v4  ;;  %v3221_v28 = vadd.f32 %v3205_v42, %v3045_v3  ;;  %v9087_v43 = vld [vmem:[#allocation27_spill] sm:$0xff] }
 0x792   : > { %v3046_v30 = vmul.f32 %v8515_v49, %v9087_v43 }
 0x793   : > { %5058 = vmatprep.mubr.msk.f32.mxu0 %vm626_vm1, %v4321_v37 }
 0x794   : > { %v4280_v23 = vpop.permute.xlu1 %4279  ;;  %v8574_v41 = vpop.permute.xlu0 %3174 }
 0x795   : > { %v4322_v62 = vmul.f32 %v4280_v23, %v4130_v47  ;;  %v3222_v47 = vadd.f32 %v3206_v20, %v3046_v30 }
 0x797   : > { %5059 = vmatmul.mubr.msk.f32.gmra.mrb[20].mxu0 %vm626_vm1, %v4322_v62 }
 0x798   : > { %v3486_v63 = vpop.permute.xlu1 %3485  ;;  %v4090_v8 = vpop.permute.xlu0 %4089 }
 0x799   : > { %v4131_v0 = vadd.f32 %v4090_v8, %v3827_v33  ;;  %v3525_v17 = vadd.f32 %v3486_v63, %v3221_v28  ;;  %v3048_v33 = vmul.f32 %v8515_v49, %v9091_v44 }
 0x79c   : > { %v8588_v14 = vpop.permute.xlu1 %3178  ;;  %v3488_v15 = vpop.permute.xlu0 %3487 }
 0x79d   : > { %v3526_v62 = vadd.f32 %v3488_v15, %v3222_v47  ;;  %v3047_v15 = vmul.f32 %v8515_v49, %v9089_v45 }
 0x7a0   : > { %v4092_v52 = vpop.permute.xlu1 %4091  ;;  %v3790_v26 = vpop.permute.xlu0 %3789 }
 0x7a1   : > { %v4132_v1 = vadd.f32 %v4092_v52, %v3828_v39  ;;  %v3829_v23 = vadd.f32 %v3790_v26, %v3525_v17  ;;  %v3208_v52 = vmul.f32 %v3192_v2, %v8438_v55  ;;  %v3223_v26 = vadd.f32 %v3207_v19, %v3047_v15  ;;  %v4530_v39 = vld [vmem:[%s8726_s10] sm:$0xff]  ;;  %v9095_v17 = vld [vmem:[#allocation35_spill] sm:$0xff] }
 0x7a2   : > { %5076 = vmatprep.subr.mxu1 %v4530_v39 }
 0x7a3   : > { %5077 = vmatpush3.msra.mxu1 %v4530_v39 }
 0x7a4   : > { %v4282_v53 = vpop.permute.xlu1 %4281  ;;  %v3792_v18 = vpop.permute.xlu0 %3791 }
 0x7a5   : > { %v4323_v60 = vmul.f32 %v4282_v53, %v4131_v0  ;;  %v3830_v35 = vadd.f32 %v3792_v18, %v3526_v62  ;;  %v3224_v53 = vadd.f32 %v3208_v52, %v3048_v33 }
 0x7a7   : > { %5061 = vmatprep.mubr.msk.f32.mxu0 %vm626_vm1, %v4323_v60 }
 0x7a8   : > { %v4284_v57 = vpop.permute.xlu1 %4283  ;;  %v3490_v9 = vpop.permute.xlu0 %3489 }
 0x7a9   : > { %v4324_v7 = vmul.f32 %v4284_v57, %v4132_v1  ;;  %v3527_v5 = vadd.f32 %v3490_v9, %v3223_v26  ;;  %v9092_v57 = vld [vmem:[#allocation71_spill] sm:$0xff] }
 0x7aa   : > { %v3193_v9 = vsel %vm1175_vm2, %v9092_v57, %v8554_v58 }
 0x7ab   : > { %5062 = vmatmul.mubr.msk.f32.gmra.mrb[22].mxu0 %vm626_vm1, %v4324_v7  ;;  %v3209_v7 = vmul.f32 %v3193_v9, %v8453_v11  ;;  %v9096_v11 = vld [vmem:[#allocation66_spill] sm:$0xff] }
 0x7ac   : > { %v4094_v6 = vpop.permute.xlu1 %4093  ;;  %v3492_v38 = vpop.permute.xlu0 %3491 }
 0x7ad   : > { %v4133_v22 = vadd.f32 %v4094_v6, %v3829_v23  ;;  %v3528_v24 = vadd.f32 %v3492_v38, %v3224_v53  ;;  %v9094_v38 = vld [vmem:[#allocation62_spill] sm:$0xff]  ;;  %v3225_v30 = vadd.f32 %v3209_v7, %v3049_v27  ;;  %v4888_v27 = vld [vmem:[%s8727_s11] ss:$0 sm:$0xff] }
 0x7ae   : > { %v3194_v20 = vsel %vm1175_vm2, %v9094_v38, %v8568_v48 }
 0x7af   : > { %v3210_v43 = vmul.f32 %v3194_v20, %v8462_v13  ;;  %v9098_v13 = vld [vmem:[#allocation75_spill] sm:$0xff] }
 0x7b0   : > { %v4096_v36 = vpop.permute.xlu1 %4095  ;;  %v3794_v37 = vpop.permute.xlu0 %3793 }
 0x7b1   : > { %v4134_v31 = vadd.f32 %v4096_v36, %v3830_v35  ;;  %v3831_v18 = vadd.f32 %v3794_v37, %v3527_v5  ;;  %v3050_v36 = vmul.f32 %v8515_v49, %v9095_v17  ;;  %v3195_v37 = vsel %vm1175_vm2, %v9096_v11, %v8574_v41 }
 0x7b2   : > { %v3211_v48 = vmul.f32 %v3195_v37, %v8474_v51 }
 0x7b4   : > { %v4286_v40 = vpop.permute.xlu1 %4285  ;;  %v3796_v8 = vpop.permute.xlu0 %3795 }
 0x7b5   : > { %v4325_v61 = vmul.f32 %v4286_v40, %v4133_v22  ;;  %v3832_v55 = vadd.f32 %v3796_v8, %v3528_v24  ;;  %v3226_v22 = vadd.f32 %v3210_v43, %v3050_v36  ;;  %v9097_v8 = vld [vmem:[#allocation36_spill] sm:$0xff] }
 0x7b6   : > { %v3051_v35 = vmul.f32 %v8515_v49, %v9097_v8 }
 0x7b7   : > { %5064 = vmatprep.mubr.msk.f32.mxu0 %vm626_vm1, %v4325_v61  ;;  %v3196_v61 = vsel %vm1175_vm2, %v9098_v13, %v8588_v14 }
 0x7b8   : > { %v4288_v25 = vpop.permute.xlu1 %4287  ;;  %v3494_v63 = vpop.permute.xlu0 %3493  ;;  %v3212_v19 = vmul.f32 %v3196_v61, %v8480_v50  ;;  %v3227_v45 = vadd.f32 %v3211_v48, %v3051_v35 }
 0x7b9   : > { %v4326_v34 = vmul.f32 %v4288_v25, %v4134_v31  ;;  %v3529_v47 = vadd.f32 %v3494_v63, %v3225_v30  ;;  %v9099_v31 = vld [vmem:[#allocation37_spill] sm:$0xff] }
 0x7ba   : > { %v3052_v41 = vmul.f32 %v8515_v49, %v9099_v31 }
 0x7bb   : > { %5065 = vmatmul.mubr.msk.f32.gmra.mrb[24].mxu0 %vm626_vm1, %v4326_v34 }
 0x7bc   : > { %v4098_v46 = vpop.permute.xlu1 %4097  ;;  %v3496_v29 = vpop.permute.xlu0 %3495  ;;  %v3228_v56 = vadd.f32 %v3212_v19, %v3052_v41 }
 0x7bd   : > { %v4135_v60 = vadd.f32 %v4098_v46, %v3831_v18  ;;  %v3530_v21 = vadd.f32 %v3496_v29, %v3226_v22 }
 0x7c0   : > { %v4100_v4 = vpop.permute.xlu1 %4099  ;;  %v3798_v0 = vpop.permute.xlu0 %3797 }
 0x7c1   : > { %v4136_v42 = vadd.f32 %v4100_v4, %v3832_v55  ;;  %v3833_v40 = vadd.f32 %v3798_v0, %v3529_v47 }
 0x7c4   : > { %v4290_v12 = vpop.permute.xlu1 %4289  ;;  %v3800_v32 = vpop.permute.xlu0 %3799 }
 0x7c5   : > { %v4327_v1 = vmul.f32 %v4290_v12, %v4135_v60  ;;  %v3834_v51 = vadd.f32 %v3800_v32, %v3530_v21 }
 0x7c7   : > { %5067 = vmatprep.mubr.msk.f32.mxu0 %vm626_vm1, %v4327_v1 }
 0x7c8   : > { %v4292_v16 = vpop.permute.xlu1 %4291  ;;  %v3498_v3 = vpop.permute.xlu0 %3497 }
 0x7c9   : > { %v4328_v6 = vmul.f32 %v4292_v16, %v4136_v42  ;;  %v3531_v34 = vadd.f32 %v3498_v3, %v3227_v45 }
 0x7cb   : > { %5068 = vmatmul.mubr.msk.f32.gmra.mrb[26].mxu0 %vm626_vm1, %v4328_v6 }
 0x7cc   : > { %v4102_v28 = vpop.permute.xlu1 %4101  ;;  %v3500_v58 = vpop.permute.xlu0 %3499 }
 0x7cd   : > { %v4137_v54 = vadd.f32 %v4102_v28, %v3833_v40  ;;  %v3532_v52 = vadd.f32 %v3500_v58, %v3228_v56 }
 0x7d0   : > { %v4104_v23 = vpop.permute.xlu1 %4103  ;;  %v3802_v62 = vpop.permute.xlu0 %3801 }
 0x7d1   : > { %v4138_v10 = vadd.f32 %v4104_v23, %v3834_v51  ;;  %v3835_v14 = vadd.f32 %v3802_v62, %v3531_v34 }
 0x7d4   : > { %v4294_v25 = vpop.permute.xlu1 %4293  ;;  %v3804_v63 = vpop.permute.xlu0 %3803 }
 0x7d5   : > { %v4329_v15 = vmul.f32 %v4294_v25, %v4137_v54  ;;  %v3836_v33 = vadd.f32 %v3804_v63, %v3532_v52 }
 0x7d7   : > { %5070 = vmatprep.mubr.msk.f32.mxu0 %vm626_vm1, %v4329_v15 }
 0x7d8   : > { %v4296_v2 = vpop.permute.xlu1 %4295  ;;  %v4106_v46 = vpop.permute.xlu0 %4105 }
 0x7d9   : > { %v4330_v29 = vmul.f32 %v4296_v2, %v4138_v10  ;;  %v4139_v26 = vadd.f32 %v4106_v46, %v3835_v14 }
 0x7db   : > { %5071 = vmatmul.mubr.msk.f32.gmra.mrb[28].mxu0 %vm626_vm1, %v4330_v29 }
 0x7dc   : > { %v4108_v49 = vpop.permute.xlu1 %4107  ;;  %v4298_v44 = vpop.permute.xlu0 %4297 }
 0x7dd   : > { %v4331_v50 = vmul.f32 %v4298_v44, %v4139_v26  ;;  %v4140_v5 = vadd.f32 %v4108_v49, %v3836_v33 }
 0x7df   : > { %5073 = vmatprep.mubr.msk.f32.mxu0 %vm626_vm1, %v4331_v50 }
 0x7e0   : > { %v4300_v4 = vpop.permute.xlu1 %4299 }
 0x7e1   : > { %v4332_v0 = vmul.f32 %v4300_v4, %v4140_v5 }
 0x7e3   : > { %5074 = vmatmul.mubr.msk.f32.gmra.mrb[30].mxu0 %vm626_vm1, %v4332_v0 }
 0x842   : > { %v5054_v53 = vpop.f32.mrb[16].mxu0 }
 0x843   : > { %v4451_v18 = vpop.f32.mrb[17].mxu0 }
 0x844   : > { %5078 = vmatprep.mubr.msk.f32.mxu1 %vm4538_vm14, %v4451_v18 }
 0x845   : > { %5079 = vmatmul.mubr.msk.f32.vlgmr.msra.gmra.mrb[16].mxu1 %vm4538_vm14, %v5054_v53 }
 0x856   : > { %v5057_v39 = vpop.f32.mrb[18].mxu0 }
 0x857   : > { %v4461_v24 = vpop.f32.mrb[19].mxu0 }
 0x858   : > { %5081 = vmatprep.mubr.msk.f32.mxu1 %vm4538_vm14, %v4461_v24 }
 0x859   : > { %5082 = vmatmul.mubr.msk.f32.gmra.mrb[18].mxu1 %vm4538_vm14, %v5057_v39 }
 0x86a   : > { %v5060_v60 = vpop.f32.mrb[20].mxu0 }
 0x86b   : > { %v4471_v12 = vpop.f32.mrb[21].mxu0 }
 0x86c   : > { %5084 = vmatprep.mubr.msk.f32.mxu1 %vm4538_vm14, %v4471_v12 }
 0x86d   : > { %5085 = vmatmul.mubr.msk.f32.gmra.mrb[20].mxu1 %vm4538_vm14, %v5060_v60 }
 0x87e   : > { %v5063_v32 = vpop.f32.mrb[22].mxu0 }
 0x87f   : > { %v4481_v55 = vpop.f32.mrb[23].mxu0 }
 0x880   : > { %5087 = vmatprep.mubr.msk.f32.mxu1 %vm4538_vm14, %v4481_v55 }
 0x881   : > { %5088 = vmatmul.mubr.msk.f32.gmra.mrb[22].mxu1 %vm4538_vm14, %v5063_v32 }
 0x88e   : > { %v5066_v1 = vpop.f32.mrb[24].mxu0 }
 0x88f   : > { %v4491_v57 = vpop.f32.mrb[25].mxu0 }
 0x890   : > { %5090 = vmatprep.mubr.msk.f32.mxu1 %vm4538_vm14, %v4491_v57 }
 0x891   : > { %5091 = vmatmul.mubr.msk.f32.gmra.mrb[24].mxu1 %vm4538_vm14, %v5066_v1 }
 0x89e   : > { %v5069_v9 = vpop.f32.mrb[26].mxu0 }
 0x89f   : > { %v4501_v42 = vpop.f32.mrb[27].mxu0 }
 0x8a0   : > { %5093 = vmatprep.mubr.msk.f32.mxu1 %vm4538_vm14, %v4501_v42 }
 0x8a1   : > { %5094 = vmatmul.mubr.msk.f32.gmra.mrb[26].mxu1 %vm4538_vm14, %v5069_v9 }
 0x8ae   : > { %v5072_v16 = vpop.f32.mrb[28].mxu0 }
 0x8af   : > { %v4511_v3 = vpop.f32.mrb[29].mxu0 }
 0x8b0   : > { %5096 = vmatprep.mubr.msk.f32.mxu1 %vm4538_vm14, %v4511_v3 }
 0x8b1   : > { %5097 = vmatmul.mubr.msk.f32.gmra.mrb[28].mxu1 %vm4538_vm14, %v5072_v16 }
 0x8b6   : > { %v5075_v7 = vpop.f32.mrb[30].mxu0 }
 0x8b7   : > { %v4521_v59 = vpop.f32.mrb[31].mxu0 }
 0x8b8   : > { %5099 = vmatprep.mubr.msk.f32.mxu1 %vm4538_vm14, %v4521_v59 }
 0x8b9   : > { %5100 = vmatmul.mubr.msk.f32.gmra.mrb[30].mxu1 %vm4538_vm14, %v5075_v7 }
 0x918   : > { %v5080_v6 = vpop.f32.mrb[16].mxu1 }
 0x919   : > { %v4659_v38 = vadd.f32 %v5080_v6, %v4888_v27  ;;  %v4653_v20 = vpop.f32.mrb[17].mxu1 }
 0x91a   : > { %v4654_v28 = vadd.f32 %v4888_v27, %v4653_v20 }
 0x91b   : > { %4734 = vst.msk [vmem:[%s5860_s15 + $0x8] sm:$0xff] %vm4732_vm15, %v4659_v38 }
 0x91c   : > { %4733 = vst.msk [vmem:[%s5860_s15] sm:$0xff] %vm4732_vm15, %v4654_v28 }
 0x92c   : > { %v5083_v58 = vpop.f32.mrb[18].mxu1 }
 0x92d   : > { %v4669_v43 = vadd.f32 %v5083_v58, %v4888_v27  ;;  %v4663_v30 = vpop.f32.mrb[19].mxu1 }
 0x92e   : > { %v4664_v17 = vadd.f32 %v4888_v27, %v4663_v30 }
 0x92f   : > { %4736 = vst.msk [vmem:[%s5860_s15 + $0x18] sm:$0xff] %vm4732_vm15, %v4669_v43 }
 0x930   : > { %4735 = vst.msk [vmem:[%s5860_s15 + $0x10] sm:$0xff] %vm4732_vm15, %v4664_v17 }
 0x940   : > { %v5086_v36 = vpop.f32.mrb[20].mxu1 }
 0x941   : > { %v4679_v11 = vadd.f32 %v5086_v36, %v4888_v27  ;;  %v4673_v37 = vpop.f32.mrb[21].mxu1 }
 0x942   : > { %v4674_v47 = vadd.f32 %v4888_v27, %v4673_v37 }
 0x943   : > { %4738 = vst.msk [vmem:[%s5860_s15 + $0x28] sm:$0xff] %vm4732_vm15, %v4679_v11 }
 0x944   : > { %4737 = vst.msk [vmem:[%s5860_s15 + $0x20] sm:$0xff] %vm4732_vm15, %v4674_v47 }
 0x954   : > { %v5089_v23 = vpop.f32.mrb[22].mxu1 }
 0x955   : > { %v4689_v62 = vadd.f32 %v5089_v23, %v4888_v27  ;;  %v4683_v48 = vpop.f32.mrb[23].mxu1 }
 0x956   : > { %v4684_v22 = vadd.f32 %v4888_v27, %v4683_v48 }
 0x957   : > { %4740 = vst.msk [vmem:[%s5860_s15 + $0x38] sm:$0xff] %vm4732_vm15, %v4689_v62 }
 0x958   : > { %4739 = vst.msk [vmem:[%s5860_s15 + $0x30] sm:$0xff] %vm4732_vm15, %v4684_v22 }
 0x964   : > { %v5092_v40 = vpop.f32.mrb[24].mxu1 }
 0x965   : > { %v4699_v8 = vadd.f32 %v5092_v40, %v4888_v27  ;;  %v4693_v35 = vpop.f32.mrb[25].mxu1 }
 0x966   : > { %v4694_v13 = vadd.f32 %v4888_v27, %v4693_v35 }
 0x967   : > { %4742 = vst.msk [vmem:[%s5860_s15 + $0x48] sm:$0xff] %vm4732_vm15, %v4699_v8 }
 0x968   : > { %4741 = vst.msk [vmem:[%s5860_s15 + $0x40] sm:$0xff] %vm4732_vm15, %v4694_v13 }
 0x974   : > { %v5095_v61 = vpop.f32.mrb[26].mxu1 }
 0x975   : > { %v4709_v21 = vadd.f32 %v5095_v61, %v4888_v27  ;;  %v4703_v54 = vpop.f32.mrb[27].mxu1 }
 0x976   : > { %v4704_v31 = vadd.f32 %v4888_v27, %v4703_v54 }
 0x977   : > { %4744 = vst.msk [vmem:[%s5860_s15 + $0x58] sm:$0xff] %vm4732_vm15, %v4709_v21 }
 0x978   : > { %4743 = vst.msk [vmem:[%s5860_s15 + $0x50] sm:$0xff] %vm4732_vm15, %v4704_v31 }
 0x984   : > { %v5098_v41 = vpop.f32.mrb[28].mxu1 }
 0x985   : > { %v4719_v25 = vadd.f32 %v5098_v41, %v4888_v27  ;;  %v4713_v63 = vpop.f32.mrb[29].mxu1 }
 0x986   : > { %v4714_v19 = vadd.f32 %v4888_v27, %v4713_v63 }
 0x987   : > { %4746 = vst.msk [vmem:[%s5860_s15 + $0x68] sm:$0xff] %vm4732_vm15, %v4719_v25 }
 0x988   : > { %4745 = vst.msk [vmem:[%s5860_s15 + $0x60] sm:$0xff] %vm4732_vm15, %v4714_v19 }
 0x98c   : > { %v5101_v51 = vpop.f32.mrb[30].mxu1 }
 0x98d   : > { %v4729_v45 = vadd.f32 %v5101_v51, %v4888_v27  ;;  %v4723_v15 = vpop.f32.mrb[31].mxu1 }
 0x98e   : > { %v4724_v34 = vadd.f32 %v4888_v27, %v4723_v15 }
 0x98f   : > { %4748 = vst.msk [vmem:[%s5860_s15 + $0x78] sm:$0xff] %vm4732_vm15, %v4729_v45 }
 0x990   : > { %4747 = vst.msk [vmem:[%s5860_s15 + $0x70] sm:$0xff] %vm4732_vm15, %v4724_v34 }
 0x991 PF: > { %s22_s21 = sadd.s32 1, %s5741_s21  }
 0x992   : > { %p19_p5 = scmp.ge.s32.totalorder %s22_s21, 4  }
 0x994   :  { %21 = sbr.rel (!%p19_p5) target bundleno = 1 (0x1), region = 119 }

</bundles_post_ra>
